<compile_context>
chip_gen: v7x
topology: tpu7x:2x2x1
jax: 0.10.0
libtpu: 0.0.40
codegen_flags: <defaults>
</compile_context>

<pallas_src>
import jax
import jax.numpy as jnp
from jax.experimental import pallas as pl
from jax.experimental.pallas import tpu as pltpu

HIDDEN = 32       # hidden_size
H1 = 1024         # first MLP width (fixed by the module)
H2 = 512          # second MLP width (fixed by the module)
OUT = 8           # output_size (action dim for this synthetic test)
OUT_PAD = 128     # lane-dense output width inside the kernel
LN_EPS = 1e-5
USE_LAYERNORM = True


def _layernorm_1pass(h, gamma, beta, d):
    """One-pass LayerNorm in f32: var = E[h^2] - E[h]^2."""
    inv_d = 1.0 / d
    s1 = jnp.sum(h, axis=-1, keepdims=True)
    s2 = jnp.sum(h * h, axis=-1, keepdims=True)
    mean = s1 * inv_d
    var = jnp.maximum(s2 * inv_d - mean * mean, 0.0)
    return (h - mean) * jax.lax.rsqrt(var + LN_EPS) * gamma + beta


def mlp_kernel(x_ref, w1_ref, p1_ref, w2_ref, p2_ref, w3_ref, b3_ref, o_ref):
    # p1 = [b1; gamma1; beta1] (3, H1) f32 ; p2 likewise (3, H2) f32.
    p1 = p1_ref[...]
    p2 = p2_ref[...]
    b1, g1, be1 = p1[0:1, :], p1[1:2, :], p1[2:3, :]
    b2, g2, be2 = p2[0:1, :], p2[1:2, :], p2[2:3, :]

    # ---- Linear(hidden -> 1024) + LN + ReLU ----
    x16 = x_ref[...].astype(jnp.bfloat16)
    h = jnp.dot(x16, w1_ref[...], preferred_element_type=jnp.float32) + b1
    if USE_LAYERNORM:
        h = _layernorm_1pass(h, g1, be1, float(H1))
    h = jnp.maximum(h, 0.0)

    # ---- Linear(1024 -> 512) + LN + ReLU ----
    h = jnp.dot(h.astype(jnp.bfloat16), w2_ref[...],
                preferred_element_type=jnp.float32) + b2
    if USE_LAYERNORM:
        h = _layernorm_1pass(h, g2, be2, float(H2))
    h = jnp.maximum(h, 0.0)

    # ---- Linear(512 -> OUT_PAD)  (columns beyond OUT are zero-padded) ----
    y = jnp.dot(h.astype(jnp.bfloat16), w3_ref[...],
                preferred_element_type=jnp.float32) + b3_ref[...]
    o_ref[...] = y.astype(o_ref.dtype)


def mlp_noh_head(x, params, *, tm=128):
    """x: (N, HIDDEN) f32 -> (N, OUT) f32. Batch dim tiled by tm; weights are
    resident in VMEM and broadcast (constant block index) to every step."""
    N, H = x.shape
    assert H == HIDDEN
    (w1, b1, g1, be1, w2, b2, g2, be2, w3, b3) = params

    n_pad = pl.cdiv(N, tm) * tm
    if n_pad != N:
        x = jnp.pad(x, ((0, n_pad - N), (0, 0)))

    # bf16 weights for the MXU; bias / LN params stay f32, packed per layer.
    w1b = w1.astype(jnp.bfloat16)
    w2b = w2.astype(jnp.bfloat16)
    w3b = jnp.pad(w3, ((0, 0), (0, OUT_PAD - OUT))).astype(jnp.bfloat16)
    b3p = jnp.pad(b3, ((0, 0), (0, OUT_PAD - OUT)))
    p1 = jnp.concatenate([b1, g1, be1], axis=0)     # (3, H1) f32
    p2 = jnp.concatenate([b2, g2, be2], axis=0)     # (3, H2) f32

    const = lambda shape: pl.BlockSpec(shape, lambda i: (0, 0))
    grid_spec = pltpu.PrefetchScalarGridSpec(
        num_scalar_prefetch=0,
        grid=(n_pad // tm,),
        in_specs=[
            pl.BlockSpec((tm, HIDDEN), lambda i: (i, 0)),   # x tile
            const((HIDDEN, H1)), const((3, H1)),
            const((H1, H2)),     const((3, H2)),
            const((H2, OUT_PAD)), const((1, OUT_PAD)),
        ],
        out_specs=pl.BlockSpec((tm, OUT_PAD), lambda i: (i, 0)),
    )
    out = pl.pallas_call(
        mlp_kernel,
        out_shape=jax.ShapeDtypeStruct((n_pad, OUT_PAD), jnp.float32),
        grid_spec=grid_spec,
        compiler_params=pltpu.CompilerParams(
            dimension_semantics=("parallel",)),
    )(x, w1b, p1, w2b, p2, w3b, b3p)
    return out[:N, :OUT]


def init_params(key):
    ks = jax.random.split(key, 6)
    def lin(kw, kb, fan_in, fan_out):
        bound = 1.0 / jnp.sqrt(fan_in)
        w = jax.random.uniform(kw, (fan_in, fan_out), jnp.float32, -bound, bound)
        b = jax.random.uniform(kb, (1, fan_out), jnp.float32, -bound, bound)
        return w, b
    w1, b1 = lin(ks[0], ks[1], HIDDEN, H1)
    w2, b2 = lin(ks[2], ks[3], H1, H2)
    w3, b3 = lin(ks[4], ks[5], H2, OUT)
    g1, be1 = jnp.ones((1, H1), jnp.float32), jnp.zeros((1, H1), jnp.float32)
    g2, be2 = jnp.ones((1, H2), jnp.float32), jnp.zeros((1, H2), jnp.float32)
    return (w1, b1, g1, be1, w2, b2, g2, be2, w3, b3)


def reference_f32(x, params):
    (w1, b1, g1, be1, w2, b2, g2, be2, w3, b3) = params
    def ln(h, g, b):
        m = h.mean(-1, keepdims=True)
        v = ((h - m) ** 2).mean(-1, keepdims=True)
        return (h - m) / jnp.sqrt(v + LN_EPS) * g + b
    h = x @ w1 + b1
    h = jnp.maximum(ln(h, g1, be1), 0.0)
    h = h @ w2 + b2
    h = jnp.maximum(ln(h, g2, be2), 0.0)
    return h @ w3 + b3


def reference_bf16(x, params):
    """Mirrors the kernel's precision choices (bf16 matmul inputs, f32 acc)."""
    (w1, b1, g1, be1, w2, b2, g2, be2, w3, b3) = params
    bf = jnp.bfloat16
    dot = lambda a, w: jnp.dot(a.astype(bf), w.astype(bf),
                               preferred_element_type=jnp.float32)
    h = dot(x, w1) + b1
    h = jnp.maximum(_layernorm_1pass(h, g1, be1, float(H1)), 0.0)
    h = dot(h, w2) + b2
    h = jnp.maximum(_layernorm_1pass(h, g2, be2, float(H2)), 0.0)
    return dot(h, w3) + b3


if __name__ == "__main__":
    key = jax.random.PRNGKey(0)
    kx, kp = jax.random.split(key)
    N = 200   # not a multiple of tm: exercises batch padding + a 2-step grid
    x = jax.random.normal(kx, (N, HIDDEN), jnp.float32)
    params = init_params(kp)

    out = jax.block_until_ready(mlp_noh_head(x, params, tm=128))
    assert out.shape == (N, OUT)

    # Exact-precision-matched reference (bf16 matmul operands, f32 accum/LN).
    ref16 = reference_bf16(x, params)
    assert jnp.allclose(out, ref16, atol=2e-3, rtol=2e-3), \
        float(jnp.max(jnp.abs(out - ref16)))
    # Semantic sanity vs full-f32 reference (loose tol for bf16 quantization).
    ref32 = reference_f32(x, params)
    assert jnp.allclose(out, ref32, atol=5e-2, rtol=5e-2), \
        float(jnp.max(jnp.abs(out - ref32)))

    print("KERNEL_OK")
</pallas_src>

<mosaic_0001>
module attributes {stable_mosaic.version = 11 : i64} {
  func.func @mlp_kernel(%arg0: i32, %arg1: memref<128x32xf32, #tpu.memory_space<vmem>>, %arg2: memref<32x1024xbf16, #tpu.memory_space<vmem>>, %arg3: memref<3x1024xf32, #tpu.memory_space<vmem>>, %arg4: memref<1024x512xbf16, #tpu.memory_space<vmem>>, %arg5: memref<3x512xf32, #tpu.memory_space<vmem>>, %arg6: memref<512x128xbf16, #tpu.memory_space<vmem>>, %arg7: memref<1x128xf32, #tpu.memory_space<vmem>>, %arg8: memref<128x128xf32, #tpu.memory_space<vmem>>) attributes {dimension_semantics = [#tpu.dimension_semantics<parallel>], iteration_bounds = array<i64: 2>, scalar_prefetch = 0 : i64, scratch_operands = 0 : i64, tpu.core_type = #tpu.core_type<tc>, window_params = [{transform_indices = @transform_0, window_bounds = array<i64: 128, 32>}, {pipeline_mode = #tpu.pipeline_mode<synchronous>, transform_indices = @transform_1, window_bounds = array<i64: 32, 1024>}, {pipeline_mode = #tpu.pipeline_mode<synchronous>, transform_indices = @transform_2, window_bounds = array<i64: 3, 1024>}, {pipeline_mode = #tpu.pipeline_mode<synchronous>, transform_indices = @transform_3, window_bounds = array<i64: 1024, 512>}, {pipeline_mode = #tpu.pipeline_mode<synchronous>, transform_indices = @transform_4, window_bounds = array<i64: 3, 512>}, {pipeline_mode = #tpu.pipeline_mode<synchronous>, transform_indices = @transform_5, window_bounds = array<i64: 512, 128>}, {pipeline_mode = #tpu.pipeline_mode<synchronous>, transform_indices = @transform_6, window_bounds = array<i64: 1, 128>}, {transform_indices = @transform_7, window_bounds = array<i64: 128, 128>}]} {
    %c0 = arith.constant 0 : index
    %c0_0 = arith.constant 0 : index
    %0 = vector.load %arg3[%c0, %c0_0] : memref<3x1024xf32, #tpu.memory_space<vmem>>, vector<3x1024xf32>
    %c0_1 = arith.constant 0 : index
    %c0_2 = arith.constant 0 : index
    %1 = vector.load %arg5[%c0_1, %c0_2] : memref<3x512xf32, #tpu.memory_space<vmem>>, vector<3x512xf32>
    %2 = vector.extract_strided_slice %0 {offsets = [0, 0], sizes = [1, 1024], strides = [1, 1]} : vector<3x1024xf32> to vector<1x1024xf32>
    %3 = vector.extract_strided_slice %0 {offsets = [1, 0], sizes = [1, 1024], strides = [1, 1]} : vector<3x1024xf32> to vector<1x1024xf32>
    %4 = vector.extract_strided_slice %0 {offsets = [2, 0], sizes = [1, 1024], strides = [1, 1]} : vector<3x1024xf32> to vector<1x1024xf32>
    %5 = vector.extract_strided_slice %1 {offsets = [0, 0], sizes = [1, 512], strides = [1, 1]} : vector<3x512xf32> to vector<1x512xf32>
    %6 = vector.extract_strided_slice %1 {offsets = [1, 0], sizes = [1, 512], strides = [1, 1]} : vector<3x512xf32> to vector<1x512xf32>
    %7 = vector.extract_strided_slice %1 {offsets = [2, 0], sizes = [1, 512], strides = [1, 1]} : vector<3x512xf32> to vector<1x512xf32>
    %c0_3 = arith.constant 0 : index
    %c0_4 = arith.constant 0 : index
    %8 = vector.load %arg1[%c0_3, %c0_4] : memref<128x32xf32, #tpu.memory_space<vmem>>, vector<128x32xf32>
    %9 = arith.truncf %8 : vector<128x32xf32> to vector<128x32xbf16>
    %c0_5 = arith.constant 0 : index
    %c0_6 = arith.constant 0 : index
    %10 = vector.load %arg2[%c0_5, %c0_6] : memref<32x1024xbf16, #tpu.memory_space<vmem>>, vector<32x1024xbf16>
    %cst = arith.constant dense<0.000000e+00> : vector<128x1024xf32>
    %11 = tpu.matmul %9, %10, %cst {dimension_numbers = #tpu.dot_dimension_numbers<[1], [0], [0], [1], [0, 0, 1, 1], [], []>} : vector<128x32xbf16>, vector<32x1024xbf16>, vector<128x1024xf32> -> vector<128x1024xf32>
    %12 = vector.broadcast %2 : vector<1x1024xf32> to vector<128x1024xf32>
    %13 = arith.addf %11, %12 : vector<128x1024xf32>
    %cst_7 = arith.constant dense<0.000000e+00> : vector<128xf32>
    %14 = vector.multi_reduction <add>, %13, %cst_7 [1] : vector<128x1024xf32> to vector<128xf32>
    %15 = vector.shape_cast %14 : vector<128xf32> to vector<128x1xf32>
    %16 = arith.mulf %13, %13 : vector<128x1024xf32>
    %cst_8 = arith.constant dense<0.000000e+00> : vector<128xf32>
    %17 = vector.multi_reduction <add>, %16, %cst_8 [1] : vector<128x1024xf32> to vector<128xf32>
    %18 = vector.shape_cast %17 : vector<128xf32> to vector<128x1xf32>
    %cst_9 = arith.constant 9.765625E-4 : f32
    %19 = vector.broadcast %cst_9 : f32 to vector<128x1xf32>
    %20 = arith.mulf %15, %19 : vector<128x1xf32>
    %cst_10 = arith.constant 9.765625E-4 : f32
    %21 = vector.broadcast %cst_10 : f32 to vector<128x1xf32>
    %22 = arith.mulf %18, %21 : vector<128x1xf32>
    %23 = arith.mulf %20, %20 : vector<128x1xf32>
    %24 = arith.subf %22, %23 : vector<128x1xf32>
    %cst_11 = arith.constant 0.000000e+00 : f32
    %25 = vector.broadcast %cst_11 : f32 to vector<128x1xf32>
    %26 = arith.maximumf %24, %25 : vector<128x1xf32>
    %27 = vector.broadcast %20 : vector<128x1xf32> to vector<128x1024xf32>
    %28 = arith.subf %13, %27 : vector<128x1024xf32>
    %cst_12 = arith.constant 9.99999974E-6 : f32
    %29 = vector.broadcast %cst_12 : f32 to vector<128x1xf32>
    %30 = arith.addf %26, %29 : vector<128x1xf32>
    %31 = math.rsqrt %30 : vector<128x1xf32>
    %32 = vector.broadcast %31 : vector<128x1xf32> to vector<128x1024xf32>
    %33 = arith.mulf %28, %32 : vector<128x1024xf32>
    %34 = vector.broadcast %3 : vector<1x1024xf32> to vector<128x1024xf32>
    %35 = arith.mulf %33, %34 : vector<128x1024xf32>
    %36 = vector.broadcast %4 : vector<1x1024xf32> to vector<128x1024xf32>
    %37 = arith.addf %35, %36 : vector<128x1024xf32>
    %cst_13 = arith.constant 0.000000e+00 : f32
    %38 = vector.broadcast %cst_13 : f32 to vector<128x1024xf32>
    %39 = arith.maximumf %37, %38 : vector<128x1024xf32>
    %40 = arith.truncf %39 : vector<128x1024xf32> to vector<128x1024xbf16>
    %c0_14 = arith.constant 0 : index
    %c0_15 = arith.constant 0 : index
    %41 = vector.load %arg4[%c0_14, %c0_15] : memref<1024x512xbf16, #tpu.memory_space<vmem>>, vector<1024x512xbf16>
    %cst_16 = arith.constant dense<0.000000e+00> : vector<128x512xf32>
    %42 = tpu.matmul %40, %41, %cst_16 {dimension_numbers = #tpu.dot_dimension_numbers<[1], [0], [0], [1], [0, 0, 1, 1], [], []>} : vector<128x1024xbf16>, vector<1024x512xbf16>, vector<128x512xf32> -> vector<128x512xf32>
    %43 = vector.broadcast %5 : vector<1x512xf32> to vector<128x512xf32>
    %44 = arith.addf %42, %43 : vector<128x512xf32>
    %cst_17 = arith.constant dense<0.000000e+00> : vector<128xf32>
    %45 = vector.multi_reduction <add>, %44, %cst_17 [1] : vector<128x512xf32> to vector<128xf32>
    %46 = vector.shape_cast %45 : vector<128xf32> to vector<128x1xf32>
    %47 = arith.mulf %44, %44 : vector<128x512xf32>
    %cst_18 = arith.constant dense<0.000000e+00> : vector<128xf32>
    %48 = vector.multi_reduction <add>, %47, %cst_18 [1] : vector<128x512xf32> to vector<128xf32>
    %49 = vector.shape_cast %48 : vector<128xf32> to vector<128x1xf32>
    %cst_19 = arith.constant 0.001953125 : f32
    %50 = vector.broadcast %cst_19 : f32 to vector<128x1xf32>
    %51 = arith.mulf %46, %50 : vector<128x1xf32>
    %cst_20 = arith.constant 0.001953125 : f32
    %52 = vector.broadcast %cst_20 : f32 to vector<128x1xf32>
    %53 = arith.mulf %49, %52 : vector<128x1xf32>
    %54 = arith.mulf %51, %51 : vector<128x1xf32>
    %55 = arith.subf %53, %54 : vector<128x1xf32>
    %cst_21 = arith.constant 0.000000e+00 : f32
    %56 = vector.broadcast %cst_21 : f32 to vector<128x1xf32>
    %57 = arith.maximumf %55, %56 : vector<128x1xf32>
    %58 = vector.broadcast %51 : vector<128x1xf32> to vector<128x512xf32>
    %59 = arith.subf %44, %58 : vector<128x512xf32>
    %cst_22 = arith.constant 9.99999974E-6 : f32
    %60 = vector.broadcast %cst_22 : f32 to vector<128x1xf32>
    %61 = arith.addf %57, %60 : vector<128x1xf32>
    %62 = math.rsqrt %61 : vector<128x1xf32>
    %63 = vector.broadcast %62 : vector<128x1xf32> to vector<128x512xf32>
    %64 = arith.mulf %59, %63 : vector<128x512xf32>
    %65 = vector.broadcast %6 : vector<1x512xf32> to vector<128x512xf32>
    %66 = arith.mulf %64, %65 : vector<128x512xf32>
    %67 = vector.broadcast %7 : vector<1x512xf32> to vector<128x512xf32>
    %68 = arith.addf %66, %67 : vector<128x512xf32>
    %cst_23 = arith.constant 0.000000e+00 : f32
    %69 = vector.broadcast %cst_23 : f32 to vector<128x512xf32>
    %70 = arith.maximumf %68, %69 : vector<128x512xf32>
    %71 = arith.truncf %70 : vector<128x512xf32> to vector<128x512xbf16>
    %c0_24 = arith.constant 0 : index
    %c0_25 = arith.constant 0 : index
    %72 = vector.load %arg6[%c0_24, %c0_25] : memref<512x128xbf16, #tpu.memory_space<vmem>>, vector<512x128xbf16>
    %cst_26 = arith.constant dense<0.000000e+00> : vector<128x128xf32>
    %73 = tpu.matmul %71, %72, %cst_26 {dimension_numbers = #tpu.dot_dimension_numbers<[1], [0], [0], [1], [0, 0, 1, 1], [], []>} : vector<128x512xbf16>, vector<512x128xbf16>, vector<128x128xf32> -> vector<128x128xf32>
    %c0_27 = arith.constant 0 : index
    %c0_28 = arith.constant 0 : index
    %74 = vector.load %arg7[%c0_27, %c0_28] : memref<1x128xf32, #tpu.memory_space<vmem>>, vector<1x128xf32>
    %75 = vector.broadcast %74 : vector<1x128xf32> to vector<128x128xf32>
    %76 = arith.addf %73, %75 : vector<128x128xf32>
    %c0_29 = arith.constant 0 : index
    %c0_30 = arith.constant 0 : index
    %77 = vector.load %arg8[%c0_29, %c0_30] : memref<128x128xf32, #tpu.memory_space<vmem>>, vector<128x128xf32>
    tpu.vector_store %arg8[%c0_29, %c0_30], %76 {strides = array<i32>} : memref<128x128xf32, #tpu.memory_space<vmem>>, vector<128x128xf32>,
    return
  }
  func.func @transform_0(%arg0: i32) -> (i32, i32) {
    %c0_i32 = arith.constant 0 : i32
    %c0_i32_0 = arith.constant 0 : i32
    return %arg0, %c0_i32 : i32, i32
  }
  func.func @transform_1(%arg0: i32) -> (i32, i32) {
    %c0_i32 = arith.constant 0 : i32
    %c0_i32_0 = arith.constant 0 : i32
    %c0_i32_1 = arith.constant 0 : i32
    return %c0_i32, %c0_i32_0 : i32, i32
  }
  func.func @transform_2(%arg0: i32) -> (i32, i32) {
    %c0_i32 = arith.constant 0 : i32
    %c0_i32_0 = arith.constant 0 : i32
    %c0_i32_1 = arith.constant 0 : i32
    return %c0_i32, %c0_i32_0 : i32, i32
  }
  func.func @transform_3(%arg0: i32) -> (i32, i32) {
    %c0_i32 = arith.constant 0 : i32
    %c0_i32_0 = arith.constant 0 : i32
    %c0_i32_1 = arith.constant 0 : i32
    return %c0_i32, %c0_i32_0 : i32, i32
  }
  func.func @transform_4(%arg0: i32) -> (i32, i32) {
    %c0_i32 = arith.constant 0 : i32
    %c0_i32_0 = arith.constant 0 : i32
    %c0_i32_1 = arith.constant 0 : i32
    return %c0_i32, %c0_i32_0 : i32, i32
  }
  func.func @transform_5(%arg0: i32) -> (i32, i32) {
    %c0_i32 = arith.constant 0 : i32
    %c0_i32_0 = arith.constant 0 : i32
    %c0_i32_1 = arith.constant 0 : i32
    return %c0_i32, %c0_i32_0 : i32, i32
  }
  func.func @transform_6(%arg0: i32) -> (i32, i32) {
    %c0_i32 = arith.constant 0 : i32
    %c0_i32_0 = arith.constant 0 : i32
    %c0_i32_1 = arith.constant 0 : i32
    return %c0_i32, %c0_i32_0 : i32, i32
  }
  func.func @transform_7(%arg0: i32) -> (i32, i32) {
    %c0_i32 = arith.constant 0 : i32
    %c0_i32_0 = arith.constant 0 : i32
    return %arg0, %c0_i32 : i32, i32
  }
}

</mosaic_0001>

<bundles_post_ra>
// kernel: tpu_custom_call.1
= control target key start
LH: loop header
LB: loop body
LE: loop exit
PB: predicated region body
PF: predicated region fallthrough
CT: control target
= control target key end

     0   :  { %12 = vsyncpa [#allocation3], 0  ;;  %s10778_s0 = inlined_call_operand.vmem [shape: f32[256,32], index: 0, kind: input, shape index: {}]   ;;  %s10779_s1 = inlined_call_operand.hbm [shape: bf16[32,1024], index: 1, kind: input, shape index: {}]   ;;  %s10780_s2 = inlined_call_operand.vmem [shape: f32[3,1024], index: 2, kind: input, shape index: {}]   ;;  %s10781_s3 = inlined_call_operand.hbm [shape: bf16[1024,512], index: 3, kind: input, shape index: {}]   ;;  %s10782_s4 = inlined_call_operand.vmem [shape: f32[3,512], index: 4, kind: input, shape index: {}]   ;;  %s10783_s5 = inlined_call_operand.vmem [shape: bf16[512,128], index: 5, kind: input, shape index: {}]   ;;  %s10784_s6 = inlined_call_operand.vmem [shape: f32[1,128], index: 6, kind: input, shape index: {}]   ;;  %s10785_s7 = inlined_call_operand.hbm [shape: f32[256,128], index: 7, kind: output, shape index: {}]  }
   0x1   :  { %13 = vsyncpa [#allocation6], 0 }
   0x2   :  { %14 = vsyncpa [#allocation4], 0 }
   0x3   :  { %16 = vsyncpa [#allocation4 + $0x1], 0  ;;  %s7642_s24 = smov 0   ;;  %s7644_s25 = smov 0  }
   0x4   :  { %s7646_s26 = smov 0   ;;  %s7648_s27 = smov 0  }
   0x5 LB: > { %s7663_s28 = sadd.s32 4294967295, %s7590_s27   ;;  %s6175_s29 = sadd.s32 4294967294, %s7590_s27   ;;  %s7590_s27 = sphi %s7648_s27, %s11367_s27   ;;  %s7586_s26 = sphi %s7646_s26, %s11366_s26   ;;  %s7582_s25 = sphi %s7644_s25, %s11365_s25   ;;  %s7578_s24 = sphi %s7642_s24, %s11364_s24  }
   0x6   : > { %s7667_s30 = sadd.s32 1, %s7590_s27   ;;  %s181_s8 = sadd.s32 1, %s7586_s26 }
   0x7   : > { %s178_s9 = ssub.s32 %s7590_s27, %s7667_s30  ;;  %p191_p0 = scmp.ne.s32.totalorder %s7586_s26, %s7582_s25 }
   0x8   : > { %p179_p1 = scmp.eq.s32.totalorder %s178_s9, 0  ;;  %p192_p2 = scmp.eq.s32.totalorder %s7663_s28, 1 }
   0x9   : > { %p197_p3 = scmp.ne.s32.totalorder %s7582_s25, %s7578_s24  ;;  %p198_p4 = scmp.eq.s32.totalorder %s6175_s29, 1 }
   0xa   : > { %s7678_s10 = scalar_select %p179_p1, %s7586_s26, %s181_s8  }
   0xb   : > { %p7680_p5 = por %p192_p2, %p191_p0  ;;  %p7684_p6 = por %p198_p4, %p197_p3 }
   0xc   : > { %10979 = sst [smem:[#allocation11_spill]] %s7678_s10  ;;  %p6176_p7 = scmp.ge.s32.totalorder %s7590_s27, 1 }
   0xd   : > { %s10980_s11 = scalar_select %p7680_p5, 1, 0 }
   0xe   : > { %s10981_s12 = scalar_select %p7684_p6, 1, 0 }
   0xf   : > { %p205_p8 = scmp.lt.s32.totalorder %s7590_s27, 3  ;;  %p10786_p9 = scmp.eq.s32.totalorder %s7663_s28, 0 }
  0x10   : > { %s7592_s14 = smov [#allocation2]   ;;  %s7593_s17 = smov [#allocation5]  }
  0x11   : > { %p7691_p10 = pnand %p6176_p7, %p205_p8  ;;  %s217_s15 = sshll.u32 %s7592_s14, 4  ;;  %s218_s15 = int_to_ptr.vmem [resolvable:$true] %s217_s15 }
  0x12   : > { %s233_s18 = sshll.u32 %s7593_s17, 4  ;;  %s7464_s21 = scalar_lea.hbm %s10779_s1, 2048  ;;  %s7703_s18 = int_to_ptr.vmem [resolvable:$true] %s233_s18 }
  0x13   : > { %s10982_s13 = scalar_select %p7691_p10, 1, 0 }
  0x14   : > { %p6923_p11 = pneg %p7691_p10  ;;  %p7465_p13 = scmp.ne.s32.totalorder %s10779_s1, %s7464_s21 }
  0x15   : > { %p7471_p3 = scmp.lt.u32.totalorder %s7464_s21, %s10779_s1 }
  0x16   : > { %p7699_p12 = pnand %p10786_p9, %p6923_p11 }
  0x18   : > { %p7466_p0 = pneg %p7699_p12 }
  0x1a   : > { %p7467_p1 = pnand %p7466_p0, %p7465_p13 }
  0x1c   : > { %p7468_p2 = pneg %p7467_p1 }
  0x1e   : > { %p7473_p4 = pnand %p7471_p3, %p7468_p2 }
  0x20   : > { %7476 = shalt.err (!%p7473_p4)
}
  0x21   : > { %s7477_s9 = scalar_lea.vmem %s218_s15, 2048  ;;  %p7485_p9 = scmp.lt.s32.totalorder %s218_s15, %s218_s15 }
  0x22   : > { %p7478_p7 = scmp.ne.s32.totalorder %s218_s15, %s7477_s9  ;;  %p7486_p6 = scmp.lt.s32.totalorder %s7477_s9, %s7477_s9 }
  0x24   : > { %p7480_p8 = pnand %p7478_p7, %p7466_p0  ;;  %p7487_p5 = por %p7486_p6, %p7485_p9 }
  0x26   : > { %p7481_p11 = pneg %p7480_p8 }
  0x28   : > { %p7488_p10 = pnand %p7487_p5, %p7481_p11 }
  0x2a   : > { %7491 = shalt.err (!%p7488_p10)
}
  0x2b   : > { %s7594_s14 = smov 512   ;;  %s7595_s17 = smov 32  }
  0x2c   : > { %6926 = dma.hbm_to_vmem [thread:$0]  (!%p7699_p12), %s10779_s1, 2048, %s218_s15, [#allocation3], %s7594_s14, %s7594_s14, %s7595_s17  }
  0x2d   : > { %s7492_s23 = scalar_lea.hbm %s10781_s3, 32768 }
  0x2e   : > { %p7493_p13 = scmp.ne.s32.totalorder %s10781_s3, %s7492_s23  ;;  %p7499_p9 = scmp.lt.u32.totalorder %s7492_s23, %s10781_s3 }
  0x30   : > { %p7495_p5 = pnand %p7493_p13, %p7466_p0 }
  0x32   : > { %p7496_p6 = pneg %p7495_p5 }
  0x34   : > { %p7501_p10 = pnand %p7499_p9, %p7496_p6 }
  0x36   : > { %7504 = shalt.err (!%p7501_p10)
}
  0x37   : > { %s7505_s15 = scalar_lea.vmem %s7703_s18, 32768  ;;  %p7513_p4 = scmp.lt.s32.totalorder %s7703_s18, %s7703_s18 }
  0x38   : > { %p7506_p1 = scmp.ne.s32.totalorder %s7703_s18, %s7505_s15  ;;  %p7514_p7 = scmp.lt.s32.totalorder %s7505_s15, %s7505_s15 }
  0x3a   : > { %p7508_p2 = pnand %p7506_p1, %p7466_p0  ;;  %p7515_p8 = por %p7514_p7, %p7513_p4 }
  0x3c   : > { %p7509_p3 = pneg %p7508_p2 }
  0x3e   : > { %p7516_p11 = pnand %p7515_p8, %p7509_p3 }
  0x40   : > { %7519 = shalt.err (!%p7516_p11)
}
  0x41   : > { %s7596_s10 = smov 256   ;;  %s7597_s14 = smov 16  }
  0x42   : > { %6929 = dma.hbm_to_vmem [thread:$0]  (!%p7699_p12), %s10781_s3, 32768, %s7703_s18, [#allocation6], %s7596_s10, %s7596_s10, %s7597_s14  }
  0x43   : > { %p10984_p13 = scmp.ne.s32.totalorder %s10982_s13, 0 }
  0x45   : > { %267 = sbr.rel (%p10984_p13) target bundleno = 1500 (0x5dc), region = 48 }
  0x4c   : > { %p10985_p0 = scmp.eq.s32.totalorder %s7663_s28, 0 }
  0x4e   : > { %7565 = dma.done.wait (%p10985_p0), [#allocation3], 2048   ;;  %p10986_p5 = pmov %p10985_p0 }
  0x4f   : > { %p10987_p6 = pmov %p10985_p0 }
  0x50   : > { %7567 = vsyncadd (%p10986_p5), [#allocation3], 4294965248 }
  0x51   : > { %7569 = dma.done.wait (%p10987_p6), [#allocation6], 32768   ;;  %p10988_p9 = pmov %p10985_p0 }
  0x52   : > { %s6184_s16 = sshll.u32 %s7663_s28, 4  ;;  %v7598_v0 = vmov 0   ;;  %v341_v1 = vld [vmem:[#allocation2] sm:$0xff]  ;;  %v342_v3 = vld [vmem:[#allocation2 + $0x8] sm:$0xff]  ;;  %v343_v16 = vld [vmem:[#allocation2 + $0x10] sm:$0xff]  ;;  %vm513_vm0 = vcmask 261120   ;;  %v361_v57 = vlaneseq }
  0x53   : > { %7571 = vsyncadd (%p10988_p9), [#allocation6], 4294934528  ;;  %570 = vmatprep.mubr.bf16.mxu0 %v7598_v0  ;;  %p304_p12 = scmp.lt.s32.totalorder %s6184_s16, 31  ;;  %683 = vmatprep.mubr.bf16.mxu1 %v7598_v0  ;;  %v345_v2 = vld [vmem:[#allocation2 + $0x20] sm:$0xff]  ;;  %v346_v6 = vld [vmem:[#allocation2 + $0x28] sm:$0xff]  ;;  %s300_s19 = sand.u32 1, %s7582_s25  }
  0x54   : > { %v6187_v4 = vcombine.high %v341_v1, %v345_v2  ;;  %v6186_v5 = vcombine.low %v341_v1, %v345_v2  ;;  %v349_v7 = vld [vmem:[#allocation2 + $0x40] sm:$0xff]  ;;  %v6189_v9 = vcombine.high %v342_v3, %v346_v6  ;;  %v6188_v10 = vcombine.low %v342_v3, %v346_v6  ;;  %v350_v12 = vld [vmem:[#allocation2 + $0x48] sm:$0xff]  ;;  %v347_v17 = vld [vmem:[#allocation2 + $0x30] sm:$0xff]  ;;  %s6183_s18 = sshll.u32 %s300_s19, 7  ;;  %p11361_p1 = scmp.ne.s32.totalorder %s10980_s11, 0 }
  0x55   : > { %s11369_s16 = smov (!%p304_p12, %s6184_s16), 31  ;;  %v353_v8 = vld [vmem:[#allocation2 + $0x60] sm:$0xff]  ;;  %v354_v13 = vld [vmem:[#allocation2 + $0x68] sm:$0xff]  ;;  %v344_v20 = vld [vmem:[#allocation2 + $0x18] sm:$0xff]  ;;  %v6191_v23 = vcombine.high %v343_v16, %v347_v17  ;;  %v6190_v28 = vcombine.low %v343_v16, %v347_v17  ;;  %v7854_v58 = vshrl.u32 %v361_v57, 7  ;;  %s10694_s20 = scalar_lea.vmem [#allocation7], %s6183_s18 }
  0x56   : > { %s6185_s13 = sshll.u32 %s11369_s16, 3  ;;  %v6195_v11 = vcombine.high %v349_v7, %v353_v8  ;;  %538 = vmatprep.subr.bf16.mxu0 %v6187_v4  ;;  %v6197_v14 = vcombine.high %v350_v12, %v354_v13  ;;  %651 = vmatprep.subr.bf16.mxu1 %v6189_v9  ;;  %v6194_v18 = vcombine.low %v349_v7, %v353_v8  ;;  %v348_v21 = vld [vmem:[#allocation2 + $0x38] sm:$0xff]  ;;  %v351_v26 = vld [vmem:[#allocation2 + $0x50] sm:$0xff]  ;;  %v311_v61 = vld [vmem:[%s10780_s2] sm:$0x77]  ;;  %s6091_s22 = sshll.u32 %s10694_s20, 4  ;;  %s10731_s22 = int_to_ptr.vmem [resolvable:$true] %s6091_s22 }
  0x57   : > { %s7768_s21 = scalar_lea.vmem %s10778_s0, %s6185_s13  ;;  %539 = vmatpush1.bf16.msra.mxu0 %v6186_v5  ;;  %652 = vmatpush1.bf16.msra.mxu1 %v6188_v10  ;;  %v6196_v22 = vcombine.low %v350_v12, %v354_v13  ;;  %v6193_v24 = vcombine.high %v344_v20, %v348_v21  ;;  %v355_v27 = vld [vmem:[#allocation2 + $0x70] sm:$0xff]  ;;  %v352_v29 = vld [vmem:[#allocation2 + $0x58] sm:$0xff]  ;;  %v6192_v31 = vcombine.low %v344_v20, %v348_v21  ;;  %v7857_v59 = vsub.s32 0, %v7854_v58  ;;  %s7520_s9 = scalar_lea.vmem %s10731_s22, 2048 }
  0x58   : > { %v317_v15 = vld [vmem:[%s7768_s21] sm:$0xff]  ;;  %v318_v19 = vld [vmem:[%s7768_s21 + $0x8] sm:$0xff]  ;;  %540 = vmatprep.subr.bf16.mxu0 %v6195_v11  ;;  %653 = vmatprep.subr.bf16.mxu1 %v6197_v14  ;;  %v356_v30 = vld [vmem:[#allocation2 + $0x78] sm:$0xff]  ;;  %v6199_v34 = vcombine.high %v351_v26, %v355_v27  ;;  %v6198_v36 = vcombine.low %v351_v26, %v355_v27  ;;  %v7860_v60 = vsub.s32 4, %v7854_v58  ;;  %p7521_p10 = scmp.ne.s32.totalorder %s10731_s22, %s7520_s9  ;;  %s7599_s15 = smov [#allocation7]  }
  0x59   : > { %v7772_v25 = vpack.c.bf16 %v318_v19, %v317_v15  ;;  %v319_v32 = vld [vmem:[%s7768_s21 + $0x10] sm:$0xff]  ;;  %v320_v33 = vld [vmem:[%s7768_s21 + $0x18] sm:$0xff]  ;;  %v6201_v35 = vcombine.high %v352_v29, %v356_v30  ;;  %v6200_v37 = vcombine.low %v352_v29, %v356_v30  ;;  %v321_v39 = vld [vmem:[%s7768_s21 + $0x20] sm:$0xff]  ;;  %10989 = vst [vmem:[#allocation12_spill] sm:$0xff] %v7857_v59  ;;  %v364_v62 = vrot.slane %v311_v61, %v7857_v59  ;;  %s7524_s10 = sshll.u32 %s7599_s15, 4  ;;  %s7525_s10 = int_to_ptr.vmem [resolvable:$false] %s7524_s10 }
  0x5a   : > { %v334_v38 = vpack.c.bf16 %v320_v33, %v319_v32  ;;  %v322_v40 = vld [vmem:[%s7768_s21 + $0x28] sm:$0xff]  ;;  %v323_v42 = vld [vmem:[%s7768_s21 + $0x30] sm:$0xff]  ;;  %v324_v43 = vld [vmem:[%s7768_s21 + $0x38] sm:$0xff]  ;;  %10990 = vst [vmem:[#allocation13_spill] sm:$0xff] %v7860_v60  ;;  %v368_v63 = vrot.slane %v311_v61, %v7860_v60  ;;  %p7522_p2 = pnand %p7521_p10, %p11361_p1  ;;  %s7526_s14 = scalar_lea.vmem %s7525_s10, 4096 }
  0x5b   : > { %541 = vmatpush1.bf16.msra.mxu0 %v6194_v18  ;;  %654 = vmatpush1.bf16.msra.mxu1 %v6196_v22  ;;  %v335_v41 = vpack.c.bf16 %v322_v40, %v321_v39  ;;  %v336_v44 = vpack.c.bf16 %v324_v43, %v323_v42  ;;  %v325_v45 = vld [vmem:[%s7768_s21 + $0x40] sm:$0xff]  ;;  %v326_v46 = vld [vmem:[%s7768_s21 + $0x48] sm:$0xff]  ;;  %v327_v48 = vld [vmem:[%s7768_s21 + $0x50] sm:$0xff]  ;;  %v7871_v1 = vrot.slane %v364_v62, %v7857_v59  ;;  %p7527_p4 = scmp.lt.s32.totalorder %s10731_s22, %s7525_s10  ;;  %p7528_p7 = scmp.lt.s32.totalorder %s7526_s14, %s7520_s9 }
  0x5c   : > { %764 = vmatprep.subr.bf16.mxu0 %v6191_v23  ;;  %877 = vmatprep.subr.bf16.mxu1 %v6193_v24  ;;  %v337_v47 = vpack.c.bf16 %v326_v46, %v325_v45  ;;  %v328_v49 = vld [vmem:[%s7768_s21 + $0x58] sm:$0xff]  ;;  %v329_v51 = vld [vmem:[%s7768_s21 + $0x60] sm:$0xff]  ;;  %v330_v52 = vld [vmem:[%s7768_s21 + $0x68] sm:$0xff]  ;;  %v7874_v3 = vrot.slane %v368_v63, %v7857_v59  ;;  %p7523_p3 = pneg %p7522_p2 }
  0x5d   : > { %v338_v50 = vpack.c.bf16 %v328_v49, %v327_v48  ;;  %v339_v53 = vpack.c.bf16 %v330_v52, %v329_v51  ;;  %v331_v54 = vld [vmem:[%s7768_s21 + $0x70] sm:$0xff]  ;;  %v332_v55 = vld [vmem:[%s7768_s21 + $0x78] sm:$0xff]  ;;  %s6528_s21 = sshll.u32 %s7663_s28, 11  ;;  %s10737_s28 = scalar_lea.sflag [#allocation4], %s300_s19 }
  0x5e   : > { %6202 = vmatmul.mubr.msk.bf16.vlgmr.msra.gmra.mrb[0].mxu0 %vm513_vm0, %v7772_v25  ;;  %6210 = vmatmul.mubr.msk.bf16.vlgmr.msra.gmra.mrb[0].mxu1 %vm513_vm0, %v7772_v25  ;;  %v340_v56 = vpack.c.bf16 %v332_v55, %v331_v54  ;;  %v313_v16 = vld [vmem:[%s10780_s2 + $0x10] sm:$0x77]  ;;  %v7903_v22 = vld [vmem:[%s10780_s2 + $0x18] sm:$0x77]  ;;  %s10729_s8 = scalar_lea.hbm %s10785_s7, %s6528_s21  ;;  %p7529_p8 = por %p7528_p7, %p7527_p4 }
  0x5f   : > { %765 = vmatpush1.bf16.msra.mxu0 %v6190_v28  ;;  %878 = vmatpush1.bf16.msra.mxu1 %v6192_v31  ;;  %v384_v26 = vrot.slane %v313_v16, %v7860_v60  ;;  %v392_v46 = vrot.slane %v7903_v22, %v7860_v60  ;;  %v6982_v48 = vld [vmem:[#allocation5 + $0x4] ss:$16 sps:$4 sm:$0xff]   ;;  %v6983_v49 = vld [vmem:[#allocation5 + $0x8] ss:$16 sps:$4 sm:$0xff]   ;;  %v6985_v54 = vld [vmem:[#allocation5 + $0xc] ss:$16 sps:$4 sm:$0xff]  }
  0x60   : > { %580 = vmatprep.mubr.bf16.mxu0 %v7598_v0  ;;  %693 = vmatprep.mubr.bf16.mxu1 %v7598_v0  ;;  %v6988_v55 = vld [vmem:[#allocation5 + $0x24] ss:$16 sps:$4 sm:$0xff]   ;;  %p7530_p11 = pnand %p7529_p8, %p7523_p3 }
  0x61   : > { %766 = vmatprep.subr.bf16.mxu0 %v6199_v34  ;;  %879 = vmatprep.subr.bf16.mxu1 %v6201_v35  ;;  %v388_v35 = vrot.slane %v7903_v22, %v7857_v59  ;;  %v7936_v42 = vrot.slane %v384_v26, %v7857_v59  ;;  %v7987_v26 = vrot.slane %v392_v46, %v7857_v59 }
  0x63   : > { %767 = vmatpush1.bf16.msra.mxu0 %v6198_v36  ;;  %880 = vmatpush1.bf16.msra.mxu1 %v6200_v37 }
  0x64   : > { %3940 = vmatprep.subr.bf16.mxu0 %v6982_v48  ;;  %4392 = vmatprep.subr.bf16.mxu1 %v6985_v54 }
  0x66   : > { %6203 = vmatmul.mubr.msk.bf16.gmra.mrb[4].mxu0 %vm513_vm0, %v334_v38  ;;  %6211 = vmatmul.mubr.msk.bf16.gmra.mrb[4].mxu1 %vm513_vm0, %v334_v38 }
  0x67   : > { %590 = vmatprep.mubr.bf16.mxu0 %v7598_v0  ;;  %703 = vmatprep.mubr.bf16.mxu1 %v7598_v0 }
  0x6e   : > { %6204 = vmatmul.mubr.msk.bf16.gmra.mrb[8].mxu0 %vm513_vm0, %v335_v41  ;;  %6212 = vmatmul.mubr.msk.bf16.gmra.mrb[8].mxu1 %vm513_vm0, %v335_v41 }
  0x6f   : > { %600 = vmatprep.mubr.bf16.mxu0 %v7598_v0  ;;  %713 = vmatprep.mubr.bf16.mxu1 %v7598_v0 }
  0x76   : > { %6205 = vmatmul.mubr.msk.bf16.gmra.mrb[12].mxu0 %vm513_vm0, %v336_v44  ;;  %6213 = vmatmul.mubr.msk.bf16.gmra.mrb[12].mxu1 %vm513_vm0, %v336_v44 }
  0x77   : > { %610 = vmatprep.mubr.bf16.mxu0 %v7598_v0  ;;  %723 = vmatprep.mubr.bf16.mxu1 %v7598_v0 }
  0x7e   : > { %6206 = vmatmul.mubr.msk.bf16.gmra.mrb[16].mxu0 %vm513_vm0, %v337_v47  ;;  %6214 = vmatmul.mubr.msk.bf16.gmra.mrb[16].mxu1 %vm513_vm0, %v337_v47 }
  0x7f   : > { %620 = vmatprep.mubr.bf16.mxu0 %v7598_v0  ;;  %733 = vmatprep.mubr.bf16.mxu1 %v7598_v0 }
  0x86   : > { %6207 = vmatmul.mubr.msk.bf16.gmra.mrb[20].mxu0 %vm513_vm0, %v338_v50  ;;  %6215 = vmatmul.mubr.msk.bf16.gmra.mrb[20].mxu1 %vm513_vm0, %v338_v50 }
  0x87   : > { %630 = vmatprep.mubr.bf16.mxu0 %v7598_v0  ;;  %743 = vmatprep.mubr.bf16.mxu1 %v7598_v0 }
  0x8e   : > { %6208 = vmatmul.mubr.msk.bf16.gmra.mrb[24].mxu0 %vm513_vm0, %v339_v53  ;;  %6216 = vmatmul.mubr.msk.bf16.gmra.mrb[24].mxu1 %vm513_vm0, %v339_v53 }
  0x8f   : > { %640 = vmatprep.mubr.bf16.mxu0 %v7598_v0  ;;  %753 = vmatprep.mubr.bf16.mxu1 %v7598_v0 }
  0x96   : > { %6209 = vmatmul.mubr.msk.bf16.gmra.mrb[28].mxu0 %vm513_vm0, %v340_v56  ;;  %6217 = vmatmul.mubr.msk.bf16.gmra.mrb[28].mxu1 %vm513_vm0, %v340_v56 }
  0x97   : > { %796 = vmatprep.mubr.bf16.mxu0 %v7598_v0  ;;  %909 = vmatprep.mubr.bf16.mxu1 %v7598_v0 }
  0x9e   : > { %6218 = vmatmul.mubr.msk.bf16.vlgmr.msra.gmra.mrb[32].mxu0 %vm513_vm0, %v7772_v25  ;;  %6226 = vmatmul.mubr.msk.bf16.vlgmr.msra.gmra.mrb[32].mxu1 %vm513_vm0, %v7772_v25  ;;  %v380_v25 = vrot.slane %v313_v16, %v7857_v59 }
  0x9f   : > { %806 = vmatprep.mubr.bf16.mxu0 %v7598_v0  ;;  %919 = vmatprep.mubr.bf16.mxu1 %v7598_v0 }
  0xa0   : > { %4393 = vmatpush1.bf16.msra.mxu1 %v6983_v49  ;;  %v6992_v49 = vld [vmem:[#allocation5 + $0x40] ss:$16 sps:$4 sm:$0xff]  }
  0xa6   : > { %6219 = vmatmul.mubr.msk.bf16.gmra.mrb[36].mxu0 %vm513_vm0, %v334_v38  ;;  %6227 = vmatmul.mubr.msk.bf16.gmra.mrb[36].mxu1 %vm513_vm0, %v334_v38 }
  0xa7   : > { %816 = vmatprep.mubr.bf16.mxu0 %v7598_v0  ;;  %929 = vmatprep.mubr.bf16.mxu1 %v7598_v0 }
  0xae   : > { %6220 = vmatmul.mubr.msk.bf16.gmra.mrb[40].mxu0 %vm513_vm0, %v335_v41  ;;  %6228 = vmatmul.mubr.msk.bf16.gmra.mrb[40].mxu1 %vm513_vm0, %v335_v41  ;;  %v7933_v41 = vrot.slane %v380_v25, %v7857_v59 }
  0xaf   : > { %826 = vmatprep.mubr.bf16.mxu0 %v7598_v0  ;;  %939 = vmatprep.mubr.bf16.mxu1 %v7598_v0 }
  0xb6   : > { %6221 = vmatmul.mubr.msk.bf16.gmra.mrb[44].mxu0 %vm513_vm0, %v336_v44  ;;  %6229 = vmatmul.mubr.msk.bf16.gmra.mrb[44].mxu1 %vm513_vm0, %v336_v44 }
  0xb7   : > { %836 = vmatprep.mubr.bf16.mxu0 %v7598_v0  ;;  %949 = vmatprep.mubr.bf16.mxu1 %v7598_v0 }
  0xbe   : > { %6222 = vmatmul.mubr.msk.bf16.gmra.mrb[48].mxu0 %vm513_vm0, %v337_v47  ;;  %6230 = vmatmul.mubr.msk.bf16.gmra.mrb[48].mxu1 %vm513_vm0, %v337_v47  ;;  %v6980_v47 = vld [vmem:[#allocation5] ss:$16 sps:$4 sm:$0xff]  }
  0xbf   : > { %846 = vmatprep.mubr.bf16.mxu0 %v7598_v0  ;;  %959 = vmatprep.mubr.bf16.mxu1 %v7598_v0 }
  0xc0   : > { %3941 = vmatpush1.bf16.msra.mxu0 %v6980_v47 }
  0xc1   : > { %3942 = vmatprep.subr.bf16.mxu0 %v6988_v55 }
  0xc6   : > { %6223 = vmatmul.mubr.msk.bf16.gmra.mrb[52].mxu0 %vm513_vm0, %v338_v50  ;;  %6231 = vmatmul.mubr.msk.bf16.gmra.mrb[52].mxu1 %vm513_vm0, %v338_v50 }
  0xc7   : > { %856 = vmatprep.mubr.bf16.mxu0 %v7598_v0  ;;  %969 = vmatprep.mubr.bf16.mxu1 %v7598_v0 }
  0xce   : > { %6224 = vmatmul.mubr.msk.bf16.gmra.mrb[56].mxu0 %vm513_vm0, %v339_v53  ;;  %6232 = vmatmul.mubr.msk.bf16.gmra.mrb[56].mxu1 %vm513_vm0, %v339_v53  ;;  %v7954_v53 = vrot.slane %v388_v35, %v7857_v59 }
  0xcf   : > { %866 = vmatprep.mubr.bf16.mxu0 %v7598_v0  ;;  %979 = vmatprep.mubr.bf16.mxu1 %v7598_v0  ;;  %v312_v0 = vld [vmem:[%s10780_s2 + $0x8] sm:$0x77] }
  0xd0   : > { %v372_v4 = vrot.slane %v312_v0, %v7857_v59  ;;  %v376_v10 = vrot.slane %v312_v0, %v7860_v60  ;;  %v6991_v0 = vld [vmem:[#allocation5 + $0x2c] ss:$16 sps:$4 sm:$0xff]  }
  0xd1   : > { %4394 = vmatprep.subr.bf16.mxu1 %v6991_v0 }
  0xd2   : > { %v7885_v14 = vrot.slane %v372_v4, %v7857_v59  ;;  %v7891_v17 = vrot.slane %v376_v10, %v7857_v59  ;;  %v7009_v59 = vld [vmem:[#allocation5 + $0x8c] ss:$16 sps:$4 sm:$0xff]  }
  0xd6   : > { %6225 = vmatmul.mubr.msk.bf16.gmra.mrb[60].mxu0 %vm513_vm0, %v340_v56  ;;  %6233 = vmatmul.mubr.msk.bf16.gmra.mrb[60].mxu1 %vm513_vm0, %v340_v56 }
 0x131   : > { %v572_v2 = vpop.f32.mrb[0].mxu0  ;;  %v685_v6 = vpop.f32.mrb[0].mxu1 }
 0x132   : > { %v574_v5 = vpop.f32.mrb[1].mxu0  ;;  %v687_v8 = vpop.f32.mrb[1].mxu1  ;;  %v7879_v12 = vadd.f32 %v572_v2, %v7871_v1  ;;  %v7898_v20 = vadd.f32 %v685_v6, %v7885_v14 }
 0x133   : > { %v576_v7 = vpop.f32.mrb[2].mxu0  ;;  %v689_v11 = vpop.f32.mrb[2].mxu1  ;;  %v7882_v13 = vadd.f32 %v574_v5, %v7874_v3  ;;  %v7918_v32 = vadd.f32 %v687_v8, %v7891_v17  ;;  %v6986_v8 = vld [vmem:[#allocation5 + $0x20] ss:$16 sps:$4 sm:$0xff]  }
 0x134   : > { %v578_v9 = vpop.f32.mrb[3].mxu0  ;;  %v691_v15 = vpop.f32.mrb[3].mxu1  ;;  %v1134_v18 = vmul.f32 %v7879_v12, %v7879_v12  ;;  %10991 = vst [vmem:[#allocation14_spill] sm:$0xff] %v7898_v20  ;;  %v7908_v27 = vadd.f32 %v576_v7, %v7871_v1  ;;  %v1136_v37 = vmul.f32 %v7898_v20, %v7898_v20  ;;  %v7943_v45 = vadd.f32 %v689_v11, %v7885_v14 }
 0x135   : > { %v1135_v19 = vmul.f32 %v7882_v13, %v7882_v13  ;;  %v7911_v28 = vadd.f32 %v578_v9, %v7874_v3  ;;  %v990_v31 = vadd.f32 %v7882_v13, %v7879_v12  ;;  %10994 = vst [vmem:[#allocation17_spill] sm:$0xff] %v7918_v32  ;;  %v1137_v51 = vmul.f32 %v7918_v32, %v7918_v32 }
 0x136   : > { %10992 = vst [vmem:[#allocation15_spill] sm:$0xff] %v7908_v27  ;;  %v1142_v43 = vmul.f32 %v7908_v27, %v7908_v27  ;;  %10997 = vst [vmem:[#allocation20_spill] sm:$0xff] %v7943_v45  ;;  %v7951_v52 = vadd.f32 %v691_v15, %v7891_v17  ;;  %v1144_v10 = vmul.f32 %v7943_v45, %v7943_v45  ;;  %3943 = vmatpush1.bf16.msra.mxu0 %v6986_v8 }
 0x137   : > { %10993 = vst [vmem:[#allocation16_spill] sm:$0xff] %v7911_v28  ;;  %v1262_v36 = vadd.f32 %v1135_v19, %v1134_v18  ;;  %v1143_v44 = vmul.f32 %v7911_v28, %v7911_v28  ;;  %v991_v50 = vadd.f32 %v990_v31, %v7898_v20  ;;  %v999_v57 = vadd.f32 %v7911_v28, %v7908_v27  ;;  %v6989_v19 = vld [vmem:[#allocation5 + $0x28] ss:$16 sps:$4 sm:$0xff]   ;;  %v6997_v31 = vld [vmem:[#allocation5 + $0x4c] ss:$16 sps:$4 sm:$0xff]  }
 0x138   : > { %10998 = vst [vmem:[#allocation21_spill] sm:$0xff] %v7951_v52  ;;  %v1145_v22 = vmul.f32 %v7951_v52, %v7951_v52  ;;  %4395 = vmatpush1.bf16.msra.mxu1 %v6989_v19 }
 0x139   : > { %v582_v21 = vpop.f32.mrb[4].mxu0  ;;  %v695_v24 = vpop.f32.mrb[4].mxu1  ;;  %v1263_v56 = vadd.f32 %v1262_v36, %v1136_v37  ;;  %v1271_v9 = vadd.f32 %v1143_v44, %v1142_v43  ;;  %4396 = vmatprep.subr.bf16.mxu1 %v6997_v31 }
 0x13a   : > { %v584_v23 = vpop.f32.mrb[5].mxu0  ;;  %v7913_v30 = vpop.f32.mrb[5].mxu1  ;;  %v7927_v39 = vadd.f32 %v582_v21, %v7871_v1  ;;  %v7969_v5 = vadd.f32 %v695_v24, %v7885_v14  ;;  %v7979_v21 = vadd.f32 %v991_v50, %v7918_v32 }
 0x13b   : > { %v586_v29 = vpop.f32.mrb[6].mxu0  ;;  %v699_v34 = vpop.f32.mrb[6].mxu1  ;;  %v7930_v40 = vadd.f32 %v584_v23, %v7874_v3  ;;  %v7999_v44 = vadd.f32 %v1263_v56, %v1137_v51  ;;  %v8005_v48 = vadd.f32 %v7913_v30, %v7891_v17  ;;  %v1272_v50 = vadd.f32 %v1271_v9, %v1144_v10  ;;  %v6995_v51 = vld [vmem:[#allocation5 + $0x48] ss:$16 sps:$4 sm:$0xff]   ;;  %v7003_v9 = vld [vmem:[#allocation5 + $0x6c] ss:$16 sps:$4 sm:$0xff]  }
 0x13c   : > { %v588_v33 = vpop.f32.mrb[7].mxu0  ;;  %v7924_v38 = vpop.f32.mrb[7].mxu1  ;;  %10995 = vst [vmem:[#allocation18_spill] sm:$0xff] %v7927_v39  ;;  %v7959_v61 = vadd.f32 %v586_v29, %v7871_v1  ;;  %v1150_v2 = vmul.f32 %v7927_v39, %v7927_v39  ;;  %11001 = vst [vmem:[#allocation24_spill] sm:$0xff] %v7969_v5  ;;  %v6994_v29 = vld [vmem:[#allocation5 + $0x44] ss:$16 sps:$4 sm:$0xff]   ;;  %v7995_v37 = vadd.f32 %v699_v34, %v7885_v14  ;;  %4397 = vmatpush1.bf16.msra.mxu1 %v6995_v51 }
 0x13d   : > { %10996 = vst [vmem:[#allocation19_spill] sm:$0xff] %v7930_v40  ;;  %v7962_v62 = vadd.f32 %v588_v33, %v7874_v3  ;;  %v1151_v4 = vmul.f32 %v7930_v40, %v7930_v40  ;;  %v1008_v11 = vadd.f32 %v7930_v40, %v7927_v39  ;;  %v1000_v33 = vadd.f32 %v999_v57, %v7943_v45 }
 0x13e   : > { %10999 = vst [vmem:[#allocation22_spill] sm:$0xff] %v7959_v61  ;;  %v1158_v35 = vmul.f32 %v7959_v61, %v7959_v61  ;;  %11004 = vst [vmem:[#allocation27_spill] sm:$0xff] %v7995_v37  ;;  %v1152_v47 = vmul.f32 %v7969_v5, %v7969_v5  ;;  %3944 = vmatprep.subr.bf16.mxu0 %v6994_v29  ;;  %v6998_v29 = vld [vmem:[#allocation5 + $0x60] ss:$16 sps:$4 sm:$0xff]   ;;  %v8036_v31 = vadd.f32 %v1272_v50, %v1145_v22 }
 0x13f   : > { %11000 = vst [vmem:[#allocation23_spill] sm:$0xff] %v7962_v62  ;;  %v1159_v36 = vmul.f32 %v7962_v62, %v7962_v62  ;;  %v1280_v46 = vadd.f32 %v1151_v4, %v1150_v2  ;;  %11005 = vst [vmem:[#allocation28_spill] sm:$0xff] %v8005_v48  ;;  %v1009_v54 = vadd.f32 %v1008_v11, %v7969_v5  ;;  %3945 = vmatpush1.bf16.msra.mxu0 %v6992_v49 }
 0x140   : > { %v1017_v0 = vadd.f32 %v7962_v62, %v7959_v61  ;;  %v1160_v4 = vmul.f32 %v7995_v37, %v7995_v37  ;;  %v1153_v11 = vmul.f32 %v8005_v48, %v8005_v48  ;;  %4398 = vmatprep.subr.bf16.mxu1 %v7003_v9 }
 0x141   : > { %v592_v63 = vpop.f32.mrb[8].mxu0  ;;  %v705_v7 = vpop.f32.mrb[8].mxu1  ;;  %v1289_v2 = vadd.f32 %v1159_v36, %v1158_v35  ;;  %v1281_v10 = vadd.f32 %v1280_v46, %v1152_v47  ;;  %v8039_v35 = vadd.f32 %v1009_v54, %v8005_v48 }
 0x142   : > { %v594_v6 = vpop.f32.mrb[9].mxu0  ;;  %v7976_v15 = vadd.f32 %v592_v63, %v7871_v1  ;;  %v707_v18 = vpop.f32.mrb[9].mxu1  ;;  %v8016_v57 = vadd.f32 %v705_v7, %v7885_v14  ;;  %v7000_v63 = vld [vmem:[#allocation5 + $0x64] ss:$16 sps:$4 sm:$0xff]   ;;  %v8028_v7 = vadd.f32 %v1000_v33, %v7951_v52  ;;  %v1018_v5 = vadd.f32 %v1017_v0, %v7995_v37  ;;  %v7004_v0 = vld [vmem:[#allocation5 + $0x80] ss:$16 sps:$4 sm:$0xff]  }
 0x143   : > { %v596_v16 = vpop.f32.mrb[10].mxu0  ;;  %v7984_v23 = vadd.f32 %v594_v6, %v7874_v3  ;;  %v709_v25 = vpop.f32.mrb[10].mxu1  ;;  %v8042_v33 = vadd.f32 %v707_v18, %v7891_v17  ;;  %3946 = vmatprep.subr.bf16.mxu0 %v7000_v63  ;;  %v1290_v48 = vadd.f32 %v1289_v2, %v1160_v4  ;;  %v8061_v20 = vadd.f32 %v1281_v10, %v1153_v11 }
 0x144   : > { %11002 = vst [vmem:[#allocation25_spill] sm:$0xff] %v7976_v15  ;;  %v598_v24 = vpop.f32.mrb[11].mxu0  ;;  %v7997_v43 = vpop.f32.mrb[11].mxu1  ;;  %v1166_v34 = vmul.f32 %v7976_v15, %v7976_v15  ;;  %v8011_v55 = vadd.f32 %v596_v16, %v7871_v1  ;;  %11007 = vst [vmem:[#allocation30_spill] sm:$0xff] %v8016_v57  ;;  %v8034_v16 = vadd.f32 %v7924_v38, %v7891_v17  ;;  %v7001_v38 = vld [vmem:[#allocation5 + $0x68] ss:$16 sps:$4 sm:$0xff]   ;;  %3947 = vmatpush1.bf16.msra.mxu0 %v6998_v29 }
 0x145   : > { %11003 = vst [vmem:[#allocation26_spill] sm:$0xff] %v7984_v23  ;;  %v1167_v56 = vmul.f32 %v7984_v23, %v7984_v23  ;;  %v8019_v30 = vadd.f32 %v598_v24, %v7874_v3  ;;  %v1026_v6 = vadd.f32 %v7984_v23, %v7976_v15  ;;  %11010 = vst [vmem:[#allocation33_spill] sm:$0xff] %v8042_v33  ;;  %4399 = vmatpush1.bf16.msra.mxu1 %v7001_v38  ;;  %v7012_v29 = vld [vmem:[#allocation5 + $0xa4] ss:$16 sps:$4 sm:$0xff]   ;;  %v7021_v15 = vld [vmem:[#allocation5 + $0xcc] ss:$16 sps:$4 sm:$0xff]  }
 0x146   : > { %11006 = vst [vmem:[#allocation29_spill] sm:$0xff] %v8011_v55  ;;  %11009 = vst [vmem:[#allocation32_spill] sm:$0xff] %v8034_v16  ;;  %v8045_v36 = vadd.f32 %v709_v25, %v7885_v14  ;;  %v1174_v49 = vmul.f32 %v8011_v55, %v8011_v55  ;;  %v1168_v22 = vmul.f32 %v8016_v57, %v8016_v57  ;;  %v7006_v25 = vld [vmem:[#allocation5 + $0x84] ss:$16 sps:$4 sm:$0xff]   ;;  %4400 = vmatprep.subr.bf16.mxu1 %v7009_v59 }
 0x147   : > { %11008 = vst [vmem:[#allocation31_spill] sm:$0xff] %v8019_v30  ;;  %v1298_v60 = vadd.f32 %v1167_v56, %v1166_v34  ;;  %v1175_v50 = vmul.f32 %v8019_v30, %v8019_v30  ;;  %v1027_v51 = vadd.f32 %v1026_v6, %v8016_v57  ;;  %v1035_v34 = vadd.f32 %v8019_v30, %v8011_v55 }
 0x148   : > { %11011 = vst [vmem:[#allocation34_spill] sm:$0xff] %v8045_v36  ;;  %v1161_v45 = vmul.f32 %v8034_v16, %v8034_v16  ;;  %v1169_v2 = vmul.f32 %v8042_v33, %v8042_v33  ;;  %v1176_v4 = vmul.f32 %v8045_v36, %v8045_v36  ;;  %3948 = vmatprep.subr.bf16.mxu0 %v7006_v25 }
 0x149   : > { %v602_v8 = vpop.f32.mrb[12].mxu0  ;;  %v715_v24 = vpop.f32.mrb[12].mxu1  ;;  %v1299_v10 = vadd.f32 %v1298_v60, %v1168_v22  ;;  %v1307_v11 = vadd.f32 %v1175_v50, %v1174_v49  ;;  %v8086_v57 = vadd.f32 %v1018_v5, %v8034_v16  ;;  %v1036_v38 = vadd.f32 %v1035_v34, %v8045_v36  ;;  %v7015_v60 = vld [vmem:[#allocation5 + $0xac] ss:$16 sps:$4 sm:$0xff]   ;;  %3949 = vmatpush1.bf16.msra.mxu0 %v7004_v0  ;;  %v7010_v22 = vld [vmem:[#allocation5 + $0xa0] ss:$16 sps:$4 sm:$0xff]  }
 0x14a   : > { %v604_v19 = vpop.f32.mrb[13].mxu0  ;;  %v8047_v47 = vpop.f32.mrb[13].mxu1  ;;  %v8066_v63 = vadd.f32 %v602_v8, %v7871_v1  ;;  %v7007_v8 = vld [vmem:[#allocation5 + $0x88] ss:$16 sps:$4 sm:$0xff]   ;;  %v8088_v37 = vadd.f32 %v1290_v48, %v1161_v45  ;;  %v8099_v59 = vadd.f32 %v715_v24, %v7885_v14  ;;  %3950 = vmatprep.subr.bf16.mxu0 %v7012_v29 }
 0x14b   : > { %v606_v46 = vpop.f32.mrb[14].mxu0  ;;  %v719_v54 = vpop.f32.mrb[14].mxu1  ;;  %v8069_v32 = vadd.f32 %v604_v19, %v7874_v3  ;;  %v8083_v19 = vadd.f32 %v7997_v43, %v7891_v17  ;;  %4401 = vmatpush1.bf16.msra.mxu1 %v7007_v8  ;;  %v1308_v0 = vadd.f32 %v1307_v11, %v1176_v4  ;;  %v8140_v23 = vadd.f32 %v8047_v47, %v7891_v17 }
 0x14c   : > { %v608_v18 = vpop.f32.mrb[15].mxu0  ;;  %v8059_v56 = vpop.f32.mrb[15].mxu1  ;;  %11012 = vst [vmem:[#allocation35_spill] sm:$0xff] %v8066_v63  ;;  %v8076_v6 = vadd.f32 %v606_v46, %v7871_v1  ;;  %v8091_v46 = vadd.f32 %v1027_v51, %v8042_v33  ;;  %v1182_v49 = vmul.f32 %v8066_v63, %v8066_v63  ;;  %11017 = vst [vmem:[#allocation40_spill] sm:$0xff] %v8099_v59  ;;  %4402 = vmatprep.subr.bf16.mxu1 %v7015_v60 }
 0x14d   : > { %11013 = vst [vmem:[#allocation36_spill] sm:$0xff] %v8069_v32  ;;  %v8079_v9 = vadd.f32 %v608_v18, %v7874_v3  ;;  %11016 = vst [vmem:[#allocation39_spill] sm:$0xff] %v8083_v19  ;;  %v1183_v43 = vmul.f32 %v8069_v32, %v8069_v32  ;;  %v8109_v51 = vadd.f32 %v719_v54, %v7885_v14  ;;  %v7018_v54 = vld [vmem:[#allocation5 + $0xc4] ss:$16 sps:$4 sm:$0xff]   ;;  %3951 = vmatpush1.bf16.msra.mxu0 %v7010_v22 }
 0x14e   : > { %11014 = vst [vmem:[#allocation37_spill] sm:$0xff] %v8076_v6  ;;  %v1190_v50 = vmul.f32 %v8076_v6, %v8076_v6  ;;  %v8114_v33 = vadd.f32 %v1299_v10, %v1169_v2  ;;  %v1177_v16 = vmul.f32 %v8083_v19, %v8083_v19  ;;  %v8132_v11 = vadd.f32 %v1036_v38, %v8083_v19  ;;  %v7019_v19 = vld [vmem:[#allocation5 + $0xc8] ss:$16 sps:$4 sm:$0xff]  }
 0x14f   : > { %11015 = vst [vmem:[#allocation38_spill] sm:$0xff] %v8079_v9  ;;  %v1191_v25 = vmul.f32 %v8079_v9, %v8079_v9  ;;  %11019 = vst [vmem:[#allocation42_spill] sm:$0xff] %v8109_v51  ;;  %v1044_v29 = vadd.f32 %v8069_v32, %v8066_v63  ;;  %v1316_v61 = vadd.f32 %v1183_v43, %v1182_v49  ;;  %3952 = vmatprep.subr.bf16.mxu0 %v7018_v54 }
 0x150   : > { %11024 = vst [vmem:[#allocation47_spill] sm:$0xff] %v8140_v23  ;;  %v1192_v38 = vmul.f32 %v8109_v51, %v8109_v51 }
 0x151   : > { %v612_v18 = vpop.f32.mrb[16].mxu0  ;;  %v725_v48 = vpop.f32.mrb[16].mxu1  ;;  %v1325_v60 = vadd.f32 %v1191_v25, %v1190_v50 }
 0x152   : > { %v8102_v5 = vadd.f32 %v612_v18, %v7871_v1  ;;  %v614_v45 = vpop.f32.mrb[17].mxu0  ;;  %v727_v36 = vpop.f32.mrb[17].mxu1  ;;  %v7013_v18 = vld [vmem:[#allocation5 + $0xa8] ss:$16 sps:$4 sm:$0xff]   ;;  %v8126_v2 = vadd.f32 %v725_v48, %v7885_v14  ;;  %v7016_v48 = vld [vmem:[#allocation5 + $0xc0] ss:$16 sps:$4 sm:$0xff]  }
 0x153   : > { %v8112_v34 = vadd.f32 %v614_v45, %v7874_v3  ;;  %v616_v24 = vpop.f32.mrb[18].mxu0  ;;  %v729_v30 = vpop.f32.mrb[18].mxu1  ;;  %4403 = vmatpush1.bf16.msra.mxu1 %v7013_v18  ;;  %v8151_v47 = vadd.f32 %v727_v36, %v7891_v17  ;;  %v8160_v18 = vadd.f32 %v1308_v0, %v1177_v16  ;;  %v1185_v36 = vmul.f32 %v8140_v23, %v8140_v23 }
 0x154   : > { %11018 = vst [vmem:[#allocation41_spill] sm:$0xff] %v8102_v5  ;;  %v8119_v52 = vadd.f32 %v616_v24, %v7871_v1  ;;  %v618_v55 = vpop.f32.mrb[19].mxu0  ;;  %v1198_v45 = vmul.f32 %v8102_v5, %v8102_v5  ;;  %11022 = vst [vmem:[#allocation45_spill] sm:$0xff] %v8126_v2  ;;  %v731_v10 = vpop.f32.mrb[19].mxu1  ;;  %v1184_v24 = vmul.f32 %v8099_v59, %v8099_v59  ;;  %4404 = vmatprep.subr.bf16.mxu1 %v7021_v15 }
 0x155   : > { %11020 = vst [vmem:[#allocation43_spill] sm:$0xff] %v8112_v34  ;;  %v1199_v8 = vmul.f32 %v8112_v34, %v8112_v34  ;;  %v8129_v4 = vadd.f32 %v618_v55, %v7874_v3  ;;  %v1053_v55 = vadd.f32 %v8079_v9, %v8076_v6  ;;  %v1062_v63 = vadd.f32 %v8112_v34, %v8102_v5 }
 0x156   : > { %11021 = vst [vmem:[#allocation44_spill] sm:$0xff] %v8119_v52  ;;  %v1206_v32 = vmul.f32 %v8119_v52, %v8119_v52  ;;  %11025 = vst [vmem:[#allocation48_spill] sm:$0xff] %v8151_v47  ;;  %v1200_v43 = vmul.f32 %v8126_v2, %v8126_v2  ;;  %v8158_v50 = vadd.f32 %v729_v30, %v7885_v14  ;;  %3953 = vmatpush1.bf16.msra.mxu0 %v7016_v48 }
 0x157   : > { %11023 = vst [vmem:[#allocation46_spill] sm:$0xff] %v8129_v4  ;;  %v1334_v49 = vadd.f32 %v1199_v8, %v1198_v45  ;;  %v1207_v22 = vmul.f32 %v8129_v4, %v8129_v4  ;;  %v1045_v5 = vadd.f32 %v1044_v29, %v8099_v59  ;;  %v8167_v15 = vadd.f32 %v8059_v56, %v7891_v17 }
 0x158   : > { %11026 = vst [vmem:[#allocation49_spill] sm:$0xff] %v8158_v50  ;;  %v1317_v8 = vadd.f32 %v1316_v61, %v1184_v24  ;;  %v1054_v34 = vadd.f32 %v1053_v55, %v8109_v51  ;;  %4405 = vmatpush1.bf16.msra.mxu1 %v7019_v19  ;;  %v1326_v59 = vadd.f32 %v1325_v60, %v1192_v38 }
 0x159   : > { %v622_v25 = vpop.f32.mrb[20].mxu0  ;;  %11027 = vst [vmem:[#allocation50_spill] sm:$0xff] %v8167_v15  ;;  %v735_v45 = vpop.f32.mrb[20].mxu1  ;;  %v1063_v6 = vadd.f32 %v1062_v63, %v8126_v2  ;;  %v1071_v56 = vadd.f32 %v8129_v4, %v8119_v52  ;;  %v1201_v61 = vmul.f32 %v8151_v47, %v8151_v47  ;;  %v1335_v55 = vadd.f32 %v1334_v49, %v1200_v43 }
 0x15a   : > { %v624_v54 = vpop.f32.mrb[21].mxu0  ;;  %v8171_v30 = vadd.f32 %v622_v25, %v7871_v1  ;;  %v737_v29 = vpop.f32.mrb[21].mxu1  ;;  %v1343_v25 = vadd.f32 %v1207_v22, %v1206_v32  ;;  %v8184_v51 = vadd.f32 %v731_v10, %v7891_v17  ;;  %v8187_v60 = vadd.f32 %v1045_v5, %v8140_v23 }
 0x15b   : > { %v8174_v16 = vadd.f32 %v624_v54, %v7874_v3  ;;  %v626_v0 = vpop.f32.mrb[22].mxu0  ;;  %v739_v48 = vpop.f32.mrb[22].mxu1  ;;  %v1208_v54 = vmul.f32 %v8158_v50, %v8158_v50  ;;  %v1193_v63 = vmul.f32 %v8167_v15, %v8167_v15  ;;  %v8197_v32 = vadd.f32 %v1317_v8, %v1185_v36 }
 0x15c   : > { %11028 = vst [vmem:[#allocation51_spill] sm:$0xff] %v8171_v30  ;;  %v628_v24 = vpop.f32.mrb[23].mxu0  ;;  %11030 = vst [vmem:[#allocation53_spill] sm:$0xff] %v8184_v51  ;;  %v741_v19 = vpop.f32.mrb[23].mxu1  ;;  %v8192_v38 = vadd.f32 %v626_v0, %v7871_v1  ;;  %v1214_v49 = vmul.f32 %v8171_v30, %v8171_v30  ;;  %v8204_v5 = vadd.f32 %v735_v45, %v7885_v14 }
 0x15d   : > { %11029 = vst [vmem:[#allocation52_spill] sm:$0xff] %v8174_v16  ;;  %v8195_v2 = vadd.f32 %v628_v24, %v7874_v3  ;;  %v1215_v10 = vmul.f32 %v8174_v16, %v8174_v16  ;;  %v8207_v43 = vadd.f32 %v1054_v34, %v8167_v15  ;;  %v8209_v22 = vadd.f32 %v1326_v59, %v1193_v63 }
 0x15e   : > { %11031 = vst [vmem:[#allocation54_spill] sm:$0xff] %v8192_v38  ;;  %11033 = vst [vmem:[#allocation56_spill] sm:$0xff] %v8204_v5  ;;  %v8212_v0 = vadd.f32 %v1063_v6, %v8151_v47  ;;  %v1080_v36 = vadd.f32 %v8174_v16, %v8171_v30  ;;  %v8216_v8 = vadd.f32 %v1335_v55, %v1201_v61 }
 0x15f   : > { %11032 = vst [vmem:[#allocation55_spill] sm:$0xff] %v8195_v2  ;;  %v1072_v24 = vadd.f32 %v1071_v56, %v8158_v50  ;;  %v1344_v23 = vadd.f32 %v1343_v25, %v1208_v54  ;;  %v1209_v45 = vmul.f32 %v8184_v51, %v8184_v51  ;;  %v1222_v34 = vmul.f32 %v8192_v38, %v8192_v38 }
 0x160   : > { %v1223_v59 = vmul.f32 %v8195_v2, %v8195_v2  ;;  %v8226_v6 = vadd.f32 %v739_v48, %v7885_v14  ;;  %v1352_v56 = vadd.f32 %v1215_v10, %v1214_v49  ;;  %v1216_v25 = vmul.f32 %v8204_v5, %v8204_v5 }
 0x161   : > { %v632_v52 = vpop.f32.mrb[24].mxu0  ;;  %v745_v55 = vpop.f32.mrb[24].mxu1  ;;  %v8234_v54 = vadd.f32 %v737_v29, %v7891_v17  ;;  %v1081_v48 = vadd.f32 %v1080_v36, %v8204_v5  ;;  %v8243_v30 = vadd.f32 %v741_v19, %v7891_v17  ;;  %v8259_v19 = vadd.f32 %v1072_v24, %v8184_v51 }
 0x162   : > { %11034 = vst [vmem:[#allocation57_spill] sm:$0xff] %v8226_v6  ;;  %v8229_v63 = vadd.f32 %v632_v52, %v7871_v1  ;;  %v634_v61 = vpop.f32.mrb[25].mxu0  ;;  %v747_v15 = vpop.f32.mrb[25].mxu1  ;;  %v1089_v52 = vadd.f32 %v8195_v2, %v8192_v38  ;;  %v8253_v4 = vadd.f32 %v745_v55, %v7885_v14  ;;  %v1224_v38 = vmul.f32 %v8226_v6, %v8226_v6 }
 0x163   : > { %11036 = vst [vmem:[#allocation59_spill] sm:$0xff] %v8234_v54  ;;  %v8237_v50 = vadd.f32 %v634_v61, %v7874_v3  ;;  %v636_v47 = vpop.f32.mrb[26].mxu0  ;;  %11038 = vst [vmem:[#allocation61_spill] sm:$0xff] %v8243_v30  ;;  %v749_v16 = vpop.f32.mrb[26].mxu1  ;;  %v8264_v2 = vadd.f32 %v747_v15, %v7891_v17  ;;  %v8266_v9 = vadd.f32 %v1344_v23, %v1209_v45 }
 0x164   : > { %11035 = vst [vmem:[#allocation58_spill] sm:$0xff] %v8229_v63  ;;  %v8246_v49 = vadd.f32 %v636_v47, %v7871_v1  ;;  %v638_v10 = vpop.f32.mrb[27].mxu0  ;;  %v1230_v29 = vmul.f32 %v8229_v63, %v8229_v63  ;;  %11040 = vst [vmem:[#allocation63_spill] sm:$0xff] %v8253_v4  ;;  %v751_v5 = vpop.f32.mrb[27].mxu1  ;;  %v1361_v47 = vadd.f32 %v1223_v59, %v1222_v34 }
 0x165   : > { %11037 = vst [vmem:[#allocation60_spill] sm:$0xff] %v8237_v50  ;;  %v1231_v61 = vmul.f32 %v8237_v50, %v8237_v50  ;;  %v8256_v36 = vadd.f32 %v638_v10, %v7874_v3  ;;  %11042 = vst [vmem:[#allocation65_spill] sm:$0xff] %v8264_v2  ;;  %v1217_v55 = vmul.f32 %v8234_v54, %v8234_v54 }
 0x166   : > { %11039 = vst [vmem:[#allocation62_spill] sm:$0xff] %v8246_v49  ;;  %v1098_v10 = vadd.f32 %v8237_v50, %v8229_v63  ;;  %v8273_v39 = vadd.f32 %v749_v16, %v7885_v14  ;;  %v1353_v24 = vadd.f32 %v1352_v56, %v1216_v25  ;;  %v8276_v34 = vadd.f32 %v1081_v48, %v8234_v54 }
 0x167   : > { %11041 = vst [vmem:[#allocation64_spill] sm:$0xff] %v8256_v36  ;;  %v1238_v59 = vmul.f32 %v8246_v49, %v8246_v49  ;;  %v1239_v23 = vmul.f32 %v8256_v36, %v8256_v36  ;;  %v1090_v15 = vadd.f32 %v1089_v52, %v8226_v6  ;;  %v1225_v45 = vmul.f32 %v8243_v30, %v8243_v30 }
 0x168   : > { %11043 = vst [vmem:[#allocation66_spill] sm:$0xff] %v8273_v39  ;;  %v1370_v51 = vadd.f32 %v1231_v61, %v1230_v29  ;;  %v1232_v16 = vmul.f32 %v8253_v4, %v8253_v4  ;;  %v1362_v56 = vadd.f32 %v1361_v47, %v1224_v38  ;;  %v1107_v25 = vadd.f32 %v8256_v36, %v8246_v49 }
 0x169   : > { %v642_v63 = vpop.f32.mrb[28].mxu0  ;;  %v1233_v48 = vmul.f32 %v8264_v2, %v8264_v2  ;;  %v755_v52 = vpop.f32.mrb[28].mxu1  ;;  %v1099_v6 = vadd.f32 %v1098_v10, %v8253_v4  ;;  %v1240_v29 = vmul.f32 %v8273_v39, %v8273_v39  ;;  %v8298_v61 = vadd.f32 %v751_v5, %v7891_v17 }
 0x16a   : > { %v8292_v54 = vadd.f32 %v642_v63, %v7871_v1  ;;  %v644_v50 = vpop.f32.mrb[29].mxu0  ;;  %v757_v49 = vpop.f32.mrb[29].mxu1  ;;  %v1379_v36 = vadd.f32 %v1239_v23, %v1238_v59  ;;  %v8309_v10 = vadd.f32 %v755_v52, %v7885_v14  ;;  %v1371_v27 = vadd.f32 %v1370_v51, %v1232_v16 }
 0x16b   : > { %11045 = vst [vmem:[#allocation68_spill] sm:$0xff] %v8298_v61  ;;  %v8301_v38 = vadd.f32 %v644_v50, %v7874_v3  ;;  %v646_v47 = vpop.f32.mrb[30].mxu0  ;;  %v759_v40 = vpop.f32.mrb[30].mxu1  ;;  %v8318_v28 = vadd.f32 %v1353_v24, %v1217_v55  ;;  %v8322_v52 = vadd.f32 %v757_v49, %v7891_v17  ;;  %v8336_v55 = vadd.f32 %v1362_v56, %v1225_v45 }
 0x16c   : > { %11044 = vst [vmem:[#allocation67_spill] sm:$0xff] %v8292_v54  ;;  %v1246_v63 = vmul.f32 %v8292_v54, %v8292_v54  ;;  %v8306_v62 = vadd.f32 %v646_v47, %v7871_v1  ;;  %11047 = vst [vmem:[#allocation70_spill] sm:$0xff] %v8309_v10  ;;  %v648_v4 = vpop.f32.mrb[31].mxu0  ;;  %v761_v23 = vpop.f32.mrb[31].mxu1  ;;  %v1108_v1 = vadd.f32 %v1107_v25, %v8273_v39 }
 0x16d   : > { %v1116_v5 = vadd.f32 %v8301_v38, %v8292_v54  ;;  %v1247_v50 = vmul.f32 %v8301_v38, %v8301_v38  ;;  %v8316_v59 = vadd.f32 %v648_v4, %v7874_v3  ;;  %11049 = vst [vmem:[#allocation72_spill] sm:$0xff] %v8322_v52  ;;  %v8325_v47 = vadd.f32 %v759_v40, %v7885_v14 }
 0x16e   : > { %11046 = vst [vmem:[#allocation69_spill] sm:$0xff] %v8306_v62  ;;  %v1254_v16 = vmul.f32 %v8306_v62, %v8306_v62  ;;  %v1248_v54 = vmul.f32 %v8309_v10, %v8309_v10  ;;  %v8334_v4 = vadd.f32 %v1090_v15, %v8243_v30  ;;  %v8339_v49 = vadd.f32 %v1099_v6, %v8264_v2 }
 0x16f   : > { %11048 = vst [vmem:[#allocation71_spill] sm:$0xff] %v8316_v59  ;;  %11050 = vst [vmem:[#allocation73_spill] sm:$0xff] %v8325_v47  ;;  %v1388_v51 = vadd.f32 %v1247_v50, %v1246_v63  ;;  %v1255_v3 = vmul.f32 %v8316_v59, %v8316_v59  ;;  %v1380_v14 = vadd.f32 %v1379_v36, %v1240_v29 }
 0x170   : > { %v8341_v40 = vadd.f32 %v1371_v27, %v1233_v48  ;;  %v1241_v24 = vmul.f32 %v8298_v61, %v8298_v61  ;;  %v1117_v25 = vadd.f32 %v1116_v5, %v8309_v10  ;;  %v1125_v63 = vadd.f32 %v8316_v59, %v8306_v62 }
 0x171   : > { %v798_v50 = vpop.f32.mrb[32].mxu0  ;;  %v8349_v15 = vadd.f32 %v1108_v1, %v8298_v61  ;;  %v1249_v45 = vmul.f32 %v8322_v52, %v8322_v52  ;;  %v1256_v6 = vmul.f32 %v8325_v47, %v8325_v47  ;;  %v911_v56 = vpop.f32.mrb[32].mxu1  ;;  %v1389_v48 = vadd.f32 %v1388_v51, %v1248_v54 }
 0x172   : > { %v8356_v27 = vadd.f32 %v798_v50, %v7933_v41  ;;  %v800_v36 = vpop.f32.mrb[33].mxu0  ;;  %v1397_v29 = vadd.f32 %v1255_v3, %v1254_v16  ;;  %v8359_v5 = vadd.f32 %v761_v23, %v7891_v17  ;;  %v913_v39 = vpop.f32.mrb[33].mxu1  ;;  %v8364_v2 = vadd.f32 %v1380_v14, %v1241_v24 }
 0x173   : > { %v8362_v10 = vadd.f32 %v800_v36, %v7936_v42  ;;  %v802_v1 = vpop.f32.mrb[34].mxu0  ;;  %v915_v51 = vpop.f32.mrb[34].mxu1  ;;  %v8374_v17 = vadd.f32 %v1117_v25, %v8322_v52  ;;  %v1126_v23 = vadd.f32 %v1125_v63, %v8325_v47  ;;  %v8378_v16 = vadd.f32 %v911_v56, %v7954_v53 }
 0x174   : > { %11051 = vst [vmem:[#allocation74_spill] sm:$0xff] %v8356_v27  ;;  %11052 = vst [vmem:[#allocation75_spill] sm:$0xff] %v8359_v5  ;;  %v993_v61 = vadd.f32 %v7979_v21, %v8356_v27  ;;  %v1138_v50 = vmul.f32 %v8356_v27, %v8356_v27  ;;  %v8371_v30 = vadd.f32 %v802_v1, %v7933_v41  ;;  %v804_v54 = vpop.f32.mrb[35].mxu0  ;;  %v917_v21 = vpop.f32.mrb[35].mxu1 }
 0x175   : > { %11053 = vst [vmem:[#allocation76_spill] sm:$0xff] %v8362_v10  ;;  %11055 = vst [vmem:[#allocation78_spill] sm:$0xff] %v8378_v16  ;;  %v8381_v3 = vadd.f32 %v804_v54, %v7936_v42  ;;  %v1139_v14 = vmul.f32 %v8362_v10, %v8362_v10  ;;  %v8390_v25 = vadd.f32 %v913_v39, %v7987_v26 }
 0x176   : > { %11054 = vst [vmem:[#allocation77_spill] sm:$0xff] %v8371_v30  ;;  %v1002_v24 = vadd.f32 %v8028_v7, %v8371_v30  ;;  %v1146_v36 = vmul.f32 %v8371_v30, %v8371_v30  ;;  %v8392_v63 = vadd.f32 %v1389_v48, %v1249_v45  ;;  %v8394_v56 = vadd.f32 %v1397_v29, %v1256_v6 }
 0x177   : > { %11056 = vst [vmem:[#allocation79_spill] sm:$0xff] %v8381_v3  ;;  %11057 = vst [vmem:[#allocation80_spill] sm:$0xff] %v8390_v25  ;;  %v8398_v1 = vmul.f32 %v8359_v5, %v8359_v5  ;;  %v994_v54 = vadd.f32 %v993_v61, %v8362_v10  ;;  %v1147_v30 = vmul.f32 %v8381_v3, %v8381_v3 }
 0x178   : > { %v1274_v27 = vadd.f32 %v8036_v31, %v1146_v36  ;;  %v1003_v7 = vadd.f32 %v1002_v24, %v8381_v3  ;;  %v1265_v39 = vadd.f32 %v7999_v44, %v1138_v50  ;;  %v8407_v45 = vadd.f32 %v1126_v23, %v8359_v5 }
 0x179   : > { %v8410_v6 = vadd.f32 %v915_v51, %v7954_v53  ;;  %v8413_v48 = vadd.f32 %v917_v21, %v7987_v26  ;;  %v808_v29 = vpop.f32.mrb[36].mxu0  ;;  %v995_v61 = vadd.f32 %v994_v54, %v8378_v16  ;;  %v921_v36 = vpop.f32.mrb[36].mxu1  ;;  %v1140_v44 = vmul.f32 %v8378_v16, %v8378_v16 }
 0x17a   : > { %v8417_v31 = vadd.f32 %v808_v29, %v7933_v41  ;;  %v810_v24 = vpop.f32.mrb[37].mxu0  ;;  %v1141_v50 = vmul.f32 %v8390_v25, %v8390_v25  ;;  %v1266_v23 = vadd.f32 %v1265_v39, %v1139_v14  ;;  %v8427_v10 = vadd.f32 %v921_v36, %v7954_v53  ;;  %v923_v54 = vpop.f32.mrb[37].mxu1 }
 0x17b   : > { %11058 = vst [vmem:[#allocation81_spill] sm:$0xff] %v8410_v6  ;;  %11059 = vst [vmem:[#allocation82_spill] sm:$0xff] %v8413_v48  ;;  %v8424_v51 = vadd.f32 %v810_v24, %v7936_v42  ;;  %v812_v21 = vpop.f32.mrb[38].mxu0  ;;  %v996_v29 = vadd.f32 %v995_v61, %v8390_v25  ;;  %v1004_v3 = vadd.f32 %v1003_v7, %v8410_v6  ;;  %v925_v24 = vpop.f32.mrb[38].mxu1 }
 0x17c   : > { %11060 = vst [vmem:[#allocation83_spill] sm:$0xff] %v8417_v31  ;;  %11062 = vst [vmem:[#allocation85_spill] sm:$0xff] %v8427_v10  ;;  %v1011_v47 = vadd.f32 %v8039_v35, %v8417_v31  ;;  %v1154_v16 = vmul.f32 %v8417_v31, %v8417_v31  ;;  %v8436_v14 = vadd.f32 %v812_v21, %v7933_v41  ;;  %v814_v39 = vpop.f32.mrb[39].mxu0  ;;  %v927_v61 = vpop.f32.mrb[39].mxu1 }
 0x17d   : > { %11061 = vst [vmem:[#allocation84_spill] sm:$0xff] %v8424_v51  ;;  %v1275_v52 = vadd.f32 %v1274_v27, %v1147_v30  ;;  %v1155_v36 = vmul.f32 %v8424_v51, %v8424_v51  ;;  %v8441_v5 = vadd.f32 %v814_v39, %v7936_v42  ;;  %v8444_v7 = vadd.f32 %v923_v54, %v7987_v26 }
 0x17e   : > { %11063 = vst [vmem:[#allocation86_spill] sm:$0xff] %v8436_v14  ;;  %997 = vadd.xlane.f32.xlu0 %v996_v29  ;;  %v8447_v35 = vadd.f32 %v925_v24, %v7954_v53  ;;  %v1283_v21 = vadd.f32 %v8061_v20, %v1154_v16  ;;  %v1012_v25 = vadd.f32 %v1011_v47, %v8424_v51 }
 0x17f   : > { %11064 = vst [vmem:[#allocation87_spill] sm:$0xff] %v8441_v5  ;;  %11065 = vst [vmem:[#allocation88_spill] sm:$0xff] %v8444_v7  ;;  %v1020_v30 = vadd.f32 %v8086_v57, %v8436_v14  ;;  %v1162_v27 = vmul.f32 %v8436_v14, %v8436_v14  ;;  %v1148_v39 = vmul.f32 %v8410_v6, %v8410_v6 }
 0x180   : > { %11066 = vst [vmem:[#allocation89_spill] sm:$0xff] %v8447_v35  ;;  %v1156_v54 = vmul.f32 %v8427_v10, %v8427_v10  ;;  %v1267_v29 = vadd.f32 %v1266_v23, %v1140_v44  ;;  %v1149_v24 = vmul.f32 %v8413_v48, %v8413_v48  ;;  %v1163_v47 = vmul.f32 %v8441_v5, %v8441_v5 }
 0x181   : > { %v1021_v20 = vadd.f32 %v1020_v30, %v8441_v5  ;;  %v1164_v57 = vmul.f32 %v8447_v35, %v8447_v35  ;;  %v1005_v16 = vadd.f32 %v1004_v3, %v8413_v48  ;;  %v818_v14 = vpop.f32.mrb[40].mxu0  ;;  %v1276_v6 = vadd.f32 %v1275_v52, %v1148_v39  ;;  %v931_v59 = vpop.f32.mrb[40].mxu1 }
 0x182   : > { %v1268_v31 = vadd.f32 %v1267_v29, %v1141_v50  ;;  %v1013_v51 = vadd.f32 %v1012_v25, %v8427_v10  ;;  %v1284_v62 = vadd.f32 %v1283_v21, %v1155_v36  ;;  %v1292_v44 = vadd.f32 %v8088_v37, %v1162_v27  ;;  %v820_v5 = vpop.f32.mrb[41].mxu0  ;;  %v933_v37 = vpop.f32.mrb[41].mxu1 }
 0x183   : > { %v8470_v23 = vadd.f32 %v927_v61, %v7987_v26  ;;  %1006 = vadd.xlane.f32.xlu0 %v1005_v16  ;;  %v8473_v30 = vadd.f32 %v818_v14, %v7933_v41  ;;  %v1157_v3 = vmul.f32 %v8444_v7, %v8444_v7  ;;  %v8478_v52 = vadd.f32 %v820_v5, %v7936_v42  ;;  %v822_v25 = vpop.f32.mrb[42].mxu0  ;;  %v935_v27 = vpop.f32.mrb[42].mxu1 }
 0x184   : > { %1269 = vadd.xlane.f32.xlu1 %v1268_v31  ;;  %v8481_v50 = vadd.f32 %v931_v59, %v7954_v53  ;;  %v1014_v36 = vadd.f32 %v1013_v51, %v8444_v7  ;;  %v1022_v61 = vadd.f32 %v1021_v20, %v8447_v35  ;;  %v8490_v31 = vadd.f32 %v822_v25, %v7933_v41  ;;  %v824_v5 = vpop.f32.mrb[43].mxu0 }
 0x185   : > { %11067 = vst [vmem:[#allocation90_spill] sm:$0xff] %v8470_v23  ;;  %11068 = vst [vmem:[#allocation91_spill] sm:$0xff] %v8473_v30  ;;  %v1029_v14 = vadd.f32 %v8091_v46, %v8473_v30  ;;  %v1170_v21 = vmul.f32 %v8473_v30, %v8473_v30  ;;  %v1285_v39 = vadd.f32 %v1284_v62, %v1156_v54  ;;  %v937_v46 = vpop.f32.mrb[43].mxu1 }
 0x186   : > { %11069 = vst [vmem:[#allocation92_spill] sm:$0xff] %v8478_v52  ;;  %11070 = vst [vmem:[#allocation93_spill] sm:$0xff] %v8481_v50  ;;  %v1171_v59 = vmul.f32 %v8478_v52, %v8478_v52  ;;  %v1277_v29 = vadd.f32 %v1276_v6, %v1149_v24  ;;  %v8495_v51 = vadd.f32 %v824_v5, %v7936_v42 }
 0x187   : > { %11071 = vst [vmem:[#allocation94_spill] sm:$0xff] %v8490_v31  ;;  %v8498_v20 = vadd.f32 %v933_v37, %v7987_v26  ;;  %v1301_v16 = vadd.f32 %v8114_v33, %v1170_v21  ;;  %v1030_v10 = vadd.f32 %v1029_v14, %v8478_v52  ;;  %v1038_v25 = vadd.f32 %v8132_v11, %v8490_v31 }
 0x188   : > { %11072 = vst [vmem:[#allocation95_spill] sm:$0xff] %v8495_v51  ;;  %v1178_v62 = vmul.f32 %v8490_v31, %v8490_v31  ;;  %1015 = vadd.xlane.f32.xlu0 %v1014_v36  ;;  %1278 = vadd.xlane.f32.xlu1 %v1277_v29  ;;  %v1172_v6 = vmul.f32 %v8481_v50, %v8481_v50 }
 0x189   : > { %11073 = vst [vmem:[#allocation96_spill] sm:$0xff] %v8498_v20  ;;  %v1179_v54 = vmul.f32 %v8495_v51, %v8495_v51  ;;  %v8511_v24 = vadd.f32 %v935_v27, %v7954_v53  ;;  %v1023_v33 = vadd.f32 %v1022_v61, %v8470_v23  ;;  %v1039_v11 = vadd.f32 %v1038_v25, %v8495_v51  ;;  %v828_v5 = vpop.f32.mrb[44].mxu0  ;;  %v7024_v25 = vld [vmem:[#allocation5 + $0xe4] ss:$16 sps:$4 sm:$0xff]  }
 0x18a   : > { %v1310_v37 = vadd.f32 %v8160_v18, %v1178_v62  ;;  %v1286_v14 = vadd.f32 %v1285_v39, %v1157_v3  ;;  %v1293_v21 = vadd.f32 %v1292_v44, %v1163_v47  ;;  %v8517_v36 = vadd.f32 %v937_v46, %v7987_v26  ;;  %v830_v61 = vpop.f32.mrb[45].mxu0  ;;  %v941_v62 = vpop.f32.mrb[44].mxu1  ;;  %3954 = vmatprep.subr.bf16.mxu0 %v7024_v25 }
 0x18b   : > { %11074 = vst [vmem:[#allocation97_spill] sm:$0xff] %v8511_v24  ;;  %v1165_v29 = vmul.f32 %v8470_v23, %v8470_v23  ;;  %v1031_v35 = vadd.f32 %v1030_v10, %v8481_v50  ;;  %v1302_v7 = vadd.f32 %v1301_v16, %v1171_v59  ;;  %v8523_v27 = vadd.f32 %v828_v5, %v7933_v41  ;;  %v832_v39 = vpop.f32.mrb[46].mxu0  ;;  %v943_v59 = vpop.f32.mrb[45].mxu1 }
 0x18c   : > { %11075 = vst [vmem:[#allocation98_spill] sm:$0xff] %v8517_v36  ;;  %1287 = vadd.xlane.f32.xlu0 %v1286_v14  ;;  %v1294_v18 = vadd.f32 %v1293_v21, %v1164_v57  ;;  %v1040_v3 = vadd.f32 %v1039_v11, %v8511_v24  ;;  %v1173_v47 = vmul.f32 %v8498_v20, %v8498_v20  ;;  %v834_v14 = vpop.f32.mrb[47].mxu0  ;;  %v945_v21 = vpop.f32.mrb[46].mxu1 }
 0x18d   : > { %11076 = vst [vmem:[#allocation99_spill] sm:$0xff] %v8523_v27  ;;  %1024 = vadd.xlane.f32.xlu1 %v1023_v33  ;;  %v8529_v44 = vadd.f32 %v830_v61, %v7936_v42  ;;  %v8532_v10 = vadd.f32 %v941_v62, %v7954_v53  ;;  %v1032_v46 = vadd.f32 %v1031_v35, %v8498_v20  ;;  %v7027_v61 = vld [vmem:[#allocation5 + $0xec] ss:$16 sps:$4 sm:$0xff]  }
 0x18e   : > { %v1311_v16 = vadd.f32 %v1310_v37, %v1179_v54  ;;  %v1047_v57 = vadd.f32 %v8187_v60, %v8523_v27  ;;  %v1186_v11 = vmul.f32 %v8523_v27, %v8523_v27  ;;  %v8540_v33 = vadd.f32 %v832_v39, %v7933_v41  ;;  %v947_v60 = vpop.f32.mrb[47].mxu1  ;;  %v7022_v37 = vld [vmem:[#allocation5 + $0xe0] ss:$16 sps:$4 sm:$0xff]   ;;  %4406 = vmatprep.subr.bf16.mxu1 %v7027_v61 }
 0x18f   : > { %11077 = vst [vmem:[#allocation100_spill] sm:$0xff] %v8529_v44  ;;  %11078 = vst [vmem:[#allocation101_spill] sm:$0xff] %v8532_v10  ;;  %v1303_v5 = vadd.f32 %v1302_v7, %v1172_v6  ;;  %v1187_v62 = vmul.f32 %v8529_v44, %v8529_v44  ;;  %v1295_v50 = vadd.f32 %v1294_v18, %v1165_v29  ;;  %3955 = vmatpush1.bf16.msra.mxu0 %v7022_v37 }
 0x190   : > { %11079 = vst [vmem:[#allocation102_spill] sm:$0xff] %v8540_v33  ;;  %v8545_v35 = vadd.f32 %v834_v14, %v7936_v42  ;;  %v8548_v54 = vadd.f32 %v943_v59, %v7987_v26  ;;  %v1319_v39 = vadd.f32 %v8197_v32, %v1186_v11  ;;  %v1048_v20 = vadd.f32 %v1047_v57, %v8529_v44  ;;  %v7025_v11 = vld [vmem:[#allocation5 + $0xe8] ss:$16 sps:$4 sm:$0xff]  }
 0x191   : > { %v1056_v7 = vadd.f32 %v8207_v43, %v8540_v33  ;;  %v1194_v6 = vmul.f32 %v8540_v33, %v8540_v33  ;;  %1033 = vadd.xlane.f32.xlu0 %v1032_v46  ;;  %v1180_v29 = vmul.f32 %v8511_v24, %v8511_v24  ;;  %1296 = vadd.xlane.f32.xlu1 %v1295_v50  ;;  %v838_v14 = vpop.f32.mrb[48].mxu0  ;;  %v7088_v33 = vld [vmem:[#allocation5 + $0x240] ss:$16 sps:$4 sm:$0xff]  }
 0x192   : > { %11080 = vst [vmem:[#allocation103_spill] sm:$0xff] %v8545_v35  ;;  %11081 = vst [vmem:[#allocation104_spill] sm:$0xff] %v8548_v54  ;;  %v8559_v18 = vadd.f32 %v945_v21, %v7954_v53  ;;  %v1041_v59 = vadd.f32 %v1040_v3, %v8517_v36  ;;  %v1181_v32 = vmul.f32 %v8517_v36, %v8517_v36  ;;  %4407 = vmatpush1.bf16.msra.mxu1 %v7025_v11 }
 0x193   : > { %v1188_v25 = vmul.f32 %v8532_v10, %v8532_v10  ;;  %v1057_v43 = vadd.f32 %v1056_v7, %v8545_v35  ;;  %v1195_v46 = vmul.f32 %v8545_v35, %v8545_v35  ;;  %v1304_v57 = vadd.f32 %v1303_v5, %v1173_v47  ;;  %v840_v47 = vpop.f32.mrb[49].mxu0  ;;  %v951_v5 = vpop.f32.mrb[48].mxu1 }
 0x194   : > { %11082 = vst [vmem:[#allocation105_spill] sm:$0xff] %v8559_v18  ;;  %v8570_v50 = vadd.f32 %v947_v60, %v7987_v26  ;;  %v1312_v21 = vadd.f32 %v1311_v16, %v1180_v29  ;;  %v1049_v3 = vadd.f32 %v1048_v20, %v8532_v10  ;;  %v1320_v24 = vadd.f32 %v1319_v39, %v1187_v62  ;;  %v7030_v60 = vld [vmem:[#allocation5 + $0x104] ss:$16 sps:$4 sm:$0xff]   ;;  %v842_v16 = vpop.f32.mrb[50].mxu0  ;;  %v953_v62 = vpop.f32.mrb[49].mxu1 }
 0x195   : > { %v1328_v36 = vadd.f32 %v8209_v22, %v1194_v6  ;;  %v1196_v7 = vmul.f32 %v8559_v18, %v8559_v18  ;;  %1305 = vadd.xlane.f32.xlu0 %v1304_v57  ;;  %v8577_v23 = vadd.f32 %v838_v14, %v7933_v41  ;;  %v1189_v61 = vmul.f32 %v8548_v54, %v8548_v54  ;;  %v844_v57 = vpop.f32.mrb[51].mxu0  ;;  %v955_v14 = vpop.f32.mrb[50].mxu1 }
 0x196   : > { %11083 = vst [vmem:[#allocation106_spill] sm:$0xff] %v8570_v50  ;;  %1042 = vadd.xlane.f32.xlu1 %v1041_v59  ;;  %v8582_v20 = vadd.f32 %v840_v47, %v7936_v42  ;;  %v8585_v22 = vadd.f32 %v951_v5, %v7954_v53  ;;  %v1050_v37 = vadd.f32 %v1049_v3, %v8548_v54  ;;  %v7033_v5 = vld [vmem:[#allocation5 + $0x10c] ss:$16 sps:$4 sm:$0xff]   ;;  %v7028_v54 = vld [vmem:[#allocation5 + $0x100] ss:$16 sps:$4 sm:$0xff]  }
 0x197   : > { %11084 = vst [vmem:[#allocation107_spill] sm:$0xff] %v8577_v23  ;;  %v1058_v39 = vadd.f32 %v1057_v43, %v8559_v18  ;;  %v1065_v6 = vadd.f32 %v8212_v0, %v8577_v23  ;;  %v1202_v29 = vmul.f32 %v8577_v23, %v8577_v23  ;;  %v8594_v59 = vadd.f32 %v842_v16, %v7933_v41  ;;  %v957_v18 = vpop.f32.mrb[51].mxu1 }
 0x198   : > { %11085 = vst [vmem:[#allocation108_spill] sm:$0xff] %v8582_v20  ;;  %11086 = vst [vmem:[#allocation109_spill] sm:$0xff] %v8585_v22  ;;  %v1321_v47 = vadd.f32 %v1320_v24, %v1188_v25  ;;  %v1203_v10 = vmul.f32 %v8582_v20, %v8582_v20  ;;  %v1313_v3 = vadd.f32 %v1312_v21, %v1181_v32  ;;  %3956 = vmatprep.subr.bf16.mxu0 %v7030_v60 }
 0x199   : > { %11087 = vst [vmem:[#allocation110_spill] sm:$0xff] %v8594_v59  ;;  %v8599_v43 = vadd.f32 %v844_v57, %v7936_v42  ;;  %v8602_v0 = vadd.f32 %v953_v62, %v7987_v26  ;;  %v1337_v16 = vadd.f32 %v8216_v8, %v1202_v29  ;;  %v1066_v48 = vadd.f32 %v1065_v6, %v8582_v20  ;;  %v7031_v29 = vld [vmem:[#allocation5 + $0x108] ss:$16 sps:$4 sm:$0xff]   ;;  %v848_v57 = vpop.f32.mrb[52].mxu0  ;;  %v7087_v20 = vld [vmem:[#allocation5 + $0x22c] ss:$16 sps:$4 sm:$0xff]  }
 0x19a   : > { %v1074_v24 = vadd.f32 %v8259_v19, %v8594_v59  ;;  %v1210_v25 = vmul.f32 %v8594_v59, %v8594_v59  ;;  %1051 = vadd.xlane.f32.xlu0 %v1050_v37  ;;  %1314 = vadd.xlane.f32.xlu1 %v1313_v3  ;;  %v1204_v32 = vmul.f32 %v8585_v22, %v8585_v22  ;;  %v7084_v59 = vld [vmem:[#allocation5 + $0x224] ss:$16 sps:$4 sm:$0xff]  }
 0x19b   : > { %11088 = vst [vmem:[#allocation111_spill] sm:$0xff] %v8599_v43  ;;  %11089 = vst [vmem:[#allocation112_spill] sm:$0xff] %v8602_v0  ;;  %v1211_v11 = vmul.f32 %v8599_v43, %v8599_v43  ;;  %v8615_v21 = vadd.f32 %v955_v14, %v7954_v53  ;;  %v1059_v8 = vadd.f32 %v1058_v39, %v8570_v50  ;;  %4408 = vmatprep.subr.bf16.mxu1 %v7033_v5  ;;  %v7036_v39 = vld [vmem:[#allocation5 + $0x124] ss:$16 sps:$4 sm:$0xff]  }
 0x19c   : > { %v1346_v60 = vadd.f32 %v8266_v9, %v1210_v25  ;;  %v1075_v19 = vadd.f32 %v1074_v24, %v8599_v43  ;;  %v1322_v62 = vadd.f32 %v1321_v47, %v1189_v61  ;;  %v1329_v6 = vadd.f32 %v1328_v36, %v1195_v46  ;;  %3957 = vmatpush1.bf16.msra.mxu0 %v7028_v54  ;;  %v850_v61 = vpop.f32.mrb[53].mxu0  ;;  %v961_v46 = vpop.f32.mrb[52].mxu1  ;;  %v7093_v43 = vld [vmem:[#allocation5 + $0x24c] ss:$16 sps:$4 sm:$0xff]  }
 0x19d   : > { %11090 = vst [vmem:[#allocation113_spill] sm:$0xff] %v8615_v21  ;;  %v8621_v37 = vadd.f32 %v957_v18, %v7987_v26  ;;  %v1197_v3 = vmul.f32 %v8570_v50, %v8570_v50  ;;  %v1067_v14 = vadd.f32 %v1066_v48, %v8585_v22  ;;  %v1338_v23 = vadd.f32 %v1337_v16, %v1203_v10  ;;  %v852_v48 = vpop.f32.mrb[54].mxu0  ;;  %v963_v54 = vpop.f32.mrb[53].mxu1 }
 0x19e   : > { %1323 = vadd.xlane.f32.xlu0 %v1322_v62  ;;  %v8627_v9 = vadd.f32 %v848_v57, %v7933_v41  ;;  %v1330_v36 = vadd.f32 %v1329_v6, %v1196_v7  ;;  %v1076_v47 = vadd.f32 %v1075_v19, %v8615_v21  ;;  %v1205_v18 = vmul.f32 %v8602_v0, %v8602_v0  ;;  %v965_v62 = vpop.f32.mrb[54].mxu1  ;;  %v7039_v57 = vld [vmem:[#allocation5 + $0x12c] ss:$16 sps:$4 sm:$0xff]  }
 0x19f   : > { %11091 = vst [vmem:[#allocation114_spill] sm:$0xff] %v8621_v37  ;;  %1060 = vadd.xlane.f32.xlu1 %v1059_v8  ;;  %v8633_v5 = vadd.f32 %v850_v61, %v7936_v42  ;;  %v8636_v10 = vadd.f32 %v961_v46, %v7954_v53  ;;  %v1068_v16 = vadd.f32 %v1067_v14, %v8602_v0  ;;  %v854_v8 = vpop.f32.mrb[55].mxu0  ;;  %v7034_v14 = vld [vmem:[#allocation5 + $0x120] ss:$16 sps:$4 sm:$0xff]  }
 0x1a0   : > { %11092 = vst [vmem:[#allocation115_spill] sm:$0xff] %v8627_v9  ;;  %v1347_v24 = vadd.f32 %v1346_v60, %v1211_v11  ;;  %v1083_v7 = vadd.f32 %v8276_v34, %v8627_v9  ;;  %v1218_v25 = vmul.f32 %v8627_v9, %v8627_v9  ;;  %v8644_v19 = vadd.f32 %v852_v48, %v7933_v41  ;;  %v967_v60 = vpop.f32.mrb[55].mxu1 }
 0x1a1   : > { %11093 = vst [vmem:[#allocation116_spill] sm:$0xff] %v8633_v5  ;;  %11094 = vst [vmem:[#allocation117_spill] sm:$0xff] %v8636_v10  ;;  %v1339_v6 = vadd.f32 %v1338_v23, %v1204_v32  ;;  %4409 = vmatpush1.bf16.msra.mxu1 %v7031_v29  ;;  %v1219_v61 = vmul.f32 %v8633_v5, %v8633_v5  ;;  %v1331_v46 = vadd.f32 %v1330_v36, %v1197_v3 }
 0x1a2   : > { %11095 = vst [vmem:[#allocation118_spill] sm:$0xff] %v8644_v19  ;;  %v8649_v11 = vadd.f32 %v854_v8, %v7936_v42  ;;  %v8652_v34 = vadd.f32 %v963_v54, %v7987_v26  ;;  %3958 = vmatprep.subr.bf16.mxu0 %v7036_v39  ;;  %v1355_v48 = vadd.f32 %v8318_v28, %v1218_v25 }
 0x1a3   : > { %v1084_v22 = vadd.f32 %v1083_v7, %v8633_v5  ;;  %v1092_v23 = vadd.f32 %v8334_v4, %v8644_v19  ;;  %v1226_v32 = vmul.f32 %v8644_v19, %v8644_v19  ;;  %1069 = vadd.xlane.f32.xlu0 %v1068_v16  ;;  %v8662_v29 = vadd.f32 %v8394_v56, %v8398_v1  ;;  %v7037_v56 = vld [vmem:[#allocation5 + $0x128] ss:$16 sps:$4 sm:$0xff]   ;;  %v858_v7 = vpop.f32.mrb[56].mxu0 }
 0x1a4   : > { %11096 = vst [vmem:[#allocation119_spill] sm:$0xff] %v8649_v11  ;;  %11097 = vst [vmem:[#allocation120_spill] sm:$0xff] %v8652_v34  ;;  %v1212_v3 = vmul.f32 %v8615_v21, %v8615_v21  ;;  %1332 = vadd.xlane.f32.xlu1 %v1331_v46  ;;  %v1077_v39 = vadd.f32 %v1076_v47, %v8621_v37  ;;  %v1213_v28 = vmul.f32 %v8621_v37, %v8621_v37  ;;  %v7042_v46 = vld [vmem:[#allocation5 + $0x144] ss:$16 sps:$4 sm:$0xff]  }
 0x1a5   : > { %v1220_v4 = vmul.f32 %v8636_v10, %v8636_v10  ;;  %v1093_v36 = vadd.f32 %v1092_v23, %v8649_v11  ;;  %v1227_v54 = vmul.f32 %v8649_v11, %v8649_v11  ;;  %v1340_v16 = vadd.f32 %v1339_v6, %v1205_v18  ;;  %4410 = vmatprep.subr.bf16.mxu1 %v7039_v57  ;;  %v860_v6 = vpop.f32.mrb[57].mxu0  ;;  %v971_v57 = vpop.f32.mrb[56].mxu1 }
 0x1a6   : > { %v8675_v1 = vadd.f32 %v965_v62, %v7954_v53  ;;  %v1348_v25 = vadd.f32 %v1347_v24, %v1212_v3  ;;  %v1085_v47 = vadd.f32 %v1084_v22, %v8636_v10  ;;  %v1356_v8 = vadd.f32 %v1355_v48, %v1219_v61  ;;  %3959 = vmatpush1.bf16.msra.mxu0 %v7034_v14  ;;  %v862_v24 = vpop.f32.mrb[58].mxu0 }
 0x1a7   : > { %v1364_v21 = vadd.f32 %v8336_v55, %v1226_v32  ;;  %v8680_v23 = vadd.f32 %v967_v60, %v7987_v26  ;;  %1341 = vadd.xlane.f32.xlu0 %v1340_v16  ;;  %v8683_v18 = vadd.f32 %v858_v7, %v7933_v41  ;;  %v1221_v62 = vmul.f32 %v8652_v34, %v8652_v34  ;;  %v973_v55 = vpop.f32.mrb[57].mxu1 }
 0x1a8   : > { %11098 = vst [vmem:[#allocation121_spill] sm:$0xff] %v8675_v1  ;;  %1078 = vadd.xlane.f32.xlu1 %v1077_v39  ;;  %v8688_v22 = vadd.f32 %v860_v6, %v7936_v42  ;;  %v8691_v61 = vadd.f32 %v971_v57, %v7954_v53  ;;  %v1086_v60 = vadd.f32 %v1085_v47, %v8652_v34  ;;  %v864_v39 = vpop.f32.mrb[59].mxu0  ;;  %v975_v16 = vpop.f32.mrb[58].mxu1  ;;  %v7045_v6 = vld [vmem:[#allocation5 + $0x14c] ss:$16 sps:$4 sm:$0xff]  }
 0x1a9   : > { %11099 = vst [vmem:[#allocation122_spill] sm:$0xff] %v8680_v23  ;;  %11100 = vst [vmem:[#allocation123_spill] sm:$0xff] %v8683_v18  ;;  %v1094_v14 = vadd.f32 %v1093_v36, %v8675_v1  ;;  %v1101_v48 = vadd.f32 %v8339_v49, %v8683_v18  ;;  %v1234_v32 = vmul.f32 %v8683_v18, %v8683_v18  ;;  %4411 = vmatpush1.bf16.msra.mxu1 %v7037_v56  ;;  %v977_v10 = vpop.f32.mrb[59].mxu1  ;;  %v7040_v34 = vld [vmem:[#allocation5 + $0x140] ss:$16 sps:$4 sm:$0xff]  }
 0x1aa   : > { %11101 = vst [vmem:[#allocation124_spill] sm:$0xff] %v8688_v22  ;;  %11102 = vst [vmem:[#allocation125_spill] sm:$0xff] %v8691_v61  ;;  %v8700_v3 = vadd.f32 %v862_v24, %v7933_v41  ;;  %v1357_v7 = vadd.f32 %v1356_v8, %v1220_v4  ;;  %v1235_v57 = vmul.f32 %v8688_v22, %v8688_v22  ;;  %3960 = vmatprep.subr.bf16.mxu0 %v7042_v46 }
 0x1ab   : > { %v1349_v47 = vadd.f32 %v1348_v25, %v1213_v28  ;;  %v8705_v36 = vadd.f32 %v864_v39, %v7936_v42  ;;  %v8708_v49 = vadd.f32 %v973_v55, %v7987_v26  ;;  %v1373_v24 = vadd.f32 %v8341_v40, %v1234_v32  ;;  %1087 = vadd.xlane.f32.xlu0 %v1086_v60  ;;  %v7043_v60 = vld [vmem:[#allocation5 + $0x148] ss:$16 sps:$4 sm:$0xff]  }
 0x1ac   : > { %11103 = vst [vmem:[#allocation126_spill] sm:$0xff] %v8700_v3  ;;  %v1102_v0 = vadd.f32 %v1101_v48, %v8688_v22  ;;  %v1110_v4 = vadd.f32 %v8349_v15, %v8700_v3  ;;  %v1242_v56 = vmul.f32 %v8700_v3, %v8700_v3  ;;  %v1228_v28 = vmul.f32 %v8675_v1, %v8675_v1 }
 0x1ad   : > { %11104 = vst [vmem:[#allocation127_spill] sm:$0xff] %v8705_v36  ;;  %11105 = vst [vmem:[#allocation128_spill] sm:$0xff] %v8708_v49  ;;  %1350 = vadd.xlane.f32.xlu1 %v1349_v47  ;;  %v1236_v25 = vmul.f32 %v8691_v61, %v8691_v61  ;;  %v1095_v8 = vadd.f32 %v1094_v14, %v8680_v23  ;;  %v1229_v40 = vmul.f32 %v8680_v23, %v8680_v23  ;;  %v868_v47 = vpop.f32.mrb[60].mxu0  ;;  %v7048_v23 = vld [vmem:[#allocation5 + $0x164] ss:$16 sps:$4 sm:$0xff]  }
 0x1ae   : > { %v1111_v46 = vadd.f32 %v1110_v4, %v8705_v36  ;;  %v8725_v15 = vadd.f32 %v975_v16, %v7954_v53  ;;  %v1358_v55 = vadd.f32 %v1357_v7, %v1221_v62  ;;  %v1365_v48 = vadd.f32 %v1364_v21, %v1227_v54  ;;  %4412 = vmatprep.subr.bf16.mxu1 %v7045_v6  ;;  %v870_v21 = vpop.f32.mrb[61].mxu0  ;;  %v981_v16 = vpop.f32.mrb[60].mxu1 }
 0x1af   : > { %v1382_v32 = vadd.f32 %v8364_v2, %v1242_v56  ;;  %v1243_v39 = vmul.f32 %v8705_v36, %v8705_v36  ;;  %v1103_v14 = vadd.f32 %v1102_v0, %v8691_v61  ;;  %v1374_v1 = vadd.f32 %v1373_v24, %v1235_v57  ;;  %3961 = vmatpush1.bf16.msra.mxu0 %v7040_v34  ;;  %v872_v0 = vpop.f32.mrb[62].mxu0  ;;  %v7046_v61 = vld [vmem:[#allocation5 + $0x160] ss:$16 sps:$4 sm:$0xff]  }
 0x1b0   : > { %11106 = vst [vmem:[#allocation129_spill] sm:$0xff] %v8725_v15  ;;  %v8732_v4 = vadd.f32 %v977_v10, %v7987_v26  ;;  %1359 = vadd.xlane.f32.xlu0 %v1358_v55  ;;  %v8735_v62 = vadd.f32 %v868_v47, %v7933_v41  ;;  %v1366_v54 = vadd.f32 %v1365_v48, %v1228_v28  ;;  %v983_v10 = vpop.f32.mrb[61].mxu1  ;;  %v7051_v47 = vld [vmem:[#allocation5 + $0x16c] ss:$16 sps:$4 sm:$0xff]  }
 0x1b1   : > { %v1237_v2 = vmul.f32 %v8708_v49, %v8708_v49  ;;  %1096 = vadd.xlane.f32.xlu1 %v1095_v8  ;;  %v8740_v7 = vadd.f32 %v870_v21, %v7936_v42  ;;  %v8743_v34 = vadd.f32 %v981_v16, %v7954_v53  ;;  %v1104_v6 = vadd.f32 %v1103_v14, %v8708_v49  ;;  %v874_v8 = vpop.f32.mrb[63].mxu0  ;;  %v985_v55 = vpop.f32.mrb[62].mxu1 }
 0x1b2   : > { %11107 = vst [vmem:[#allocation130_spill] sm:$0xff] %v8732_v4  ;;  %11108 = vst [vmem:[#allocation131_spill] sm:$0xff] %v8735_v62  ;;  %v1112_v57 = vadd.f32 %v1111_v46, %v8725_v15  ;;  %v1119_v24 = vadd.f32 %v8374_v17, %v8735_v62  ;;  %v1250_v56 = vmul.f32 %v8735_v62, %v8735_v62  ;;  %4413 = vmatpush1.bf16.msra.mxu1 %v7043_v60  ;;  %v987_v16 = vpop.f32.mrb[63].mxu1  ;;  %v7049_v60 = vld [vmem:[#allocation5 + $0x168] ss:$16 sps:$4 sm:$0xff]  }
 0x1b3   : > { %11109 = vst [vmem:[#allocation132_spill] sm:$0xff] %v8740_v7  ;;  %11110 = vst [vmem:[#allocation133_spill] sm:$0xff] %v8743_v34  ;;  %v8752_v28 = vadd.f32 %v872_v0, %v7933_v41  ;;  %v1375_v48 = vadd.f32 %v1374_v1, %v1236_v25  ;;  %v1251_v21 = vmul.f32 %v8740_v7, %v8740_v7  ;;  %3962 = vmatprep.subr.bf16.mxu0 %v7048_v23  ;;  %v7054_v0 = vld [vmem:[#allocation5 + $0x184] ss:$16 sps:$4 sm:$0xff]  }
 0x1b4   : > { %v1367_v14 = vadd.f32 %v1366_v54, %v1229_v40  ;;  %v8757_v46 = vadd.f32 %v874_v8, %v7936_v42  ;;  %v1383_v17 = vadd.f32 %v1382_v32, %v1243_v39  ;;  %v1391_v49 = vadd.f32 %v8392_v63, %v1250_v56  ;;  %1105 = vadd.xlane.f32.xlu0 %v1104_v6  ;;  %v7057_v6 = vld [vmem:[#allocation5 + $0x18c] ss:$16 sps:$4 sm:$0xff]  }
 0x1b5   : > { %11111 = vst [vmem:[#allocation134_spill] sm:$0xff] %v8752_v28  ;;  %v1120_v41 = vadd.f32 %v1119_v24, %v8740_v7  ;;  %v1128_v1 = vadd.f32 %v8407_v45, %v8752_v28  ;;  %v1258_v25 = vmul.f32 %v8752_v28, %v8752_v28  ;;  %v1244_v40 = vmul.f32 %v8725_v15, %v8725_v15 }
 0x1b6   : > { %11112 = vst [vmem:[#allocation135_spill] sm:$0xff] %v8757_v46  ;;  %1368 = vadd.xlane.f32.xlu1 %v1367_v14  ;;  %v1252_v42 = vmul.f32 %v8743_v34, %v8743_v34  ;;  %v8770_v23 = vadd.f32 %v983_v10, %v7987_v26  ;;  %v1113_v63 = vadd.f32 %v1112_v57, %v8732_v4  ;;  %v7052_v57 = vld [vmem:[#allocation5 + $0x180] ss:$16 sps:$4 sm:$0xff]   ;;  %v7060_v14 = vld [vmem:[#allocation5 + $0x1a4] ss:$16 sps:$4 sm:$0xff]  }
 0x1b7   : > { %v1129_v32 = vadd.f32 %v1128_v1, %v8757_v46  ;;  %v1259_v45 = vmul.f32 %v8757_v46, %v8757_v46  ;;  %v8777_v39 = vadd.f32 %v985_v55, %v7954_v53  ;;  %v1376_v54 = vadd.f32 %v1375_v48, %v1237_v2  ;;  %4414 = vmatprep.subr.bf16.mxu1 %v7051_v47  ;;  %v7055_v55 = vld [vmem:[#allocation5 + $0x188] ss:$16 sps:$4 sm:$0xff]  }
 0x1b8   : > { %11113 = vst [vmem:[#allocation136_spill] sm:$0xff] %v8770_v23  ;;  %v1400_v24 = vadd.f32 %v8662_v29, %v1258_v25  ;;  %v1384_v56 = vadd.f32 %v1383_v17, %v1244_v40  ;;  %v1121_v10 = vadd.f32 %v1120_v41, %v8743_v34  ;;  %v1392_v8 = vadd.f32 %v1391_v49, %v1251_v21  ;;  %v7063_v29 = vld [vmem:[#allocation5 + $0x1ac] ss:$16 sps:$4 sm:$0xff]   ;;  %v7058_v21 = vld [vmem:[#allocation5 + $0x1a0] ss:$16 sps:$4 sm:$0xff]  }
 0x1b9   : > { %11114 = vst [vmem:[#allocation137_spill] sm:$0xff] %v8777_v39  ;;  %3963 = vmatpush1.bf16.msra.mxu0 %v7046_v61  ;;  %1377 = vadd.xlane.f32.xlu0 %v1376_v54  ;;  %v1245_v1 = vmul.f32 %v8732_v4, %v8732_v4  ;;  %v1130_v2 = vadd.f32 %v1129_v32, %v8777_v39  ;;  %v7066_v41 = vld [vmem:[#allocation5 + $0x1c4] ss:$16 sps:$4 sm:$0xff]   ;;  %v7067_v54 = vld [vmem:[#allocation5 + $0x1c8] ss:$16 sps:$4 sm:$0xff]  }
 0x1ba   : > { %1114 = vadd.xlane.f32.xlu1 %v1113_v63  ;;  %v1122_v53 = vadd.f32 %v1121_v10, %v8770_v23  ;;  %4415 = vmatpush1.bf16.msra.mxu1 %v7049_v60  ;;  %v1393_v48 = vadd.f32 %v1392_v8, %v1252_v42  ;;  %v8786_v49 = vadd.f32 %v987_v16, %v7987_v26  ;;  %v7061_v42 = vld [vmem:[#allocation5 + $0x1a8] ss:$16 sps:$4 sm:$0xff]   ;;  %v7069_v16 = vld [vmem:[#allocation5 + $0x1cc] ss:$16 sps:$4 sm:$0xff]   ;;  %v7064_v60 = vld [vmem:[#allocation5 + $0x1c0] ss:$16 sps:$4 sm:$0xff]  }
 0x1bb   : > { %3964 = vmatprep.subr.bf16.mxu0 %v7054_v0  ;;  %4416 = vmatprep.subr.bf16.mxu1 %v7057_v6  ;;  %v1385_v61 = vadd.f32 %v1384_v56, %v1245_v1  ;;  %v1401_v47 = vadd.f32 %v1400_v24, %v1259_v45  ;;  %v1253_v17 = vmul.f32 %v8770_v23, %v8770_v23  ;;  %v7072_v32 = vld [vmem:[#allocation5 + $0x1e4] ss:$16 sps:$4 sm:$0xff]   ;;  %v7075_v0 = vld [vmem:[#allocation5 + $0x1ec] ss:$16 sps:$4 sm:$0xff]   ;;  %v7070_v24 = vld [vmem:[#allocation5 + $0x1e0] ss:$16 sps:$4 sm:$0xff]  }
 0x1bc   : > { %11115 = vst [vmem:[#allocation138_spill] sm:$0xff] %v8786_v49  ;;  %v1260_v25 = vmul.f32 %v8777_v39, %v8777_v39  ;;  %v1131_v40 = vadd.f32 %v1130_v2, %v8786_v49  ;;  %v1261_v45 = vmul.f32 %v8786_v49, %v8786_v49  ;;  %v7078_v56 = vld [vmem:[#allocation5 + $0x204] ss:$16 sps:$4 sm:$0xff]   ;;  %v7073_v10 = vld [vmem:[#allocation5 + $0x1e8] ss:$16 sps:$4 sm:$0xff]  }
 0x1bd   : > { %3965 = vmatpush1.bf16.msra.mxu0 %v7052_v57  ;;  %1123 = vadd.xlane.f32.xlu0 %v1122_v53  ;;  %v1394_v26 = vadd.f32 %v1393_v48, %v1253_v17  ;;  %v7081_v8 = vld [vmem:[#allocation5 + $0x20c] ss:$16 sps:$4 sm:$0xff]   ;;  %v11123_v39 = vld [vmem:[#allocation18_spill] sm:$0xff] }
 0x1be   : > { %3966 = vmatprep.subr.bf16.mxu0 %v7060_v14  ;;  %1386 = vadd.xlane.f32.xlu1 %v1385_v61  ;;  %v1402_v63 = vadd.f32 %v1401_v47, %v1260_v25  ;;  %v11122_v34 = vld [vmem:[#allocation23_spill] sm:$0xff]  ;;  %v11128_v4 = vld [vmem:[#allocation29_spill] sm:$0xff] }
 0x1bf   : > { %4417 = vmatpush1.bf16.msra.mxu1 %v7055_v55 }
 0x1c0   : > { %4418 = vmatprep.subr.bf16.mxu1 %v7063_v29  ;;  %v1403_v6 = vadd.f32 %v1402_v63, %v1261_v45 }
 0x1c1   : > { %3967 = vmatpush1.bf16.msra.mxu0 %v7058_v21  ;;  %1395 = vadd.xlane.f32.xlu0 %v1394_v26  ;;  %v8812_v26 = vsub.s32 2, %v7854_v58 }
 0x1c2   : > { %3968 = vmatprep.subr.bf16.mxu0 %v7066_v41  ;;  %1132 = vadd.xlane.f32.xlu1 %v1131_v40  ;;  %v8806_v40 = vsub.s32 1, %v7854_v58 }
 0x1c3   : > { %4419 = vmatpush1.bf16.msra.mxu1 %v7061_v42  ;;  %v8809_v42 = vsub.s32 5, %v7854_v58 }
 0x1c4   : > { %4420 = vmatprep.subr.bf16.mxu1 %v7069_v16  ;;  %11116 = vst [vmem:[#allocation139_spill] sm:$0xff] %v8806_v40 }
 0x1c5   : > { %3969 = vmatpush1.bf16.msra.mxu0 %v7064_v60  ;;  %11117 = vst [vmem:[#allocation140_spill] sm:$0xff] %v8809_v42 }
 0x1c6   : > { %3970 = vmatprep.subr.bf16.mxu0 %v7072_v32  ;;  %1404 = vadd.xlane.f32.xlu1 %v1403_v6  ;;  %v8815_v32 = vsub.s32 6, %v7854_v58 }
 0x1c7   : > { %4421 = vmatpush1.bf16.msra.mxu1 %v7067_v54 }
 0x1c8   : > { %4422 = vmatprep.subr.bf16.mxu1 %v7075_v0  ;;  %11118 = vst [vmem:[#allocation141_spill] sm:$0xff] %v8815_v32 }
 0x1c9   : > { %3971 = vmatpush1.bf16.msra.mxu0 %v7070_v24 }
 0x1ca   : > { %4053 = vmatprep.subr.bf16.mxu0 %v7078_v56 }
 0x1cb   : > { %4423 = vmatpush1.bf16.msra.mxu1 %v7073_v10  ;;  %v7460_v10 = vld [vmem:[%s10780_s2] sm:$0x77] }
 0x1cc   : > { %4505 = vmatprep.subr.bf16.mxu1 %v7081_v8  ;;  %v1781_v8 = vrot.slane %v7460_v10, %v8809_v42 }
 0x20b   : > { %v998_v57 = vpop.xlane.xlu0 %997 }
 0x20c   : > { %v8795_v14 = vmul.f32 0.0009765625, %v998_v57  ;;  %v1777_v57 = vrot.slane %v7460_v10, %v8806_v40 }
 0x20e   : > { %v1438_v1 = vmul.f32 %v8795_v14, %v8795_v14 }
 0x210   : > { %v1007_v53 = vpop.xlane.xlu0 %1006 }
 0x211   : > { %v1270_v2 = vpop.xlane.xlu1 %1269  ;;  %v8799_v55 = vmul.f32 0.0009765625, %v1007_v53  ;;  %v1981_v53 = vrot.slane %v7460_v10, %v8815_v32 }
 0x212   : > { %v1422_v48 = vmul.f32 0.0009765625, %v1270_v2  ;;  %v1977_v2 = vrot.slane %v7460_v10, %v8812_v26 }
 0x213   : > { %v1439_v61 = vmul.f32 %v8799_v55, %v8799_v55 }
 0x214   : > { %v1454_v29 = vsub.f32 %v1422_v48, %v1438_v1 }
 0x215   : > { %v1016_v47 = vpop.xlane.xlu0 %1015  ;;  %v1279_v21 = vpop.xlane.xlu1 %1278 }
 0x216   : > { %v8803_v17 = vmul.f32 0.0009765625, %v1016_v47  ;;  %v1470_v41 = vmax.f32 %v1454_v29, 0.0  ;;  %v1423_v25 = vmul.f32 0.0009765625, %v1279_v21 }
 0x218   : > { %v1614_v16 = vadd.f32 1e-05, %v1470_v41  ;;  %v1455_v63 = vsub.f32 %v1423_v25, %v1439_v61  ;;  %v1440_v54 = vmul.f32 %v8803_v17, %v8803_v17  ;;  %v8833_v25 = vrot.slane %v1781_v8, %v8806_v40 }
 0x219   : > { %v1288_v60 = vpop.xlane.xlu0 %1287 }
 0x21a   : > { %v1025_v45 = vpop.xlane.xlu1 %1024  ;;  %v1424_v0 = vmul.f32 0.0009765625, %v1288_v60  ;;  %7396 = vrsqrt.f32 %v1614_v16  ;;  %v1471_v6 = vmax.f32 %v1455_v63, 0.0  ;;  %v8836_v16 = vrot.slane %v1777_v57, %v8806_v40 }
 0x21b   : > { %v8819_v24 = vmul.f32 0.0009765625, %v1025_v45  ;;  %v8839_v45 = vrot.slane %v1981_v53, %v8812_v26  ;;  %v1487_v53 = vsub.f32 %v7882_v13, %v8795_v14  ;;  %v11125_v13 = vld [vmem:[#allocation26_spill] sm:$0xff] }
 0x21c   : > { %v1456_v56 = vsub.f32 %v1424_v0, %v1440_v54  ;;  %v1615_v58 = vadd.f32 1e-05, %v1471_v6  ;;  %v8842_v54 = vrot.slane %v1977_v2, %v8812_v26  ;;  %v8847_v0 = vld [vmem:[%s10780_s2 + $0x8] sm:$0x77]  ;;  %v1486_v2 = vsub.f32 %v7879_v12, %v8795_v14 }
 0x21d   : > { %v1441_v47 = vmul.f32 %v8819_v24, %v8819_v24  ;;  %v1502_v12 = vsub.f32 %v11123_v39, %v8803_v17 }
 0x21e   : > { %v1034_v1 = vpop.xlane.xlu0 %1033  ;;  %v1472_v48 = vmax.f32 %v1456_v56, 0.0  ;;  %v1297_v29 = vpop.xlane.xlu1 %1296  ;;  %7398 = vrsqrt.f32 %v1615_v58 }
 0x21f   : > { %v8828_v61 = vmul.f32 0.0009765625, %v1034_v1  ;;  %v1425_v21 = vmul.f32 0.0009765625, %v1297_v29  ;;  %v11119_v29 = vld [vmem:[#allocation16_spill] sm:$0xff] }
 0x220   : > { %v1616_v41 = vadd.f32 1e-05, %v1472_v48 }
 0x221   : > { %v1457_v63 = vsub.f32 %v1425_v21, %v1441_v47  ;;  %v1442_v10 = vmul.f32 %v8828_v61, %v8828_v61  ;;  %v1495_v47 = vsub.f32 %v11119_v29, %v8799_v55  ;;  %v11120_v21 = vld [vmem:[#allocation15_spill] sm:$0xff] }
 0x222   : > { %v1306_v60 = vpop.xlane.xlu0 %1305  ;;  %7400 = vrsqrt.f32 %v1616_v41  ;;  %v1494_v41 = vsub.f32 %v11120_v21, %v8799_v55 }
 0x223   : > { %v1043_v56 = vpop.xlane.xlu1 %1042  ;;  %v1426_v8 = vmul.f32 0.0009765625, %v1306_v60  ;;  %v1473_v58 = vmax.f32 %v1457_v63, 0.0  ;;  %v11121_v60 = vld [vmem:[#allocation19_spill] sm:$0xff] }
 0x224   : > { %v8855_v1 = vmul.f32 0.0009765625, %v1043_v56  ;;  %v1503_v6 = vsub.f32 %v11121_v60, %v8803_v17  ;;  %v8867_v57 = vpop.eup %7396 }
 0x225   : > { %v1458_v48 = vsub.f32 %v1426_v8, %v1442_v10  ;;  %v1617_v63 = vadd.f32 1e-05, %v1473_v58  ;;  %v11124_v10 = vld [vmem:[#allocation22_spill] sm:$0xff]  ;;  %v1647_v21 = vmul.f32 %v8867_v57, %v1487_v53  ;;  %v1646_v60 = vmul.f32 %v8867_v57, %v1486_v2 }
 0x226   : > { %v1443_v58 = vmul.f32 %v8855_v1, %v8855_v1 }
 0x227   : > { %v1052_v56 = vpop.xlane.xlu0 %1051  ;;  %v1474_v29 = vmax.f32 %v1458_v48, 0.0  ;;  %v1315_v23 = vpop.xlane.xlu1 %1314  ;;  %7402 = vrsqrt.f32 %v1617_v63  ;;  %v1847_v37 = vmul.f32 %v8833_v25, %v1647_v21  ;;  %v1846_v48 = vmul.f32 %v8836_v16, %v1646_v60 }
 0x228   : > { %v8875_v49 = vmul.f32 0.0009765625, %v1052_v56  ;;  %v1427_v15 = vmul.f32 0.0009765625, %v1315_v23  ;;  %v11126_v56 = vld [vmem:[#allocation25_spill] sm:$0xff]  ;;  %v8887_v50 = vpop.eup %7398  ;;  %v11127_v23 = vld [vmem:[#allocation31_spill] sm:$0xff] }
 0x229   : > { %v1618_v39 = vadd.f32 1e-05, %v1474_v29  ;;  %v1655_v60 = vmul.f32 %v8887_v50, %v1495_v47  ;;  %v2047_v8 = vadd.f32 %v8839_v45, %v1847_v37 }
 0x22a   : > { %v1459_v53 = vsub.f32 %v1427_v15, %v1443_v58  ;;  %v1444_v2 = vmul.f32 %v8875_v49, %v8875_v49  ;;  %v1654_v15 = vmul.f32 %v8887_v50, %v1494_v41  ;;  %v11129_v58 = vld [vmem:[#allocation36_spill] sm:$0xff] }
 0x22b   : > { %v1324_v63 = vpop.xlane.xlu0 %1323  ;;  %7404 = vrsqrt.f32 %v1618_v39  ;;  %v1855_v29 = vmul.f32 %v8833_v25, %v1655_v60  ;;  %v2046_v39 = vadd.f32 %v8842_v54, %v1846_v48 }
 0x22c   : > { %v1061_v21 = vpop.xlane.xlu1 %1060  ;;  %v1428_v62 = vmul.f32 0.0009765625, %v1324_v63  ;;  %v1475_v7 = vmax.f32 %v1459_v53, 0.0  ;;  %v8902_v3 = vpop.eup %7400  ;;  %v11130_v63 = vld [vmem:[#allocation35_spill] sm:$0xff]  ;;  %v1854_v41 = vmul.f32 %v8836_v16, %v1654_v15 }
 0x22d   : > { %v8897_v46 = vmul.f32 0.0009765625, %v1061_v21  ;;  %v2175_v21 = vmax.f32 %v2047_v8, 0.0  ;;  %v2174_v5 = vmax.f32 %v2046_v39, 0.0  ;;  %v11131_v39 = vsub.f32 %v11122_v34, %v8819_v24 }
 0x22e   : > { %v1460_v28 = vsub.f32 %v1428_v62, %v1444_v2  ;;  %v1619_v22 = vadd.f32 1e-05, %v1475_v7  ;;  %v2055_v62 = vadd.f32 %v8839_v45, %v1855_v29  ;;  %v1663_v2 = vmul.f32 %v8902_v3, %v1503_v6 }
 0x22f   : > { %v1445_v37 = vmul.f32 %v8897_v46, %v8897_v46  ;;  %v2054_v60 = vadd.f32 %v8842_v54, %v1854_v41  ;;  %v1662_v7 = vmul.f32 %v8902_v3, %v1502_v12  ;;  %v7076_v12 = vld [vmem:[#allocation5 + $0x200] ss:$16 sps:$4 sm:$0xff]   ;;  %v11132_v34 = vsub.f32 %v11124_v10, %v8819_v24 }
 0x230   : > { %v1070_v53 = vpop.xlane.xlu0 %1069  ;;  %v1476_v36 = vmax.f32 %v1460_v28, 0.0  ;;  %7406 = vrsqrt.f32 %v1619_v22  ;;  %v2183_v9 = vmax.f32 %v2055_v62, 0.0  ;;  %v1863_v8 = vmul.f32 %v8833_v25, %v1663_v2  ;;  %v7082_v10 = vld [vmem:[#allocation5 + $0x220] ss:$16 sps:$4 sm:$0xff]  }
 0x231   : > { %v1333_v18 = vpop.xlane.xlu1 %1332  ;;  %v8911_v19 = vmul.f32 0.0009765625, %v1070_v53  ;;  %v8918_v15 = vpop.eup %7402  ;;  %v2182_v11 = vmax.f32 %v2054_v60, 0.0  ;;  %v1862_v22 = vmul.f32 %v8836_v16, %v1662_v7 }
 0x232   : > { %v1429_v48 = vmul.f32 0.0009765625, %v1333_v18  ;;  %v1620_v47 = vadd.f32 1e-05, %v1476_v36  ;;  %v2303_v6 = vpack.c.bf16 %v2183_v9, %v2175_v21  ;;  %v7079_v36 = vld [vmem:[#allocation5 + $0x208] ss:$16 sps:$4 sm:$0xff]   ;;  %v1671_v62 = vmul.f32 %v8918_v15, %v11131_v39 }
 0x233   : > { %v1446_v53 = vmul.f32 %v8911_v19, %v8911_v19  ;;  %v2063_v60 = vadd.f32 %v8839_v45, %v1863_v8  ;;  %v1670_v21 = vmul.f32 %v8918_v15, %v11132_v34  ;;  %v2062_v8 = vadd.f32 %v8842_v54, %v1862_v22  ;;  %v7085_v39 = vld [vmem:[#allocation5 + $0x228] ss:$16 sps:$4 sm:$0xff]   ;;  %v7090_v34 = vld [vmem:[#allocation5 + $0x244] ss:$16 sps:$4 sm:$0xff]  }
 0x234   : > { %v1461_v28 = vsub.f32 %v1429_v48, %v1445_v37  ;;  %v1342_v29 = vpop.xlane.xlu0 %1341  ;;  %7408 = vrsqrt.f32 %v1620_v47  ;;  %v2302_v48 = vpack.c.bf16 %v2182_v11, %v2174_v5  ;;  %3972 = vmatprep.mubr.bf16.mxu0 %v2303_v6  ;;  %4424 = vmatprep.mubr.bf16.mxu1 %v2303_v6  ;;  %v1871_v47 = vmul.f32 %v8833_v25, %v1671_v62 }
 0x235   : > { %v1079_v18 = vpop.xlane.xlu1 %1078  ;;  %v1430_v41 = vmul.f32 0.0009765625, %v1342_v29  ;;  %v8930_v7 = vpop.eup %7404  ;;  %v11133_v29 = vld [vmem:[#allocation38_spill] sm:$0xff]  ;;  %v2191_v22 = vmax.f32 %v2063_v60, 0.0  ;;  %v2190_v27 = vmax.f32 %v2062_v8, 0.0 }
 0x236   : > { %v1477_v2 = vmax.f32 %v1461_v28, 0.0  ;;  %v8927_v37 = vmul.f32 0.0009765625, %v1079_v18  ;;  %3973 = vmatmul.mubr.bf16.vlgmr.msra.gmra.mrb[64].mxu0 %v2302_v48  ;;  %4425 = vmatmul.mubr.bf16.vlgmr.msra.gmra.mrb[64].mxu1 %v2302_v48  ;;  %v2071_v62 = vadd.f32 %v8839_v45, %v1871_v47 }
 0x237   : > { %v1462_v9 = vsub.f32 %v1430_v41, %v1446_v53  ;;  %4054 = vmatpush1.bf16.msra.mxu0 %v7076_v12  ;;  %4506 = vmatpush1.bf16.msra.mxu1 %v7079_v36 }
 0x238   : > { %v1621_v28 = vadd.f32 1e-05, %v1477_v2  ;;  %v1447_v5 = vmul.f32 %v8927_v37, %v8927_v37  ;;  %v1088_v11 = vpop.xlane.xlu0 %1087  ;;  %v1870_v2 = vmul.f32 %v8836_v16, %v1670_v21  ;;  %4055 = vmatprep.subr.bf16.mxu0 %v7084_v59  ;;  %4507 = vmatprep.subr.bf16.mxu1 %v7087_v20 }
 0x239   : > { %v1478_v53 = vmax.f32 %v1462_v9, 0.0  ;;  %v8942_v41 = vmul.f32 0.0009765625, %v1088_v11  ;;  %v11134_v9 = vsub.f32 %v11125_v13, %v8828_v61  ;;  %v2199_v11 = vmax.f32 %v2071_v62, 0.0 }
 0x23a   : > { %v1351_v6 = vpop.xlane.xlu1 %1350  ;;  %7410 = vrsqrt.f32 %v1621_v28  ;;  %v2070_v18 = vadd.f32 %v8842_v54, %v1870_v2  ;;  %v8951_v47 = vpop.eup %7406  ;;  %v11135_v28 = vsub.f32 %v11126_v56, %v8828_v61  ;;  %v11136_v2 = vld [vmem:[#allocation37_spill] sm:$0xff]  ;;  %v11137_v56 = vsub.f32 %v11127_v23, %v8855_v1 }
 0x23b   : > { %v1431_v48 = vmul.f32 0.0009765625, %v1351_v6  ;;  %v1679_v12 = vmul.f32 %v8930_v7, %v11134_v9  ;;  %v1622_v36 = vadd.f32 1e-05, %v1478_v53  ;;  %v1448_v59 = vmul.f32 %v8942_v41, %v8942_v41  ;;  %4056 = vmatpush1.bf16.msra.mxu0 %v7082_v10  ;;  %4508 = vmatpush1.bf16.msra.mxu1 %v7085_v39 }
 0x23c   : > { %v1678_v13 = vmul.f32 %v8930_v7, %v11135_v28  ;;  %v2311_v53 = vpack.c.bf16 %v2199_v11, %v2191_v22  ;;  %v2198_v8 = vmax.f32 %v2070_v18, 0.0  ;;  %4057 = vmatprep.subr.bf16.mxu0 %v7090_v34  ;;  %4509 = vmatprep.subr.bf16.mxu1 %v7093_v43  ;;  %v1687_v28 = vmul.f32 %v8951_v47, %v11137_v56  ;;  %v7096_v11 = vld [vmem:[#allocation5 + $0x264] ss:$16 sps:$4 sm:$0xff]  }
 0x23d   : > { %v1463_v21 = vsub.f32 %v1431_v48, %v1447_v5  ;;  %v1360_v20 = vpop.xlane.xlu0 %1359  ;;  %v1879_v60 = vmul.f32 %v8833_v25, %v1679_v12  ;;  %v7091_v12 = vld [vmem:[#allocation5 + $0x248] ss:$16 sps:$4 sm:$0xff]   ;;  %v11138_v34 = vsub.f32 %v11128_v4, %v8855_v1  ;;  %7412 = vrsqrt.f32 %v1622_v36 }
 0x23e   : > { %v1097_v6 = vpop.xlane.xlu1 %1096  ;;  %v1432_v62 = vmul.f32 0.0009765625, %v1360_v20  ;;  %v8969_v39 = vpop.eup %7408  ;;  %3982 = vmatprep.mubr.bf16.mxu0 %v2311_v53  ;;  %4434 = vmatprep.mubr.bf16.mxu1 %v2311_v53  ;;  %v2310_v22 = vpack.c.bf16 %v2198_v8, %v2190_v27  ;;  %v7094_v53 = vld [vmem:[#allocation5 + $0x260] ss:$16 sps:$4 sm:$0xff]   ;;  %v7097_v8 = vld [vmem:[#allocation5 + $0x268] ss:$16 sps:$4 sm:$0xff]  }
 0x23f   : > { %v1479_v48 = vmax.f32 %v1463_v21, 0.0  ;;  %v8962_v9 = vmul.f32 0.0009765625, %v1097_v6  ;;  %v2079_v10 = vadd.f32 %v8839_v45, %v1879_v60  ;;  %v7099_v21 = vld [vmem:[#allocation5 + $0x26c] ss:$16 sps:$4 sm:$0xff]   ;;  %v1686_v43 = vmul.f32 %v8951_v47, %v11138_v34  ;;  %4058 = vmatpush1.bf16.msra.mxu0 %v7088_v33  ;;  %4510 = vmatpush1.bf16.msra.mxu1 %v7091_v12  ;;  %v7102_v34 = vld [vmem:[#allocation5 + $0x284] ss:$16 sps:$4 sm:$0xff]  }
 0x240   : > { %v1464_v18 = vsub.f32 %v1432_v62, %v1448_v59  ;;  %v1887_v60 = vmul.f32 %v8833_v25, %v1687_v28  ;;  %3983 = vmatmul.mubr.bf16.gmra.mrb[68].mxu0 %v2310_v22  ;;  %4435 = vmatmul.mubr.bf16.gmra.mrb[68].mxu1 %v2310_v22  ;;  %v1878_v62 = vmul.f32 %v8836_v16, %v1678_v13 }
 0x241   : > { %v1623_v20 = vadd.f32 1e-05, %v1479_v48  ;;  %v1449_v23 = vmul.f32 %v8962_v9, %v8962_v9  ;;  %v1106_v6 = vpop.xlane.xlu0 %1105  ;;  %v1886_v4 = vmul.f32 %v8836_v16, %v1686_v43  ;;  %v11139_v28 = vsub.f32 %v11129_v58, %v8875_v49  ;;  %4059 = vmatprep.subr.bf16.mxu0 %v7096_v11  ;;  %4511 = vmatprep.subr.bf16.mxu1 %v7099_v21 }
 0x242   : > { %v1480_v56 = vmax.f32 %v1464_v18, 0.0  ;;  %v8978_v27 = vmul.f32 0.0009765625, %v1106_v6  ;;  %v2087_v48 = vadd.f32 %v8839_v45, %v1887_v60  ;;  %v2207_v6 = vmax.f32 %v2079_v10, 0.0 }
 0x243   : > { %v1369_v59 = vpop.xlane.xlu1 %1368  ;;  %7414 = vrsqrt.f32 %v1623_v20  ;;  %v1695_v18 = vmul.f32 %v8969_v39, %v11139_v28  ;;  %v2078_v13 = vadd.f32 %v8842_v54, %v1878_v62  ;;  %v2086_v43 = vadd.f32 %v8842_v54, %v1886_v4  ;;  %v7105_v20 = vld [vmem:[#allocation5 + $0x28c] ss:$16 sps:$4 sm:$0xff]   ;;  %4060 = vmatpush1.bf16.msra.mxu0 %v7094_v53  ;;  %4512 = vmatpush1.bf16.msra.mxu1 %v7097_v8 }
 0x244   : > { %v1433_v36 = vmul.f32 0.0009765625, %v1369_v59  ;;  %v1624_v22 = vadd.f32 1e-05, %v1480_v56  ;;  %v8989_v33 = vpop.eup %7410  ;;  %v2215_v59 = vmax.f32 %v2087_v48, 0.0  ;;  %v1450_v60 = vmul.f32 %v8978_v27, %v8978_v27  ;;  %v7103_v48 = vld [vmem:[#allocation5 + $0x288] ss:$16 sps:$4 sm:$0xff]   ;;  %4061 = vmatprep.subr.bf16.mxu0 %v7102_v34  ;;  %4513 = vmatprep.subr.bf16.mxu1 %v7105_v20 }
 0x245   : > { %v1895_v58 = vmul.f32 %v8833_v25, %v1695_v18  ;;  %v2206_v11 = vmax.f32 %v2078_v13, 0.0  ;;  %v2214_v21 = vmax.f32 %v2086_v43, 0.0  ;;  %v11140_v10 = vsub.f32 %v11130_v63, %v8875_v49  ;;  %v7108_v63 = vld [vmem:[#allocation5 + $0x2a4] ss:$16 sps:$4 sm:$0xff]  }
 0x246   : > { %v1465_v12 = vsub.f32 %v1433_v36, %v1449_v23  ;;  %v1378_v5 = vpop.xlane.xlu0 %1377  ;;  %v2319_v23 = vpack.c.bf16 %v2215_v59, %v2207_v6  ;;  %v7100_v36 = vld [vmem:[#allocation5 + $0x280] ss:$16 sps:$4 sm:$0xff]   ;;  %v11141_v18 = vsub.f32 %v11133_v29, %v8897_v46  ;;  %7416 = vrsqrt.f32 %v1624_v22 }
 0x247   : > { %v1115_v28 = vpop.xlane.xlu1 %1114  ;;  %v1434_v56 = vmul.f32 0.0009765625, %v1378_v5  ;;  %v1694_v62 = vmul.f32 %v8969_v39, %v11140_v10  ;;  %v2318_v43 = vpack.c.bf16 %v2214_v21, %v2206_v11  ;;  %v7111_v10 = vld [vmem:[#allocation5 + $0x2ac] ss:$16 sps:$4 sm:$0xff]   ;;  %v11142_v22 = vsub.f32 %v11136_v2, %v8897_v46  ;;  %4062 = vmatpush1.bf16.msra.mxu0 %v7100_v36  ;;  %4514 = vmatpush1.bf16.msra.mxu1 %v7103_v48  ;;  %v7106_v21 = vld [vmem:[#allocation5 + $0x2a0] ss:$16 sps:$4 sm:$0xff]  }
 0x248   : > { %v1481_v4 = vmax.f32 %v1465_v12, 0.0  ;;  %v8998_v44 = vmul.f32 0.0009765625, %v1115_v28  ;;  %v1703_v5 = vmul.f32 %v8989_v33, %v11141_v18  ;;  %v2095_v12 = vadd.f32 %v8839_v45, %v1895_v58  ;;  %3992 = vmatprep.mubr.bf16.mxu0 %v2319_v23  ;;  %4444 = vmatprep.mubr.bf16.mxu1 %v2319_v23 }
 0x249   : > { %v1466_v13 = vsub.f32 %v1434_v56, %v1450_v60  ;;  %v1702_v6 = vmul.f32 %v8989_v33, %v11142_v22  ;;  %3993 = vmatmul.mubr.bf16.gmra.mrb[72].mxu0 %v2318_v43  ;;  %4445 = vmatmul.mubr.bf16.gmra.mrb[72].mxu1 %v2318_v43  ;;  %v1894_v58 = vmul.f32 %v8836_v16, %v1694_v62  ;;  %v9015_v56 = vpop.eup %7412  ;;  %v7117_v43 = vld [vmem:[#allocation5 + $0x2cc] ss:$16 sps:$4 sm:$0xff]  }
 0x24a   : > { %v1625_v28 = vadd.f32 1e-05, %v1481_v4  ;;  %v1451_v53 = vmul.f32 %v8998_v44, %v8998_v44  ;;  %v1124_v8 = vpop.xlane.xlu0 %1123  ;;  %v1903_v29 = vmul.f32 %v8833_v25, %v1703_v5  ;;  %v2223_v60 = vmax.f32 %v2095_v12, 0.0  ;;  %v7109_v4 = vld [vmem:[#allocation5 + $0x2a8] ss:$16 sps:$4 sm:$0xff]   ;;  %4063 = vmatprep.subr.bf16.mxu0 %v7108_v63  ;;  %4515 = vmatprep.subr.bf16.mxu1 %v7111_v10  ;;  %v11145_v63 = vld [vmem:[#allocation46_spill] sm:$0xff] }
 0x24b   : > { %v1482_v34 = vmax.f32 %v1466_v13, 0.0  ;;  %v1387_v20 = vpop.xlane.xlu1 %1386  ;;  %v9012_v59 = vmul.f32 0.0009765625, %v1124_v8  ;;  %v1902_v23 = vmul.f32 %v8836_v16, %v1702_v6  ;;  %v2094_v62 = vadd.f32 %v8842_v54, %v1894_v58  ;;  %v7114_v13 = vld [vmem:[#allocation5 + $0x2c4] ss:$16 sps:$4 sm:$0xff]   ;;  %v11144_v12 = vld [vmem:[#allocation43_spill] sm:$0xff]  ;;  %4064 = vmatpush1.bf16.msra.mxu0 %v7106_v21  ;;  %4516 = vmatpush1.bf16.msra.mxu1 %v7109_v4  ;;  %v11146_v21 = vld [vmem:[#allocation41_spill] sm:$0xff] }
 0x24c   : > { %7418 = vrsqrt.f32 %v1625_v28  ;;  %v1435_v11 = vmul.f32 0.0009765625, %v1387_v20  ;;  %v2103_v2 = vadd.f32 %v8839_v45, %v1903_v29  ;;  %v1551_v36 = vsub.f32 %v11144_v12, %v8911_v19  ;;  %4065 = vmatprep.subr.bf16.mxu0 %v7114_v13  ;;  %4517 = vmatprep.subr.bf16.mxu1 %v7117_v43 }
 0x24d   : > { %11143 = vst [vmem:[#allocation16_spill] sm:$0xff] %v9012_v59  ;;  %v1626_v18 = vadd.f32 1e-05, %v1482_v34  ;;  %v1452_v5 = vmul.f32 %v9012_v59, %v9012_v59  ;;  %v9024_v48 = vpop.eup %7414  ;;  %v2102_v22 = vadd.f32 %v8842_v54, %v1902_v23  ;;  %v1559_v10 = vsub.f32 %v11145_v63, %v8927_v37  ;;  %v7115_v23 = vld [vmem:[#allocation5 + $0x2c8] ss:$16 sps:$4 sm:$0xff]  }
 0x24e   : > { %v1467_v28 = vsub.f32 %v1435_v11, %v1451_v53  ;;  %v2231_v8 = vmax.f32 %v2103_v2, 0.0  ;;  %v1396_v29 = vpop.xlane.xlu0 %1395  ;;  %v2222_v20 = vmax.f32 %v2094_v62, 0.0  ;;  %v1711_v58 = vmul.f32 %v9015_v56, %v1551_v36  ;;  %v7112_v2 = vld [vmem:[#allocation5 + $0x2c0] ss:$16 sps:$4 sm:$0xff]   ;;  %v7120_v36 = vld [vmem:[#allocation5 + $0x2e4] ss:$16 sps:$4 sm:$0xff]  }
 0x24f   : > { %7420 = vrsqrt.f32 %v1626_v18  ;;  %v1133_v6 = vpop.xlane.xlu1 %1132  ;;  %v1436_v34 = vmul.f32 0.0009765625, %v1396_v29  ;;  %v2230_v53 = vmax.f32 %v2102_v22, 0.0  ;;  %v1719_v63 = vmul.f32 %v9024_v48, %v1559_v10  ;;  %4066 = vmatpush1.bf16.msra.mxu0 %v7112_v2  ;;  %4518 = vmatpush1.bf16.msra.mxu1 %v7115_v23  ;;  %v7129_v2 = vld [vmem:[#allocation5 + $0x30c] ss:$16 sps:$4 sm:$0xff]  }
 0x250   : > { %v1483_v35 = vmax.f32 %v1467_v28, 0.0  ;;  %v9030_v31 = vmul.f32 0.0009765625, %v1133_v6  ;;  %v2327_v12 = vpack.c.bf16 %v2231_v8, %v2223_v60  ;;  %v1911_v18 = vmul.f32 %v8833_v25, %v1711_v58  ;;  %v7123_v28 = vld [vmem:[#allocation5 + $0x2ec] ss:$16 sps:$4 sm:$0xff]   ;;  %v9038_v8 = vpop.eup %7416  ;;  %4067 = vmatprep.subr.bf16.mxu0 %v7120_v36 }
 0x251   : > { %v1468_v11 = vsub.f32 %v1436_v34, %v1452_v5  ;;  %v2326_v62 = vpack.c.bf16 %v2230_v53, %v2222_v20  ;;  %v1550_v4 = vsub.f32 %v11146_v21, %v8911_v19  ;;  %v11147_v60 = vld [vmem:[#allocation21_spill] sm:$0xff]  ;;  %v1919_v22 = vmul.f32 %v8833_v25, %v1719_v63  ;;  %v7118_v53 = vld [vmem:[#allocation5 + $0x2e0] ss:$16 sps:$4 sm:$0xff]   ;;  %4519 = vmatprep.subr.bf16.mxu1 %v7123_v28  ;;  %v11151_v23 = vld [vmem:[#allocation55_spill] sm:$0xff] }
 0x252   : > { %v1627_v29 = vadd.f32 1e-05, %v1483_v35  ;;  %4002 = vmatprep.mubr.bf16.mxu0 %v2327_v12  ;;  %4454 = vmatprep.mubr.bf16.mxu1 %v2327_v12  ;;  %v2111_v10 = vadd.f32 %v8839_v45, %v1911_v18  ;;  %v11148_v35 = vld [vmem:[#allocation44_spill] sm:$0xff]  ;;  %v1453_v34 = vmul.f32 %v9030_v31, %v9030_v31  ;;  %v1575_v5 = vsub.f32 %v11151_v23, %v8962_v9  ;;  %v11152_v28 = vld [vmem:[#allocation51_spill] sm:$0xff] }
 0x253   : > { %v1484_v13 = vmax.f32 %v1468_v11, 0.0  ;;  %v1405_v43 = vpop.xlane.xlu1 %1404  ;;  %v1558_v6 = vsub.f32 %v11148_v35, %v8927_v37  ;;  %4003 = vmatmul.mubr.bf16.gmra.mrb[76].mxu0 %v2326_v62  ;;  %4455 = vmatmul.mubr.bf16.gmra.mrb[76].mxu1 %v2326_v62  ;;  %v1710_v58 = vmul.f32 %v9015_v56, %v1550_v4  ;;  %v7121_v11 = vld [vmem:[#allocation5 + $0x2e8] ss:$16 sps:$4 sm:$0xff]   ;;  %v2119_v63 = vadd.f32 %v8839_v45, %v1919_v22  ;;  %v11149_v21 = vld [vmem:[#allocation52_spill] sm:$0xff] }
 0x254   : > { %7422 = vrsqrt.f32 %v1627_v29  ;;  %v1437_v20 = vmul.f32 0.0009765625, %v1405_v43  ;;  %v1567_v29 = vsub.f32 %v11149_v21, %v8942_v41  ;;  %v2239_v43 = vmax.f32 %v2111_v10, 0.0  ;;  %4068 = vmatpush1.bf16.msra.mxu0 %v7118_v53  ;;  %4520 = vmatpush1.bf16.msra.mxu1 %v7121_v11 }
 0x255   : > { %v1628_v12 = vadd.f32 1e-05, %v1484_v13  ;;  %v1718_v18 = vmul.f32 %v9024_v48, %v1558_v6  ;;  %v1910_v4 = vmul.f32 %v8836_v16, %v1710_v58  ;;  %v7126_v13 = vld [vmem:[#allocation5 + $0x304] ss:$16 sps:$4 sm:$0xff]   ;;  %v2247_v22 = vmax.f32 %v2119_v63, 0.0  ;;  %4521 = vmatprep.subr.bf16.mxu1 %v7129_v2 }
 0x256   : > { %v9051_v35 = vpop.eup %7418  ;;  %v1469_v62 = vsub.f32 %v1437_v20, %v1453_v34  ;;  %v1727_v30 = vmul.f32 %v9038_v8, %v1567_v29  ;;  %v1566_v10 = vsub.f32 %v11152_v28, %v8942_v41  ;;  %v7127_v63 = vld [vmem:[#allocation5 + $0x308] ss:$16 sps:$4 sm:$0xff]   ;;  %4069 = vmatprep.subr.bf16.mxu0 %v7126_v13  ;;  %v11154_v28 = vld [vmem:[#allocation54_spill] sm:$0xff]  ;;  %v11156_v2 = vld [vmem:[#allocation64_spill] sm:$0xff] }
 0x257   : > { %11150 = vst [vmem:[#allocation15_spill] sm:$0xff] %v9051_v35  ;;  %7424 = vrsqrt.f32 %v1628_v12  ;;  %v1918_v6 = vmul.f32 %v8836_v16, %v1718_v18  ;;  %v2110_v52 = vadd.f32 %v8842_v54, %v1910_v4  ;;  %v1735_v36 = vmul.f32 %v9051_v35, %v1575_v5  ;;  %v7124_v12 = vld [vmem:[#allocation5 + $0x300] ss:$16 sps:$4 sm:$0xff]   ;;  %v7132_v18 = vld [vmem:[#allocation5 + $0x324] ss:$16 sps:$4 sm:$0xff]  }
 0x258   : > { %v1485_v21 = vmax.f32 %v1469_v62, 0.0  ;;  %v2335_v20 = vpack.c.bf16 %v2247_v22, %v2239_v43  ;;  %v1927_v29 = vmul.f32 %v8833_v25, %v1727_v30  ;;  %v7135_v5 = vld [vmem:[#allocation5 + $0x32c] ss:$16 sps:$4 sm:$0xff]   ;;  %v1574_v51 = vsub.f32 %v11154_v28, %v8962_v9  ;;  %v11155_v22 = vld [vmem:[#allocation60_spill] sm:$0xff]  ;;  %4070 = vmatpush1.bf16.msra.mxu0 %v7124_v12  ;;  %4522 = vmatpush1.bf16.msra.mxu1 %v7127_v63  ;;  %v11159_v12 = vld [vmem:[#allocation62_spill] sm:$0xff] }
 0x259   : > { %v9062_v34 = vpop.eup %7420  ;;  %v2118_v58 = vadd.f32 %v8842_v54, %v1918_v6  ;;  %v2238_v23 = vmax.f32 %v2110_v52, 0.0  ;;  %v1935_v4 = vmul.f32 %v8833_v25, %v1735_v36  ;;  %v1726_v43 = vmul.f32 %v9038_v8, %v1566_v10  ;;  %v7130_v36 = vld [vmem:[#allocation5 + $0x320] ss:$16 sps:$4 sm:$0xff]   ;;  %4071 = vmatprep.subr.bf16.mxu0 %v7132_v18  ;;  %4523 = vmatprep.subr.bf16.mxu1 %v7135_v5 }
 0x25a   : > { %11153 = vst [vmem:[#allocation19_spill] sm:$0xff] %v9062_v34  ;;  %v1629_v62 = vadd.f32 1e-05, %v1485_v21  ;;  %4012 = vmatprep.mubr.bf16.mxu0 %v2335_v20  ;;  %4464 = vmatprep.mubr.bf16.mxu1 %v2335_v20  ;;  %v2127_v11 = vadd.f32 %v8839_v45, %v1927_v29  ;;  %v1583_v30 = vsub.f32 %v11155_v22, %v8978_v27  ;;  %v7133_v20 = vld [vmem:[#allocation5 + $0x328] ss:$16 sps:$4 sm:$0xff]  }
 0x25b   : > { %v2246_v53 = vmax.f32 %v2118_v58, 0.0  ;;  %v2135_v52 = vadd.f32 %v8839_v45, %v1935_v4  ;;  %v1734_v13 = vmul.f32 %v9051_v35, %v1574_v51  ;;  %v1591_v6 = vsub.f32 %v11156_v2, %v8998_v44  ;;  %v11158_v4 = vld [vmem:[#allocation58_spill] sm:$0xff] }
 0x25c   : > { %7426 = vrsqrt.f32 %v1629_v62  ;;  %v2255_v58 = vmax.f32 %v2127_v11, 0.0  ;;  %v1926_v29 = vmul.f32 %v8836_v16, %v1726_v43  ;;  %v1743_v10 = vmul.f32 %v9062_v34, %v1583_v30  ;;  %v7141_v11 = vld [vmem:[#allocation5 + $0x34c] ss:$16 sps:$4 sm:$0xff]   ;;  %4072 = vmatpush1.bf16.msra.mxu0 %v7130_v36  ;;  %4524 = vmatpush1.bf16.msra.mxu1 %v7133_v20 }
 0x25d   : > { %v2334_v21 = vpack.c.bf16 %v2246_v53, %v2238_v23  ;;  %v2263_v62 = vmax.f32 %v2135_v52, 0.0  ;;  %v1934_v51 = vmul.f32 %v8836_v16, %v1734_v13  ;;  %v1582_v22 = vsub.f32 %v11158_v4, %v8978_v27  ;;  %v7138_v53 = vld [vmem:[#allocation5 + $0x344] ss:$16 sps:$4 sm:$0xff]   ;;  %v7139_v4 = vld [vmem:[#allocation5 + $0x348] ss:$16 sps:$4 sm:$0xff]   ;;  %4525 = vmatprep.subr.bf16.mxu1 %v7141_v11 }
 0x25e   : > { %v9079_v28 = vpop.eup %7422  ;;  %v1590_v63 = vsub.f32 %v11159_v12, %v8998_v44  ;;  %v2126_v23 = vadd.f32 %v8842_v54, %v1926_v29  ;;  %v1943_v18 = vmul.f32 %v8833_v25, %v1743_v10  ;;  %4073 = vmatprep.subr.bf16.mxu0 %v7138_v53 }
 0x25f   : > { %11157 = vst [vmem:[#allocation23_spill] sm:$0xff] %v9079_v28  ;;  %4013 = vmatmul.mubr.bf16.gmra.mrb[80].mxu0 %v2334_v21  ;;  %4465 = vmatmul.mubr.bf16.gmra.mrb[80].mxu1 %v2334_v21  ;;  %v1751_v43 = vmul.f32 %v9079_v28, %v1591_v6  ;;  %v2343_v5 = vpack.c.bf16 %v2263_v62, %v2255_v58  ;;  %v7136_v21 = vld [vmem:[#allocation5 + $0x340] ss:$16 sps:$4 sm:$0xff]   ;;  %v7144_v62 = vld [vmem:[#allocation5 + $0x364] ss:$16 sps:$4 sm:$0xff]  }
 0x260   : > { %v2134_v30 = vadd.f32 %v8842_v54, %v1934_v51  ;;  %v1742_v52 = vmul.f32 %v9062_v34, %v1582_v22  ;;  %v1750_v13 = vmul.f32 %v9079_v28, %v1590_v63  ;;  %v2143_v12 = vadd.f32 %v8839_v45, %v1943_v18  ;;  %v7147_v51 = vld [vmem:[#allocation5 + $0x36c] ss:$16 sps:$4 sm:$0xff]   ;;  %4074 = vmatpush1.bf16.msra.mxu0 %v7136_v21 }
 0x261   : > { %v9092_v2 = vpop.eup %7424  ;;  %v1951_v29 = vmul.f32 %v8833_v25, %v1751_v43  ;;  %v1599_v6 = vsub.f32 %v8301_v38, %v9012_v59  ;;  %4022 = vmatprep.mubr.bf16.mxu0 %v2343_v5  ;;  %4474 = vmatprep.mubr.bf16.mxu1 %v2343_v5  ;;  %v2254_v58 = vmax.f32 %v2126_v23, 0.0  ;;  %v11160_v43 = vld [vmem:[#allocation67_spill] sm:$0xff] }
 0x262   : > { %v2262_v10 = vmax.f32 %v2134_v30, 0.0  ;;  %v1942_v22 = vmul.f32 %v8836_v16, %v1742_v52  ;;  %v1950_v36 = vmul.f32 %v8836_v16, %v1750_v13  ;;  %v1598_v18 = vsub.f32 %v11160_v43, %v9012_v59  ;;  %v11161_v5 = vld [vmem:[#allocation71_spill] sm:$0xff]  ;;  %4526 = vmatpush1.bf16.msra.mxu1 %v7139_v4  ;;  %v7142_v52 = vld [vmem:[#allocation5 + $0x360] ss:$16 sps:$4 sm:$0xff]   ;;  %4075 = vmatprep.subr.bf16.mxu0 %v7144_v62 }
 0x263   : > { %v2151_v20 = vadd.f32 %v8839_v45, %v1951_v29  ;;  %v1759_v63 = vmul.f32 %v9092_v2, %v1599_v6  ;;  %v2271_v34 = vmax.f32 %v2143_v12, 0.0  ;;  %v1607_v30 = vsub.f32 %v11161_v5, %v9030_v31  ;;  %v7145_v13 = vld [vmem:[#allocation5 + $0x368] ss:$16 sps:$4 sm:$0xff]   ;;  %4527 = vmatprep.subr.bf16.mxu1 %v7147_v51  ;;  %v7153_v43 = vld [vmem:[#allocation5 + $0x38c] ss:$16 sps:$4 sm:$0xff]  }
 0x264   : > { %v2342_v38 = vpack.c.bf16 %v2262_v10, %v2254_v58  ;;  %v2150_v23 = vadd.f32 %v8842_v54, %v1950_v36  ;;  %v2142_v11 = vadd.f32 %v8842_v54, %v1942_v22  ;;  %v1758_v6 = vmul.f32 %v9092_v2, %v1598_v18  ;;  %v11162_v12 = vld [vmem:[#allocation69_spill] sm:$0xff]  ;;  %4076 = vmatpush1.bf16.msra.mxu0 %v7142_v52 }
 0x265   : > { %v2279_v53 = vmax.f32 %v2151_v20, 0.0  ;;  %v1959_v29 = vmul.f32 %v8833_v25, %v1759_v63  ;;  %v1606_v58 = vsub.f32 %v11162_v12, %v9030_v31  ;;  %v11163_v10 = vld [vmem:[#allocation17_spill] sm:$0xff]  ;;  %v11164_v4 = vsub.f32 %v11147_v60, %v8799_v55  ;;  %v7150_v63 = vld [vmem:[#allocation5 + $0x384] ss:$16 sps:$4 sm:$0xff]  }
 0x266   : > { %v9110_v28 = vpop.eup %7426  ;;  %v1489_v21 = vsub.f32 %v11163_v10, %v8795_v14  ;;  %v2278_v20 = vmax.f32 %v2150_v23, 0.0  ;;  %v11165_v51 = vrot.slane %v8847_v0, %v8809_v42  ;;  %v1785_v23 = vrot.slane %v8847_v0, %v8806_v40  ;;  %4528 = vmatpush1.bf16.msra.mxu1 %v7145_v13  ;;  %v7151_v12 = vld [vmem:[#allocation5 + $0x388] ss:$16 sps:$4 sm:$0xff]   ;;  %4077 = vmatprep.subr.bf16.mxu0 %v7150_v63 }
 0x267   : > { %v1657_v36 = vmul.f32 %v8887_v50, %v11164_v4  ;;  %4023 = vmatmul.mubr.bf16.gmra.mrb[84].mxu0 %v2342_v38  ;;  %4475 = vmatmul.mubr.bf16.gmra.mrb[84].mxu1 %v2342_v38  ;;  %v2351_v22 = vpack.c.bf16 %v2279_v53, %v2271_v34  ;;  %v1767_v62 = vmul.f32 %v9110_v28, %v1607_v30  ;;  %v2270_v30 = vmax.f32 %v2142_v11, 0.0  ;;  %v7148_v53 = vld [vmem:[#allocation5 + $0x380] ss:$16 sps:$4 sm:$0xff]   ;;  %v7156_v4 = vld [vmem:[#allocation5 + $0x3a4] ss:$16 sps:$4 sm:$0xff]  }
 0x268   : > { %v9125_v18 = vrot.slane %v11165_v51, %v8806_v40  ;;  %v1766_v5 = vmul.f32 %v9110_v28, %v1606_v58  ;;  %v1649_v60 = vmul.f32 %v8867_v57, %v1489_v21  ;;  %v11166_v38 = vrot.slane %v8847_v0, %v8815_v32  ;;  %v7159_v51 = vld [vmem:[#allocation5 + $0x3ac] ss:$16 sps:$4 sm:$0xff]   ;;  %4529 = vmatprep.subr.bf16.mxu1 %v7153_v43  ;;  %v11167_v11 = vld [vmem:[#allocation20_spill] sm:$0xff] }
 0x269   : > { %v1967_v10 = vmul.f32 %v8833_v25, %v1767_v62  ;;  %v2159_v58 = vadd.f32 %v8839_v45, %v1959_v29  ;;  %v1958_v21 = vmul.f32 %v8836_v16, %v1758_v6  ;;  %4032 = vmatprep.mubr.bf16.mxu0 %v2351_v22  ;;  %4484 = vmatprep.mubr.bf16.mxu1 %v2351_v22  ;;  %v11168_v62 = vld [vmem:[#allocation14_spill] sm:$0xff] }
 0x26a   : > { %v9133_v34 = vrot.slane %v11166_v38, %v8812_v26  ;;  %v1966_v38 = vmul.f32 %v8836_v16, %v1766_v5  ;;  %v1857_v32 = vmul.f32 %v9125_v18, %v1657_v36  ;;  %v1985_v52 = vrot.slane %v8847_v0, %v8812_v26  ;;  %v11169_v36 = vld [vmem:[#allocation32_spill] sm:$0xff]  ;;  %4078 = vmatpush1.bf16.msra.mxu0 %v7148_v53 }
 0x26b   : > { %v2350_v13 = vpack.c.bf16 %v2278_v20, %v2270_v30  ;;  %v2167_v25 = vadd.f32 %v8839_v45, %v1967_v10  ;;  %v1496_v29 = vsub.f32 %v11167_v11, %v8799_v55  ;;  %v1849_v22 = vmul.f32 %v9125_v18, %v1649_v60  ;;  %4530 = vmatpush1.bf16.msra.mxu1 %v7151_v12  ;;  %v7154_v0 = vld [vmem:[#allocation5 + $0x3a0] ss:$16 sps:$4 sm:$0xff]   ;;  %v7157_v20 = vld [vmem:[#allocation5 + $0x3a8] ss:$16 sps:$4 sm:$0xff]  }
 0x26c   : > { %v2166_v6 = vadd.f32 %v8842_v54, %v1966_v38  ;;  %v1488_v16 = vsub.f32 %v11168_v62, %v8795_v14  ;;  %v1513_v5 = vsub.f32 %v11169_v36, %v8819_v24  ;;  %v2287_v63 = vmax.f32 %v2159_v58, 0.0  ;;  %4079 = vmatprep.subr.bf16.mxu0 %v7156_v4  ;;  %4531 = vmatprep.subr.bf16.mxu1 %v7159_v51  ;;  %v11170_v10 = vld [vmem:[#allocation28_spill] sm:$0xff]  ;;  %v7165_v58 = vld [vmem:[#allocation5 + $0x3cc] ss:$16 sps:$4 sm:$0xff]  }
 0x26d   : > { %v2295_v43 = vmax.f32 %v2167_v25, 0.0  ;;  %v2158_v45 = vadd.f32 %v8842_v54, %v1958_v21  ;;  %v1656_v30 = vmul.f32 %v8887_v50, %v1496_v29  ;;  %v2057_v60 = vadd.f32 %v9133_v34, %v1857_v32  ;;  %v7162_v62 = vld [vmem:[#allocation5 + $0x3c4] ss:$16 sps:$4 sm:$0xff]   ;;  %v7160_v51 = vld [vmem:[#allocation5 + $0x3c0] ss:$16 sps:$4 sm:$0xff]  }
 0x26e   : > { %v1505_v38 = vsub.f32 %v11170_v10, %v8803_v17  ;;  %v1673_v11 = vmul.f32 %v8918_v15, %v1513_v5  ;;  %v2294_v12 = vmax.f32 %v2166_v6, 0.0  ;;  %v1648_v25 = vmul.f32 %v8867_v57, %v1488_v16  ;;  %4080 = vmatpush1.bf16.msra.mxu0 %v7154_v0  ;;  %v7163_v29 = vld [vmem:[#allocation5 + $0x3c8] ss:$16 sps:$4 sm:$0xff]   ;;  %v7168_v36 = vld [vmem:[#allocation5 + $0x3e4] ss:$16 sps:$4 sm:$0xff]  }
 0x26f   : > { %4033 = vmatmul.mubr.bf16.gmra.mrb[88].mxu0 %v2350_v13  ;;  %4485 = vmatmul.mubr.bf16.gmra.mrb[88].mxu1 %v2350_v13  ;;  %v2359_v53 = vpack.c.bf16 %v2295_v43, %v2287_v63  ;;  %v9161_v54 = vrot.slane %v1785_v23, %v8806_v40  ;;  %v2049_v21 = vadd.f32 %v9133_v34, %v1849_v22  ;;  %v2286_v4 = vmax.f32 %v2158_v45, 0.0  ;;  %v7171_v5 = vld [vmem:[#allocation5 + $0x3ec] ss:$16 sps:$4 sm:$0xff]   ;;  %v11172_v43 = vld [vmem:[#allocation24_spill] sm:$0xff] }
 0x270   : > { %v1665_v32 = vmul.f32 %v8902_v3, %v1505_v38  ;;  %4532 = vmatpush1.bf16.msra.mxu1 %v7157_v20  ;;  %v2185_v6 = vmax.f32 %v2057_v60, 0.0  ;;  %v9167_v16 = vrot.slane %v1985_v52, %v8812_v26  ;;  %v1873_v23 = vmul.f32 %v9125_v18, %v1673_v11  ;;  %v11171_v22 = vld [vmem:[#allocation27_spill] sm:$0xff]  ;;  %4081 = vmatprep.subr.bf16.mxu0 %v7162_v62  ;;  %v7166_v11 = vld [vmem:[#allocation5 + $0x3e0] ss:$16 sps:$4 sm:$0xff]  }
 0x271   : > { %v1856_v13 = vmul.f32 %v9161_v54, %v1656_v30  ;;  %4042 = vmatprep.mubr.bf16.mxu0 %v2359_v53  ;;  %4494 = vmatprep.mubr.bf16.mxu1 %v2359_v53  ;;  %v1512_v63 = vsub.f32 %v11171_v22, %v8819_v24  ;;  %v2358_v0 = vpack.c.bf16 %v2294_v12, %v2286_v4  ;;  %v2177_v30 = vmax.f32 %v2049_v21, 0.0  ;;  %v11173_v52 = vld [vmem:[#allocation39_spill] sm:$0xff]  ;;  %v7174_v21 = vld [vmem:[#allocation5 + $0x404] ss:$16 sps:$4 sm:$0xff]  }
 0x272   : > { %4533 = vmatprep.subr.bf16.mxu1 %v7165_v58  ;;  %v1848_v20 = vmul.f32 %v9161_v54, %v1648_v25  ;;  %v1504_v45 = vsub.f32 %v11172_v43, %v8803_v17  ;;  %v1865_v60 = vmul.f32 %v9125_v18, %v1665_v32  ;;  %v1529_v38 = vsub.f32 %v11173_v52, %v8855_v1  ;;  %v7169_v53 = vld [vmem:[#allocation5 + $0x3e8] ss:$16 sps:$4 sm:$0xff]   ;;  %v7177_v32 = vld [vmem:[#allocation5 + $0x40c] ss:$16 sps:$4 sm:$0xff]  }
 0x273   : > { %v1672_v10 = vmul.f32 %v8918_v15, %v1512_v63  ;;  %4082 = vmatpush1.bf16.msra.mxu0 %v7160_v51  ;;  %v2056_v12 = vadd.f32 %v9167_v16, %v1856_v13  ;;  %v11174_v58 = vld [vmem:[#allocation33_spill] sm:$0xff]  ;;  %v2305_v4 = vpack.c.bf16 %v2185_v6, %v2177_v30  ;;  %v2073_v22 = vadd.f32 %v9133_v34, %v1873_v23  ;;  %v7172_v30 = vld [vmem:[#allocation5 + $0x400] ss:$16 sps:$4 sm:$0xff]  }
 0x274   : > { %4534 = vmatpush1.bf16.msra.mxu1 %v7163_v29  ;;  %v1664_v62 = vmul.f32 %v8902_v3, %v1504_v45  ;;  %v1521_v25 = vsub.f32 %v11174_v58, %v8828_v61  ;;  %4083 = vmatprep.subr.bf16.mxu0 %v7168_v36  ;;  %v1689_v63 = vmul.f32 %v8951_v47, %v1529_v38  ;;  %v11176_v38 = vld [vmem:[#allocation50_spill] sm:$0xff] }
 0x275   : > { %4535 = vmatprep.subr.bf16.mxu1 %v7171_v5  ;;  %v2048_v51 = vadd.f32 %v9167_v16, %v1848_v20  ;;  %v2065_v29 = vadd.f32 %v9133_v34, %v1865_v60  ;;  %v1872_v13 = vmul.f32 %v9161_v54, %v1672_v10  ;;  %v2184_v36 = vmax.f32 %v2056_v12, 0.0  ;;  %v11175_v20 = vld [vmem:[#allocation34_spill] sm:$0xff]  ;;  %v7175_v12 = vld [vmem:[#allocation5 + $0x408] ss:$16 sps:$4 sm:$0xff]  }
 0x276   : > { %v1681_v6 = vmul.f32 %v8930_v7, %v1521_v25  ;;  %v1864_v5 = vmul.f32 %v9161_v54, %v1664_v62  ;;  %v2201_v23 = vmax.f32 %v2073_v22, 0.0  ;;  %v1528_v45 = vsub.f32 %v11175_v20, %v8855_v1  ;;  %v11177_v58 = vld [vmem:[#allocation30_spill] sm:$0xff]  ;;  %v7183_v22 = vld [vmem:[#allocation5 + $0x42c] ss:$16 sps:$4 sm:$0xff]  }
 0x277   : > { %4043 = vmatmul.mubr.bf16.gmra.mrb[92].mxu0 %v2358_v0  ;;  %4495 = vmatmul.mubr.bf16.gmra.mrb[92].mxu1 %v2358_v0  ;;  %v1889_v0 = vmul.f32 %v9125_v18, %v1689_v63  ;;  %v2176_v43 = vmax.f32 %v2048_v51, 0.0  ;;  %v2193_v60 = vmax.f32 %v2065_v29, 0.0  ;;  %v2072_v10 = vadd.f32 %v9167_v16, %v1872_v13  ;;  %v11178_v51 = vld [vmem:[#allocation47_spill] sm:$0xff]  ;;  %v7186_v20 = vld [vmem:[#allocation5 + $0x444] ss:$16 sps:$4 sm:$0xff]  }
 0x278   : > { %4085 = vmatprep.mubr.bf16.mxu0 %v2305_v4  ;;  %4537 = vmatprep.mubr.bf16.mxu1 %v2305_v4  ;;  %v1881_v52 = vmul.f32 %v9125_v18, %v1681_v6  ;;  %v2064_v62 = vadd.f32 %v9167_v16, %v1864_v5  ;;  %v1520_v25 = vsub.f32 %v11177_v58, %v8828_v61 }
 0x279   : > { %4084 = vmatpush1.bf16.msra.mxu0 %v7166_v11  ;;  %4536 = vmatpush1.bf16.msra.mxu1 %v7169_v53  ;;  %v1545_v11 = vsub.f32 %v11176_v38, %v8897_v46  ;;  %v2304_v53 = vpack.c.bf16 %v2184_v36, %v2176_v43  ;;  %v1688_v4 = vmul.f32 %v8951_v47, %v1528_v45  ;;  %v7178_v36 = vld [vmem:[#allocation5 + $0x420] ss:$16 sps:$4 sm:$0xff]   ;;  %v2200_v5 = vmax.f32 %v2072_v10, 0.0  ;;  %v7189_v38 = vld [vmem:[#allocation5 + $0x44c] ss:$16 sps:$4 sm:$0xff]  }
 0x27a   : > { %4166 = vmatprep.subr.bf16.mxu0 %v7174_v21  ;;  %4618 = vmatprep.subr.bf16.mxu1 %v7177_v32  ;;  %v2313_v21 = vpack.c.bf16 %v2201_v23, %v2193_v60  ;;  %v7180_v32 = vld [vmem:[#allocation5 + $0x424] ss:$16 sps:$4 sm:$0xff]   ;;  %v2089_v63 = vadd.f32 %v9133_v34, %v1889_v0  ;;  %v1537_v29 = vsub.f32 %v11178_v51, %v8875_v49  ;;  %v7181_v0 = vld [vmem:[#allocation5 + $0x428] ss:$16 sps:$4 sm:$0xff]   ;;  %v2192_v60 = vmax.f32 %v2064_v62, 0.0 }
 0x27b   : > { %v1705_v13 = vmul.f32 %v8989_v33, %v1545_v11  ;;  %v1680_v6 = vmul.f32 %v8930_v7, %v1520_v25  ;;  %v2081_v43 = vadd.f32 %v9133_v34, %v1881_v52  ;;  %v1888_v45 = vmul.f32 %v9161_v54, %v1688_v4  ;;  %v11179_v10 = vld [vmem:[#allocation42_spill] sm:$0xff]  ;;  %v11180_v4 = vld [vmem:[#allocation53_spill] sm:$0xff] }
 0x27c   : > { %v1697_v23 = vmul.f32 %v8969_v39, %v1537_v29  ;;  %v2217_v11 = vmax.f32 %v2089_v63, 0.0  ;;  %v1544_v52 = vsub.f32 %v11179_v10, %v8897_v46  ;;  %v2312_v58 = vpack.c.bf16 %v2200_v5, %v2192_v60  ;;  %v7184_v25 = vld [vmem:[#allocation5 + $0x440] ss:$16 sps:$4 sm:$0xff]   ;;  %v7187_v62 = vld [vmem:[#allocation5 + $0x448] ss:$16 sps:$4 sm:$0xff]  }
 0x27d   : > { %v11181_v63 = vld [vmem:[#allocation40_spill] sm:$0xff] }
 0x27e   : > { %v1536_v51 = vsub.f32 %v11181_v63, %v8875_v49  ;;  %v1704_v29 = vmul.f32 %v8989_v33, %v1544_v52  ;;  %v7190_v60 = vld [vmem:[#allocation5 + $0x460] ss:$16 sps:$4 sm:$0xff]   ;;  %v7198_v52 = vld [vmem:[#allocation5 + $0x484] ss:$16 sps:$4 sm:$0xff]  }
 0x27f   : > { %4086 = vmatmul.mubr.bf16.vlgmr.msra.gmra.mrb[64].mxu0 %v2304_v53  ;;  %4538 = vmatmul.mubr.bf16.vlgmr.msra.gmra.mrb[64].mxu1 %v2304_v53  ;;  %v1905_v53 = vmul.f32 %v9125_v18, %v1705_v13 }
 0x280   : > { %4095 = vmatprep.mubr.bf16.mxu0 %v2313_v21  ;;  %4167 = vmatpush1.bf16.msra.mxu0 %v7172_v30  ;;  %v1880_v30 = vmul.f32 %v9161_v54, %v1680_v6  ;;  %v7192_v6 = vld [vmem:[#allocation5 + $0x464] ss:$16 sps:$4 sm:$0xff]  }
 0x281   : > { %4547 = vmatprep.mubr.bf16.mxu1 %v2313_v21  ;;  %4619 = vmatpush1.bf16.msra.mxu1 %v7175_v12  ;;  %v2209_v12 = vmax.f32 %v2081_v43, 0.0  ;;  %v1897_v21 = vmul.f32 %v9125_v18, %v1697_v23  ;;  %v2105_v5 = vadd.f32 %v9133_v34, %v1905_v53  ;;  %v11182_v43 = vld [vmem:[#allocation48_spill] sm:$0xff]  ;;  %v7193_v53 = vld [vmem:[#allocation5 + $0x468] ss:$16 sps:$4 sm:$0xff]  }
 0x282   : > { %4168 = vmatprep.subr.bf16.mxu0 %v7180_v32  ;;  %4620 = vmatprep.subr.bf16.mxu1 %v7183_v22  ;;  %v1561_v32 = vsub.f32 %v11180_v4, %v8927_v37  ;;  %v2088_v22 = vadd.f32 %v9167_v16, %v1888_v45  ;;  %v1553_v23 = vsub.f32 %v11182_v43, %v8911_v19 }
 0x283   : > { %v2321_v13 = vpack.c.bf16 %v2217_v11, %v2209_v12  ;;  %v1696_v45 = vmul.f32 %v8969_v39, %v1536_v51  ;;  %v1904_v12 = vmul.f32 %v9161_v54, %v1704_v29  ;;  %v11184_v51 = vld [vmem:[#allocation45_spill] sm:$0xff] }
 0x284   : > { %4169 = vmatpush1.bf16.msra.mxu0 %v7178_v36  ;;  %v7195_v36 = vld [vmem:[#allocation5 + $0x46c] ss:$16 sps:$4 sm:$0xff]   ;;  %v1713_v11 = vmul.f32 %v9015_v56, %v1553_v23  ;;  %v2216_v10 = vmax.f32 %v2088_v22, 0.0  ;;  %v7199_v23 = vld [vmem:[#allocation5 + $0x488] ss:$16 sps:$4 sm:$0xff]  }
 0x285   : > { %4621 = vmatpush1.bf16.msra.mxu1 %v7181_v0  ;;  %4170 = vmatprep.subr.bf16.mxu0 %v7186_v20  ;;  %v1721_v0 = vmul.f32 %v9024_v48, %v1561_v32  ;;  %v2080_v20 = vadd.f32 %v9167_v16, %v1880_v30  ;;  %v7201_v30 = vld [vmem:[#allocation5 + $0x48c] ss:$16 sps:$4 sm:$0xff]   ;;  %v2233_v32 = vmax.f32 %v2105_v5, 0.0 }
 0x286   : > { %4622 = vmatprep.subr.bf16.mxu1 %v7189_v38  ;;  %v2097_v38 = vadd.f32 %v9133_v34, %v1897_v21  ;;  %v1896_v21 = vmul.f32 %v9161_v54, %v1696_v45  ;;  %v1913_v43 = vmul.f32 %v9125_v18, %v1713_v11 }
 0x287   : > { %4096 = vmatmul.mubr.bf16.gmra.mrb[68].mxu0 %v2312_v58  ;;  %4548 = vmatmul.mubr.bf16.gmra.mrb[68].mxu1 %v2312_v58  ;;  %v11183_v58 = vld [vmem:[#allocation49_spill] sm:$0xff]  ;;  %v2208_v63 = vmax.f32 %v2080_v20, 0.0 }
 0x288   : > { %4105 = vmatprep.mubr.bf16.mxu0 %v2321_v13  ;;  %4171 = vmatpush1.bf16.msra.mxu0 %v7184_v25  ;;  %v1560_v4 = vsub.f32 %v11183_v58, %v8927_v37  ;;  %v1921_v25 = vmul.f32 %v9125_v18, %v1721_v0  ;;  %v2225_v29 = vmax.f32 %v2097_v38, 0.0  ;;  %v2104_v0 = vadd.f32 %v9167_v16, %v1904_v12  ;;  %v7204_v58 = vld [vmem:[#allocation5 + $0x4a4] ss:$16 sps:$4 sm:$0xff]   ;;  %v11186_v38 = vld [vmem:[#allocation59_spill] sm:$0xff] }
 0x289   : > { %4557 = vmatprep.mubr.bf16.mxu1 %v2321_v13  ;;  %4623 = vmatpush1.bf16.msra.mxu1 %v7187_v62  ;;  %v1552_v62 = vsub.f32 %v11184_v51, %v8911_v19  ;;  %v7196_v13 = vld [vmem:[#allocation5 + $0x480] ss:$16 sps:$4 sm:$0xff]   ;;  %v2320_v5 = vpack.c.bf16 %v2216_v10, %v2208_v63  ;;  %v1569_v11 = vsub.f32 %v11186_v38, %v8942_v41  ;;  %v7210_v63 = vld [vmem:[#allocation5 + $0x4c4] ss:$16 sps:$4 sm:$0xff]  }
 0x28a   : > { %4172 = vmatprep.subr.bf16.mxu0 %v7192_v6  ;;  %4624 = vmatprep.subr.bf16.mxu1 %v7195_v36  ;;  %v1720_v22 = vmul.f32 %v9024_v48, %v1560_v4  ;;  %v11185_v6 = vld [vmem:[#allocation61_spill] sm:$0xff]  ;;  %v2329_v45 = vpack.c.bf16 %v2233_v32, %v2225_v29  ;;  %v2113_v12 = vadd.f32 %v9133_v34, %v1913_v43 }
 0x28b   : > { %v1577_v36 = vsub.f32 %v11185_v6, %v8962_v9  ;;  %v1712_v20 = vmul.f32 %v9015_v56, %v1552_v62  ;;  %v7207_v4 = vld [vmem:[#allocation5 + $0x4ac] ss:$16 sps:$4 sm:$0xff]   ;;  %v7205_v32 = vld [vmem:[#allocation5 + $0x4a8] ss:$16 sps:$4 sm:$0xff]  }
 0x28c   : > { %4173 = vmatpush1.bf16.msra.mxu0 %v7190_v60  ;;  %v2121_v60 = vadd.f32 %v9133_v34, %v1921_v25  ;;  %v1920_v10 = vmul.f32 %v9161_v54, %v1720_v22  ;;  %v2232_v25 = vmax.f32 %v2104_v0, 0.0  ;;  %v7213_v29 = vld [vmem:[#allocation5 + $0x4cc] ss:$16 sps:$4 sm:$0xff]   ;;  %v7208_v0 = vld [vmem:[#allocation5 + $0x4c0] ss:$16 sps:$4 sm:$0xff]  }
 0x28d   : > { %4625 = vmatpush1.bf16.msra.mxu1 %v7193_v53  ;;  %4174 = vmatprep.subr.bf16.mxu0 %v7198_v52  ;;  %v1737_v51 = vmul.f32 %v9051_v35, %v1577_v36  ;;  %v2096_v53 = vadd.f32 %v9167_v16, %v1896_v21  ;;  %v7202_v52 = vld [vmem:[#allocation5 + $0x4a0] ss:$16 sps:$4 sm:$0xff]   ;;  %v1912_v62 = vmul.f32 %v9161_v54, %v1712_v20 }
 0x28e   : > { %4626 = vmatprep.subr.bf16.mxu1 %v7201_v30  ;;  %v1729_v30 = vmul.f32 %v9038_v8, %v1569_v11  ;;  %v2249_v21 = vmax.f32 %v2121_v60, 0.0  ;;  %v2120_v43 = vadd.f32 %v9167_v16, %v1920_v10  ;;  %v7211_v11 = vld [vmem:[#allocation5 + $0x4c8] ss:$16 sps:$4 sm:$0xff]  }
 0x28f   : > { %4106 = vmatmul.mubr.bf16.gmra.mrb[72].mxu0 %v2320_v5  ;;  %4558 = vmatmul.mubr.bf16.gmra.mrb[72].mxu1 %v2320_v5  ;;  %v1937_v22 = vmul.f32 %v9125_v18, %v1737_v51  ;;  %v2224_v36 = vmax.f32 %v2096_v53, 0.0  ;;  %v11188_v5 = vld [vmem:[#allocation56_spill] sm:$0xff]  ;;  %v2112_v51 = vadd.f32 %v9167_v16, %v1912_v62 }
 0x290   : > { %4115 = vmatprep.mubr.bf16.mxu0 %v2329_v45  ;;  %4175 = vmatpush1.bf16.msra.mxu0 %v7196_v13  ;;  %v11187_v13 = vld [vmem:[#allocation57_spill] sm:$0xff]  ;;  %v1929_v20 = vmul.f32 %v9125_v18, %v1729_v30 }
 0x291   : > { %4567 = vmatprep.mubr.bf16.mxu1 %v2329_v45  ;;  %4627 = vmatpush1.bf16.msra.mxu1 %v7199_v23  ;;  %v1576_v6 = vsub.f32 %v11187_v13, %v8962_v9  ;;  %v1568_v23 = vsub.f32 %v11188_v5, %v8942_v41  ;;  %v2241_v45 = vmax.f32 %v2113_v12, 0.0  ;;  %v2328_v38 = vpack.c.bf16 %v2232_v25, %v2224_v36  ;;  %v7219_v13 = vld [vmem:[#allocation5 + $0x4ec] ss:$16 sps:$4 sm:$0xff]   ;;  %v7214_v25 = vld [vmem:[#allocation5 + $0x4e0] ss:$16 sps:$4 sm:$0xff]  }
 0x292   : > { %4176 = vmatprep.subr.bf16.mxu0 %v7204_v58  ;;  %4628 = vmatprep.subr.bf16.mxu1 %v7207_v4  ;;  %v11189_v4 = vld [vmem:[#allocation68_spill] sm:$0xff]  ;;  %v2137_v12 = vadd.f32 %v9133_v34, %v1937_v22  ;;  %v11190_v30 = vld [vmem:[#allocation65_spill] sm:$0xff]  ;;  %v11191_v5 = vld [vmem:[#allocation23_spill] sm:$0xff]  ;;  %v2240_v36 = vmax.f32 %v2112_v51, 0.0 }
 0x293   : > { %v1736_v58 = vmul.f32 %v9051_v35, %v1576_v6  ;;  %v1593_v60 = vsub.f32 %v11189_v4, %v8998_v44  ;;  %v1728_v53 = vmul.f32 %v9038_v8, %v1568_v23  ;;  %v2337_v10 = vpack.c.bf16 %v2249_v21, %v2241_v45  ;;  %v7217_v22 = vld [vmem:[#allocation5 + $0x4e8] ss:$16 sps:$4 sm:$0xff]   ;;  %v7222_v23 = vld [vmem:[#allocation5 + $0x504] ss:$16 sps:$4 sm:$0xff]   ;;  %v7225_v4 = vld [vmem:[#allocation5 + $0x50c] ss:$16 sps:$4 sm:$0xff]  }
 0x294   : > { %4177 = vmatpush1.bf16.msra.mxu0 %v7202_v52  ;;  %v7216_v52 = vld [vmem:[#allocation5 + $0x4e4] ss:$16 sps:$4 sm:$0xff]   ;;  %v1585_v6 = vsub.f32 %v11190_v30, %v8978_v27 }
 0x295   : > { %4629 = vmatpush1.bf16.msra.mxu1 %v7205_v32  ;;  %4178 = vmatprep.subr.bf16.mxu0 %v7210_v63  ;;  %v1753_v35 = vmul.f32 %v11191_v5, %v1593_v60  ;;  %v2248_v32 = vmax.f32 %v2120_v43, 0.0  ;;  %v2129_v63 = vadd.f32 %v9133_v34, %v1929_v20  ;;  %v1936_v62 = vmul.f32 %v9161_v54, %v1736_v58  ;;  %v11193_v20 = vld [vmem:[#allocation66_spill] sm:$0xff] }
 0x296   : > { %4630 = vmatprep.subr.bf16.mxu1 %v7213_v29  ;;  %v11192_v29 = vld [vmem:[#allocation19_spill] sm:$0xff]  ;;  %v1928_v45 = vmul.f32 %v9161_v54, %v1728_v53  ;;  %v2265_v43 = vmax.f32 %v2137_v12, 0.0  ;;  %v7220_v58 = vld [vmem:[#allocation5 + $0x500] ss:$16 sps:$4 sm:$0xff]  }
 0x297   : > { %4116 = vmatmul.mubr.bf16.gmra.mrb[76].mxu0 %v2328_v38  ;;  %4568 = vmatmul.mubr.bf16.gmra.mrb[76].mxu1 %v2328_v38  ;;  %v1745_v21 = vmul.f32 %v11192_v29, %v1585_v6  ;;  %v2336_v60 = vpack.c.bf16 %v2248_v32, %v2240_v36  ;;  %v1592_v38 = vsub.f32 %v11193_v20, %v8998_v44  ;;  %v2257_v30 = vmax.f32 %v2129_v63, 0.0  ;;  %v7231_v63 = vld [vmem:[#allocation5 + $0x52c] ss:$16 sps:$4 sm:$0xff]  }
 0x298   : > { %4125 = vmatprep.mubr.bf16.mxu0 %v2337_v10  ;;  %4179 = vmatpush1.bf16.msra.mxu0 %v7208_v0  ;;  %v1953_v0 = vmul.f32 %v9125_v18, %v1753_v35  ;;  %v11195_v35 = vld [vmem:[#allocation63_spill] sm:$0xff] }
 0x299   : > { %4577 = vmatprep.mubr.bf16.mxu1 %v2337_v10  ;;  %4631 = vmatpush1.bf16.msra.mxu1 %v7211_v11  ;;  %v2136_v11 = vadd.f32 %v9167_v16, %v1936_v62  ;;  %v1945_v51 = vmul.f32 %v9125_v18, %v1745_v21  ;;  %v11194_v10 = vld [vmem:[#allocation75_spill] sm:$0xff]  ;;  %v1584_v12 = vsub.f32 %v11195_v35, %v8978_v27  ;;  %v11196_v21 = vld [vmem:[#allocation72_spill] sm:$0xff] }
 0x29a   : > { %4180 = vmatprep.subr.bf16.mxu0 %v7216_v52  ;;  %4632 = vmatprep.subr.bf16.mxu1 %v7219_v13  ;;  %v1609_v53 = vsub.f32 %v11194_v10, %v9030_v31  ;;  %v7223_v52 = vld [vmem:[#allocation5 + $0x508] ss:$16 sps:$4 sm:$0xff]   ;;  %v2128_v13 = vadd.f32 %v9167_v16, %v1928_v45  ;;  %v1752_v6 = vmul.f32 %v11191_v5, %v1592_v38  ;;  %v7226_v45 = vld [vmem:[#allocation5 + $0x520] ss:$16 sps:$4 sm:$0xff]   ;;  %v7234_v38 = vld [vmem:[#allocation5 + $0x544] ss:$16 sps:$4 sm:$0xff]  }
 0x29b   : > { %v2345_v32 = vpack.c.bf16 %v2265_v43, %v2257_v30  ;;  %v2153_v62 = vadd.f32 %v9133_v34, %v1953_v0  ;;  %v1601_v36 = vsub.f32 %v11196_v21, %v9012_v59  ;;  %v2264_v20 = vmax.f32 %v2136_v11, 0.0  ;;  %v7229_v0 = vld [vmem:[#allocation5 + $0x528] ss:$16 sps:$4 sm:$0xff]  }
 0x29c   : > { %4181 = vmatpush1.bf16.msra.mxu0 %v7214_v25  ;;  %v7228_v25 = vld [vmem:[#allocation5 + $0x524] ss:$16 sps:$4 sm:$0xff]   ;;  %v1952_v30 = vmul.f32 %v9161_v54, %v1752_v6  ;;  %v2256_v10 = vmax.f32 %v2128_v13, 0.0  ;;  %v11197_v11 = vld [vmem:[#allocation73_spill] sm:$0xff] }
 0x29d   : > { %4633 = vmatpush1.bf16.msra.mxu1 %v7217_v22  ;;  %4182 = vmatprep.subr.bf16.mxu0 %v7222_v23  ;;  %v1769_v22 = vmul.f32 %v9110_v28, %v1609_v53  ;;  %v1744_v23 = vmul.f32 %v11192_v29, %v1584_v12  ;;  %v1761_v43 = vmul.f32 %v9092_v2, %v1601_v36  ;;  %v2281_v53 = vmax.f32 %v2153_v62, 0.0  ;;  %v11198_v62 = vld [vmem:[#allocation79_spill] sm:$0xff] }
 0x29e   : > { %4634 = vmatprep.subr.bf16.mxu1 %v7225_v4  ;;  %v2145_v4 = vadd.f32 %v9133_v34, %v1945_v51  ;;  %v1608_v51 = vsub.f32 %v11197_v11, %v9030_v31  ;;  %v2344_v6 = vpack.c.bf16 %v2264_v20, %v2256_v10  ;;  %v1499_v21 = vsub.f32 %v11198_v62, %v8799_v55  ;;  %v7235_v36 = vld [vmem:[#allocation5 + $0x548] ss:$16 sps:$4 sm:$0xff]   ;;  %v7240_v20 = vld [vmem:[#allocation5 + $0x564] ss:$16 sps:$4 sm:$0xff]   ;;  %v7243_v10 = vld [vmem:[#allocation5 + $0x56c] ss:$16 sps:$4 sm:$0xff]  }
 0x29f   : > { %4126 = vmatmul.mubr.bf16.gmra.mrb[80].mxu0 %v2336_v60  ;;  %4578 = vmatmul.mubr.bf16.gmra.mrb[80].mxu1 %v2336_v60  ;;  %v7237_v60 = vld [vmem:[#allocation5 + $0x54c] ss:$16 sps:$4 sm:$0xff]   ;;  %v1969_v35 = vmul.f32 %v9125_v18, %v1769_v22  ;;  %v2152_v22 = vadd.f32 %v9167_v16, %v1952_v30 }
 0x2a0   : > { %4135 = vmatprep.mubr.bf16.mxu0 %v2345_v32  ;;  %4183 = vmatpush1.bf16.msra.mxu0 %v7220_v58  ;;  %v1944_v58 = vmul.f32 %v9161_v54, %v1744_v23  ;;  %v11199_v23 = vld [vmem:[#allocation70_spill] sm:$0xff]  ;;  %v11201_v62 = vld [vmem:[#allocation141_spill] sm:$0xff] }
 0x2a1   : > { %4587 = vmatprep.mubr.bf16.mxu1 %v2345_v32  ;;  %4635 = vmatpush1.bf16.msra.mxu1 %v7223_v52  ;;  %v9296_v52 = vld [vmem:[%s10780_s2 + $0x10] sm:$0x77]  ;;  %v1600_v11 = vsub.f32 %v11199_v23, %v9012_v59 }
 0x2a2   : > { %4184 = vmatprep.subr.bf16.mxu0 %v7228_v25  ;;  %4636 = vmatprep.subr.bf16.mxu1 %v7231_v63  ;;  %v1797_v12 = vrot.slane %v9296_v52, %v8809_v42  ;;  %v1793_v13 = vrot.slane %v9296_v52, %v8806_v40  ;;  %v7232_v32 = vld [vmem:[#allocation5 + $0x540] ss:$16 sps:$4 sm:$0xff]   ;;  %v2273_v25 = vmax.f32 %v2145_v4, 0.0  ;;  %v1961_v63 = vmul.f32 %v9125_v18, %v1761_v43 }
 0x2a3   : > { %v1768_v42 = vmul.f32 %v9110_v28, %v1608_v51  ;;  %v2169_v4 = vadd.f32 %v9133_v34, %v1969_v35  ;;  %v11200_v18 = vld [vmem:[#allocation76_spill] sm:$0xff]  ;;  %v1760_v30 = vmul.f32 %v9092_v2, %v1600_v11  ;;  %v1997_v51 = vrot.slane %v9296_v52, %v11201_v62  ;;  %v7249_v11 = vld [vmem:[#allocation5 + $0x58c] ss:$16 sps:$4 sm:$0xff]  }
 0x2a4   : > { %4185 = vmatpush1.bf16.msra.mxu0 %v7226_v45  ;;  %v2353_v45 = vpack.c.bf16 %v2281_v53, %v2273_v25  ;;  %v1491_v43 = vsub.f32 %v11200_v18, %v8795_v14  ;;  %v2161_v53 = vadd.f32 %v9133_v34, %v1961_v63  ;;  %v9320_v25 = vrot.slane %v1797_v12, %v8806_v40  ;;  %v11205_v62 = vld [vmem:[#allocation84_spill] sm:$0xff] }
 0x2a5   : > { %4637 = vmatpush1.bf16.msra.mxu1 %v7229_v0  ;;  %4186 = vmatprep.subr.bf16.mxu0 %v7234_v38  ;;  %v1659_v0 = vmul.f32 %v8887_v50, %v1499_v21  ;;  %v2144_v38 = vadd.f32 %v9167_v16, %v1944_v58  ;;  %v2280_v21 = vmax.f32 %v2152_v22, 0.0  ;;  %v7246_v58 = vld [vmem:[#allocation5 + $0x584] ss:$16 sps:$4 sm:$0xff]   ;;  %v1968_v23 = vmul.f32 %v9161_v54, %v1768_v42  ;;  %v7244_v42 = vld [vmem:[#allocation5 + $0x580] ss:$16 sps:$4 sm:$0xff]  }
 0x2a6   : > { %4638 = vmatprep.subr.bf16.mxu1 %v7237_v60  ;;  %v7238_v60 = vld [vmem:[#allocation5 + $0x560] ss:$16 sps:$4 sm:$0xff]   ;;  %v1651_v35 = vmul.f32 %v8867_v57, %v1491_v43  ;;  %v2297_v18 = vmax.f32 %v2169_v4, 0.0  ;;  %v9325_v34 = vrot.slane %v1793_v13, %v8806_v40  ;;  %v1960_v12 = vmul.f32 %v9161_v54, %v1760_v30  ;;  %v11204_v13 = vld [vmem:[#allocation87_spill] sm:$0xff] }
 0x2a7   : > { %4136 = vmatmul.mubr.bf16.gmra.mrb[84].mxu0 %v2344_v6  ;;  %4588 = vmatmul.mubr.bf16.gmra.mrb[84].mxu1 %v2344_v6  ;;  %v7241_v6 = vld [vmem:[#allocation5 + $0x568] ss:$16 sps:$4 sm:$0xff]   ;;  %v2272_v63 = vmax.f32 %v2144_v38, 0.0  ;;  %v11203_v4 = vld [vmem:[#allocation74_spill] sm:$0xff]  ;;  %v2168_v30 = vadd.f32 %v9167_v16, %v1968_v23 }
 0x2a8   : > { %4145 = vmatprep.mubr.bf16.mxu0 %v2353_v45  ;;  %4187 = vmatpush1.bf16.msra.mxu0 %v7232_v32  ;;  %v1859_v32 = vmul.f32 %v9320_v25, %v1659_v0  ;;  %v1490_v43 = vsub.f32 %v11203_v4, %v8795_v14  ;;  %v1515_v0 = vsub.f32 %v11204_v13, %v8819_v24  ;;  %v7247_v54 = vld [vmem:[#allocation5 + $0x588] ss:$16 sps:$4 sm:$0xff]   ;;  %v7250_v23 = vld [vmem:[#allocation5 + $0x5a0] ss:$16 sps:$4 sm:$0xff]  }
 0x2a9   : > { %4597 = vmatprep.mubr.bf16.mxu1 %v2353_v45  ;;  %4639 = vmatpush1.bf16.msra.mxu1 %v7235_v36  ;;  %v9329_v45 = vrot.slane %v1997_v51, %v8812_v26  ;;  %v11202_v36 = vld [vmem:[#allocation77_spill] sm:$0xff]  ;;  %v2352_v38 = vpack.c.bf16 %v2280_v21, %v2272_v63  ;;  %v1507_v4 = vsub.f32 %v11205_v62, %v8803_v17  ;;  %v7258_v63 = vld [vmem:[#allocation5 + $0x5c4] ss:$16 sps:$4 sm:$0xff]  }
 0x2aa   : > { %4188 = vmatprep.subr.bf16.mxu0 %v7240_v20  ;;  %4640 = vmatprep.subr.bf16.mxu1 %v7243_v10  ;;  %v1498_v22 = vsub.f32 %v11202_v36, %v8799_v55  ;;  %v2289_v20 = vmax.f32 %v2161_v53, 0.0  ;;  %v1851_v10 = vmul.f32 %v9320_v25, %v1651_v35  ;;  %v7252_v36 = vld [vmem:[#allocation5 + $0x5a4] ss:$16 sps:$4 sm:$0xff]   ;;  %v7255_v53 = vld [vmem:[#allocation5 + $0x5ac] ss:$16 sps:$4 sm:$0xff]   ;;  %v1675_v40 = vmul.f32 %v8918_v15, %v1515_v0 }
 0x2ab   : > { %v2059_v35 = vadd.f32 %v9329_v45, %v1859_v32  ;;  %v1650_v21 = vmul.f32 %v8867_v57, %v1490_v43  ;;  %v7253_v62 = vld [vmem:[#allocation5 + $0x5a8] ss:$16 sps:$4 sm:$0xff]   ;;  %v2296_v32 = vmax.f32 %v2168_v30, 0.0 }
 0x2ac   : > { %4189 = vmatpush1.bf16.msra.mxu0 %v7238_v60  ;;  %v1658_v51 = vmul.f32 %v8887_v50, %v1498_v22  ;;  %v2361_v60 = vpack.c.bf16 %v2297_v18, %v2289_v20  ;;  %v1667_v18 = vmul.f32 %v8902_v3, %v1507_v4  ;;  %v11207_v0 = vld [vmem:[#allocation83_spill] sm:$0xff] }
 0x2ad   : > { %4641 = vmatpush1.bf16.msra.mxu1 %v7241_v6  ;;  %4190 = vmatprep.subr.bf16.mxu0 %v7246_v58  ;;  %v2160_v6 = vadd.f32 %v9167_v16, %v1960_v12  ;;  %v1993_v58 = vrot.slane %v9296_v52, %v8812_v26  ;;  %v7261_v16 = vld [vmem:[#allocation5 + $0x5cc] ss:$16 sps:$4 sm:$0xff]   ;;  %v2187_v12 = vmax.f32 %v2059_v35, 0.0  ;;  %v1875_v52 = vmul.f32 %v9320_v25, %v1675_v40  ;;  %v7259_v35 = vld [vmem:[#allocation5 + $0x5c8] ss:$16 sps:$4 sm:$0xff]  }
 0x2ae   : > { %4642 = vmatprep.subr.bf16.mxu1 %v7249_v11  ;;  %v2051_v11 = vadd.f32 %v9329_v45, %v1851_v10  ;;  %v1858_v22 = vmul.f32 %v9325_v34, %v1658_v51  ;;  %v1850_v10 = vmul.f32 %v9325_v34, %v1650_v21  ;;  %v1867_v51 = vmul.f32 %v9320_v25, %v1667_v18  ;;  %v11208_v40 = vld [vmem:[#allocation95_spill] sm:$0xff]  ;;  %v11209_v18 = vld [vmem:[#allocation92_spill] sm:$0xff] }
 0x2af   : > { %4146 = vmatmul.mubr.bf16.gmra.mrb[88].mxu0 %v2352_v38  ;;  %4598 = vmatmul.mubr.bf16.gmra.mrb[88].mxu1 %v2352_v38  ;;  %v2288_v43 = vmax.f32 %v2160_v6, 0.0  ;;  %v9356_v13 = vrot.slane %v1993_v58, %v8812_v26  ;;  %v1506_v38 = vsub.f32 %v11207_v0, %v8803_v17  ;;  %v7264_v58 = vld [vmem:[#allocation5 + $0x5e4] ss:$16 sps:$4 sm:$0xff]  }
 0x2b0   : > { %4155 = vmatprep.mubr.bf16.mxu0 %v2361_v60  ;;  %4191 = vmatpush1.bf16.msra.mxu0 %v7244_v42  ;;  %v11206_v42 = vld [vmem:[#allocation86_spill] sm:$0xff]  ;;  %v2179_v30 = vmax.f32 %v2051_v11, 0.0  ;;  %v2075_v11 = vadd.f32 %v9329_v45, %v1875_v52 }
 0x2b1   : > { %4607 = vmatprep.mubr.bf16.mxu1 %v2361_v60  ;;  %4643 = vmatpush1.bf16.msra.mxu1 %v7247_v54  ;;  %v1514_v20 = vsub.f32 %v11206_v42, %v8819_v24  ;;  %v7256_v54 = vld [vmem:[#allocation5 + $0x5c0] ss:$16 sps:$4 sm:$0xff]   ;;  %v2058_v4 = vadd.f32 %v9356_v13, %v1858_v22  ;;  %v1666_v6 = vmul.f32 %v8902_v3, %v1506_v38  ;;  %v7273_v38 = vld [vmem:[#allocation5 + $0x60c] ss:$16 sps:$4 sm:$0xff]  }
 0x2b2   : > { %4192 = vmatprep.subr.bf16.mxu0 %v7252_v36  ;;  %4644 = vmatprep.subr.bf16.mxu1 %v7255_v53  ;;  %v1531_v36 = vsub.f32 %v11208_v40, %v8855_v1  ;;  %v2360_v53 = vpack.c.bf16 %v2296_v32, %v2288_v43  ;;  %v2307_v21 = vpack.c.bf16 %v2187_v12, %v2179_v30  ;;  %v7262_v32 = vld [vmem:[#allocation5 + $0x5e0] ss:$16 sps:$4 sm:$0xff]   ;;  %v7265_v12 = vld [vmem:[#allocation5 + $0x5e8] ss:$16 sps:$4 sm:$0xff]   ;;  %v7270_v43 = vld [vmem:[#allocation5 + $0x604] ss:$16 sps:$4 sm:$0xff]  }
 0x2b3   : > { %v1674_v60 = vmul.f32 %v8918_v15, %v1514_v20  ;;  %v1523_v42 = vsub.f32 %v11209_v18, %v8828_v61  ;;  %v2186_v52 = vmax.f32 %v2058_v4, 0.0  ;;  %v1866_v0 = vmul.f32 %v9325_v34, %v1666_v6  ;;  %v11212_v6 = vld [vmem:[#allocation103_spill] sm:$0xff] }
 0x2b4   : > { %4193 = vmatpush1.bf16.msra.mxu0 %v7250_v23  ;;  %v7267_v23 = vld [vmem:[#allocation5 + $0x5ec] ss:$16 sps:$4 sm:$0xff]   ;;  %v1691_v20 = vmul.f32 %v8951_v47, %v1531_v36 }
 0x2b5   : > { %4645 = vmatpush1.bf16.msra.mxu1 %v7253_v62  ;;  %4194 = vmatprep.subr.bf16.mxu0 %v7258_v63  ;;  %v2050_v62 = vadd.f32 %v9356_v13, %v1850_v10  ;;  %v2067_v63 = vadd.f32 %v9329_v45, %v1867_v51  ;;  %v1874_v22 = vmul.f32 %v9325_v34, %v1674_v60  ;;  %v2203_v10 = vmax.f32 %v2075_v11, 0.0  ;;  %v11210_v51 = vld [vmem:[#allocation91_spill] sm:$0xff]  ;;  %v11211_v60 = vld [vmem:[#allocation94_spill] sm:$0xff] }
 0x2b6   : > { %4646 = vmatprep.subr.bf16.mxu1 %v7261_v16  ;;  %v1683_v16 = vmul.f32 %v8930_v7, %v1523_v42  ;;  %v1522_v40 = vsub.f32 %v11210_v51, %v8828_v61  ;;  %v1530_v36 = vsub.f32 %v11211_v60, %v8855_v1  ;;  %v2066_v11 = vadd.f32 %v9356_v13, %v1866_v0  ;;  %v7271_v42 = vld [vmem:[#allocation5 + $0x608] ss:$16 sps:$4 sm:$0xff]   ;;  %v7282_v60 = vld [vmem:[#allocation5 + $0x644] ss:$16 sps:$4 sm:$0xff]  }
 0x2b7   : > { %4156 = vmatmul.mubr.bf16.gmra.mrb[92].mxu0 %v2360_v53  ;;  %4608 = vmatmul.mubr.bf16.gmra.mrb[92].mxu1 %v2360_v53  ;;  %v2178_v30 = vmax.f32 %v2050_v62, 0.0  ;;  %v2195_v53 = vmax.f32 %v2067_v63, 0.0  ;;  %v7276_v62 = vld [vmem:[#allocation5 + $0x624] ss:$16 sps:$4 sm:$0xff]  }
 0x2b8   : > { %4195 = vmatpush1.bf16.msra.mxu0 %v7256_v54  ;;  %4198 = vmatprep.mubr.bf16.mxu0 %v2307_v21  ;;  %v1891_v54 = vmul.f32 %v9320_v25, %v1691_v20  ;;  %v1883_v4 = vmul.f32 %v9320_v25, %v1683_v16  ;;  %v1690_v18 = vmul.f32 %v8951_v47, %v1530_v36  ;;  %v11213_v63 = vld [vmem:[#allocation100_spill] sm:$0xff]  ;;  %v2194_v51 = vmax.f32 %v2066_v11, 0.0 }
 0x2b9   : > { %4647 = vmatpush1.bf16.msra.mxu1 %v7259_v35  ;;  %4650 = vmatprep.mubr.bf16.mxu1 %v2307_v21  ;;  %v2074_v35 = vadd.f32 %v9356_v13, %v1874_v22  ;;  %v1547_v21 = vsub.f32 %v11212_v6, %v8897_v46  ;;  %v2315_v20 = vpack.c.bf16 %v2203_v10, %v2195_v53  ;;  %v7274_v10 = vld [vmem:[#allocation5 + $0x620] ss:$16 sps:$4 sm:$0xff]  }
 0x2ba   : > { %4196 = vmatprep.subr.bf16.mxu0 %v7264_v58  ;;  %4648 = vmatprep.subr.bf16.mxu1 %v7267_v23  ;;  %v2306_v58 = vpack.c.bf16 %v2186_v52, %v2178_v30  ;;  %v7268_v23 = vld [vmem:[#allocation5 + $0x600] ss:$16 sps:$4 sm:$0xff]   ;;  %v1539_v22 = vsub.f32 %v11213_v63, %v8875_v49  ;;  %v1682_v52 = vmul.f32 %v8930_v7, %v1522_v40  ;;  %v7277_v30 = vld [vmem:[#allocation5 + $0x628] ss:$16 sps:$4 sm:$0xff]  }
 0x2bb   : > { %v1707_v16 = vmul.f32 %v8989_v33, %v1547_v21  ;;  %v2083_v0 = vadd.f32 %v9329_v45, %v1883_v4  ;;  %v11214_v53 = vld [vmem:[#allocation102_spill] sm:$0xff]  ;;  %v7285_v4 = vld [vmem:[#allocation5 + $0x64c] ss:$16 sps:$4 sm:$0xff]  }
 0x2bc   : > { %4197 = vmatpush1.bf16.msra.mxu0 %v7262_v32  ;;  %v2091_v32 = vadd.f32 %v9329_v45, %v1891_v54  ;;  %v1890_v54 = vmul.f32 %v9325_v34, %v1690_v18  ;;  %v1882_v6 = vmul.f32 %v9325_v34, %v1682_v52  ;;  %v11215_v21 = vld [vmem:[#allocation99_spill] sm:$0xff] }
 0x2bd   : > { %4649 = vmatpush1.bf16.msra.mxu1 %v7265_v12  ;;  %4279 = vmatprep.subr.bf16.mxu0 %v7270_v43  ;;  %v7279_v12 = vld [vmem:[#allocation5 + $0x62c] ss:$16 sps:$4 sm:$0xff]   ;;  %v2202_v43 = vmax.f32 %v2074_v35, 0.0  ;;  %v1907_v40 = vmul.f32 %v9320_v25, %v1707_v16  ;;  %v1546_v35 = vsub.f32 %v11214_v53, %v8897_v46  ;;  %v11217_v16 = vld [vmem:[#allocation108_spill] sm:$0xff]  ;;  %v7283_v53 = vld [vmem:[#allocation5 + $0x648] ss:$16 sps:$4 sm:$0xff]  }
 0x2be   : > { %4731 = vmatprep.subr.bf16.mxu1 %v7273_v38  ;;  %v1699_v38 = vmul.f32 %v8969_v39, %v1539_v22  ;;  %v2219_v36 = vmax.f32 %v2091_v32, 0.0  ;;  %v7280_v32 = vld [vmem:[#allocation5 + $0x640] ss:$16 sps:$4 sm:$0xff]   ;;  %v2090_v63 = vadd.f32 %v9356_v13, %v1890_v54 }
 0x2bf   : > { %4199 = vmatmul.mubr.bf16.vlgmr.msra.gmra.mrb[64].mxu0 %v2306_v58 }
 0x2c0   : > { %4651 = vmatmul.mubr.bf16.vlgmr.msra.gmra.mrb[64].mxu1 %v2306_v58  ;;  %4208 = vmatprep.mubr.bf16.mxu0 %v2315_v20  ;;  %v1538_v58 = vsub.f32 %v11215_v21, %v8875_v49  ;;  %v1899_v11 = vmul.f32 %v9320_v25, %v1699_v38  ;;  %v2107_v38 = vadd.f32 %v9329_v45, %v1907_v40 }
 0x2c1   : > { %4280 = vmatpush1.bf16.msra.mxu0 %v7268_v23  ;;  %4660 = vmatprep.mubr.bf16.mxu1 %v2315_v20  ;;  %v11216_v23 = vld [vmem:[#allocation111_spill] sm:$0xff]  ;;  %v2211_v20 = vmax.f32 %v2083_v0, 0.0  ;;  %v7288_v0 = vld [vmem:[#allocation5 + $0x664] ss:$16 sps:$4 sm:$0xff]  }
 0x2c2   : > { %4732 = vmatpush1.bf16.msra.mxu1 %v7271_v42  ;;  %4281 = vmatprep.subr.bf16.mxu0 %v7276_v62  ;;  %v1563_v18 = vsub.f32 %v11216_v23, %v8927_v37  ;;  %v2314_v42 = vpack.c.bf16 %v2202_v43, %v2194_v51  ;;  %v1706_v62 = vmul.f32 %v8989_v33, %v1546_v35  ;;  %v11218_v23 = vld [vmem:[#allocation110_spill] sm:$0xff] }
 0x2c3   : > { %4733 = vmatprep.subr.bf16.mxu1 %v7279_v12  ;;  %v1698_v22 = vmul.f32 %v8969_v39, %v1538_v58  ;;  %v1555_v12 = vsub.f32 %v11217_v16, %v8911_v19  ;;  %v2323_v43 = vpack.c.bf16 %v2219_v36, %v2211_v20  ;;  %v2082_v51 = vadd.f32 %v9356_v13, %v1882_v6  ;;  %v7294_v6 = vld [vmem:[#allocation5 + $0x684] ss:$16 sps:$4 sm:$0xff]   ;;  %v7297_v20 = vld [vmem:[#allocation5 + $0x68c] ss:$16 sps:$4 sm:$0xff]  }
 0x2c4   : > { %v1723_v52 = vmul.f32 %v9024_v48, %v1563_v18  ;;  %v2099_v35 = vadd.f32 %v9329_v45, %v1899_v11  ;;  %v1906_v21 = vmul.f32 %v9325_v34, %v1706_v62  ;;  %v2235_v58 = vmax.f32 %v2107_v38, 0.0  ;;  %v11219_v62 = vld [vmem:[#allocation107_spill] sm:$0xff] }
 0x2c5   : > { %4282 = vmatpush1.bf16.msra.mxu0 %v7274_v10  ;;  %v7291_v10 = vld [vmem:[#allocation5 + $0x66c] ss:$16 sps:$4 sm:$0xff]   ;;  %v1715_v54 = vmul.f32 %v9015_v56, %v1555_v12  ;;  %v1898_v36 = vmul.f32 %v9325_v34, %v1698_v22  ;;  %v1562_v18 = vsub.f32 %v11218_v23, %v8927_v37 }
 0x2c6   : > { %4734 = vmatpush1.bf16.msra.mxu1 %v7277_v30  ;;  %4283 = vmatprep.subr.bf16.mxu0 %v7282_v60  ;;  %v7286_v30 = vld [vmem:[#allocation5 + $0x660] ss:$16 sps:$4 sm:$0xff]   ;;  %v2218_v60 = vmax.f32 %v2090_v63, 0.0  ;;  %v1923_v40 = vmul.f32 %v9320_v25, %v1723_v52  ;;  %v2227_v63 = vmax.f32 %v2099_v35, 0.0  ;;  %v2106_v22 = vadd.f32 %v9356_v13, %v1906_v21  ;;  %v11220_v12 = vld [vmem:[#allocation119_spill] sm:$0xff] }
 0x2c7   : > { %4209 = vmatmul.mubr.bf16.gmra.mrb[68].mxu0 %v2314_v42  ;;  %4735 = vmatprep.subr.bf16.mxu1 %v7285_v4  ;;  %v7289_v4 = vld [vmem:[#allocation5 + $0x668] ss:$16 sps:$4 sm:$0xff]   ;;  %v1915_v11 = vmul.f32 %v9320_v25, %v1715_v54  ;;  %v1722_v16 = vmul.f32 %v9024_v48, %v1562_v18  ;;  %v1579_v52 = vsub.f32 %v11220_v12, %v8962_v9  ;;  %v7300_v35 = vld [vmem:[#allocation5 + $0x6a4] ss:$16 sps:$4 sm:$0xff]   ;;  %v7309_v12 = vld [vmem:[#allocation5 + $0x6cc] ss:$16 sps:$4 sm:$0xff]  }
 0x2c8   : > { %4661 = vmatmul.mubr.bf16.gmra.mrb[68].mxu1 %v2314_v42  ;;  %4218 = vmatprep.mubr.bf16.mxu0 %v2323_v43  ;;  %v2210_v42 = vmax.f32 %v2082_v51, 0.0  ;;  %v2123_v38 = vadd.f32 %v9329_v45, %v1923_v40  ;;  %v7295_v51 = vld [vmem:[#allocation5 + $0x688] ss:$16 sps:$4 sm:$0xff]   ;;  %v2331_v54 = vpack.c.bf16 %v2235_v58, %v2227_v63  ;;  %v11221_v21 = vld [vmem:[#allocation116_spill] sm:$0xff] }
 0x2c9   : > { %4284 = vmatpush1.bf16.msra.mxu0 %v7280_v32  ;;  %4670 = vmatprep.mubr.bf16.mxu1 %v2323_v43  ;;  %v1554_v32 = vsub.f32 %v11219_v62, %v8911_v19  ;;  %v7292_v43 = vld [vmem:[#allocation5 + $0x680] ss:$16 sps:$4 sm:$0xff]   ;;  %v1571_v23 = vsub.f32 %v11221_v21, %v8942_v41  ;;  %v11222_v18 = vld [vmem:[#allocation15_spill] sm:$0xff]  ;;  %v1922_v40 = vmul.f32 %v9325_v34, %v1722_v16  ;;  %v7306_v63 = vld [vmem:[#allocation5 + $0x6c4] ss:$16 sps:$4 sm:$0xff]  }
 0x2ca   : > { %4736 = vmatpush1.bf16.msra.mxu1 %v7283_v53  ;;  %4285 = vmatprep.subr.bf16.mxu0 %v7288_v0  ;;  %v2322_v53 = vpack.c.bf16 %v2218_v60, %v2210_v42  ;;  %v2098_v0 = vadd.f32 %v9356_v13, %v1898_v36  ;;  %v1739_v62 = vmul.f32 %v11222_v18, %v1579_v52  ;;  %v2234_v36 = vmax.f32 %v2106_v22, 0.0  ;;  %v11223_v16 = vld [vmem:[#allocation115_spill] sm:$0xff] }
 0x2cb   : > { %4737 = vmatprep.subr.bf16.mxu1 %v7291_v10  ;;  %v1714_v10 = vmul.f32 %v9015_v56, %v1554_v32  ;;  %v2115_v60 = vadd.f32 %v9329_v45, %v1915_v11  ;;  %v2251_v58 = vmax.f32 %v2123_v38, 0.0  ;;  %v7301_v32 = vld [vmem:[#allocation5 + $0x6a8] ss:$16 sps:$4 sm:$0xff]   ;;  %v1570_v52 = vsub.f32 %v11223_v16, %v8942_v41 }
 0x2cc   : > { %v1939_v11 = vmul.f32 %v9320_v25, %v1739_v62  ;;  %v2122_v38 = vadd.f32 %v9356_v13, %v1922_v40 }
 0x2cd   : > { %4286 = vmatpush1.bf16.msra.mxu0 %v7286_v30  ;;  %v7303_v30 = vld [vmem:[#allocation5 + $0x6ac] ss:$16 sps:$4 sm:$0xff]   ;;  %v1914_v42 = vmul.f32 %v9325_v34, %v1714_v10  ;;  %v2243_v22 = vmax.f32 %v2115_v60, 0.0  ;;  %v1730_v62 = vmul.f32 %v9038_v8, %v1570_v52  ;;  %v7307_v60 = vld [vmem:[#allocation5 + $0x6c8] ss:$16 sps:$4 sm:$0xff]   ;;  %v11227_v52 = vld [vmem:[#allocation126_spill] sm:$0xff] }
 0x2ce   : > { %4738 = vmatpush1.bf16.msra.mxu1 %v7289_v4  ;;  %4287 = vmatprep.subr.bf16.mxu0 %v7294_v6  ;;  %v1731_v4 = vmul.f32 %v9038_v8, %v1571_v23  ;;  %v7298_v6 = vld [vmem:[#allocation5 + $0x6a0] ss:$16 sps:$4 sm:$0xff]   ;;  %v2139_v40 = vadd.f32 %v9329_v45, %v1939_v11 }
 0x2cf   : > { %4219 = vmatmul.mubr.bf16.gmra.mrb[72].mxu0 %v2322_v53  ;;  %4739 = vmatprep.subr.bf16.mxu1 %v7297_v20  ;;  %v2226_v20 = vmax.f32 %v2098_v0, 0.0  ;;  %v2339_v21 = vpack.c.bf16 %v2251_v58, %v2243_v22  ;;  %v2114_v23 = vadd.f32 %v9356_v13, %v1914_v42  ;;  %v2250_v58 = vmax.f32 %v2122_v38, 0.0 }
 0x2d0   : > { %4671 = vmatmul.mubr.bf16.gmra.mrb[72].mxu1 %v2322_v53  ;;  %4228 = vmatprep.mubr.bf16.mxu0 %v2331_v54  ;;  %v11224_v53 = vld [vmem:[#allocation118_spill] sm:$0xff]  ;;  %v1931_v10 = vmul.f32 %v9320_v25, %v1731_v4  ;;  %v11226_v4 = vld [vmem:[#allocation124_spill] sm:$0xff]  ;;  %v1930_v11 = vmul.f32 %v9325_v34, %v1730_v62  ;;  %v2267_v38 = vmax.f32 %v2139_v40, 0.0 }
 0x2d1   : > { %4288 = vmatpush1.bf16.msra.mxu0 %v7292_v43  ;;  %4680 = vmatprep.mubr.bf16.mxu1 %v2331_v54  ;;  %v1578_v43 = vsub.f32 %v11224_v53, %v8962_v9  ;;  %v2330_v54 = vpack.c.bf16 %v2234_v36, %v2226_v20  ;;  %v7312_v36 = vld [vmem:[#allocation5 + $0x6e4] ss:$16 sps:$4 sm:$0xff]   ;;  %v1587_v20 = vsub.f32 %v11226_v4, %v8978_v27 }
 0x2d2   : > { %4740 = vmatpush1.bf16.msra.mxu1 %v7295_v51  ;;  %4289 = vmatprep.subr.bf16.mxu0 %v7300_v35  ;;  %v11225_v51 = vld [vmem:[#allocation127_spill] sm:$0xff]  ;;  %v7304_v35 = vld [vmem:[#allocation5 + $0x6c0] ss:$16 sps:$4 sm:$0xff]   ;;  %v2131_v42 = vadd.f32 %v9329_v45, %v1931_v10  ;;  %v1594_v53 = vsub.f32 %v11227_v52, %v8998_v44  ;;  %v2130_v40 = vadd.f32 %v9356_v13, %v1930_v11 }
 0x2d3   : > { %4741 = vmatprep.subr.bf16.mxu1 %v7303_v30  ;;  %v1595_v0 = vsub.f32 %v11225_v51, %v8998_v44  ;;  %v1738_v30 = vmul.f32 %v11222_v18, %v1578_v43  ;;  %v2242_v43 = vmax.f32 %v2114_v23, 0.0  ;;  %v7321_v51 = vld [vmem:[#allocation5 + $0x70c] ss:$16 sps:$4 sm:$0xff]   ;;  %v7316_v23 = vld [vmem:[#allocation5 + $0x700] ss:$16 sps:$4 sm:$0xff]  }
 0x2d5   : > { %4290 = vmatpush1.bf16.msra.mxu0 %v7298_v6  ;;  %v1755_v16 = vmul.f32 %v11191_v5, %v1595_v0  ;;  %v7315_v6 = vld [vmem:[#allocation5 + $0x6ec] ss:$16 sps:$4 sm:$0xff]   ;;  %v1938_v22 = vmul.f32 %v9325_v34, %v1738_v30  ;;  %v2338_v62 = vpack.c.bf16 %v2250_v58, %v2242_v43  ;;  %v2259_v30 = vmax.f32 %v2131_v42, 0.0  ;;  %v7319_v58 = vld [vmem:[#allocation5 + $0x708] ss:$16 sps:$4 sm:$0xff]  }
 0x2d6   : > { %4742 = vmatpush1.bf16.msra.mxu1 %v7301_v32  ;;  %4291 = vmatprep.subr.bf16.mxu0 %v7306_v63  ;;  %v1747_v32 = vmul.f32 %v11192_v29, %v1587_v20  ;;  %v7310_v63 = vld [vmem:[#allocation5 + $0x6e0] ss:$16 sps:$4 sm:$0xff]   ;;  %v11228_v0 = vld [vmem:[#allocation123_spill] sm:$0xff] }
 0x2d7   : > { %4229 = vmatmul.mubr.bf16.gmra.mrb[76].mxu0 %v2330_v54  ;;  %4743 = vmatprep.subr.bf16.mxu1 %v7309_v12  ;;  %v7313_v12 = vld [vmem:[#allocation5 + $0x6e8] ss:$16 sps:$4 sm:$0xff]   ;;  %v1955_v10 = vmul.f32 %v9320_v25, %v1755_v16  ;;  %v2138_v20 = vadd.f32 %v9356_v13, %v1938_v22  ;;  %v2347_v42 = vpack.c.bf16 %v2267_v38, %v2259_v30 }
 0x2d8   : > { %4681 = vmatmul.mubr.bf16.gmra.mrb[76].mxu1 %v2330_v54  ;;  %4238 = vmatprep.mubr.bf16.mxu0 %v2339_v21  ;;  %v7318_v54 = vld [vmem:[#allocation5 + $0x704] ss:$16 sps:$4 sm:$0xff]   ;;  %v1947_v4 = vmul.f32 %v9320_v25, %v1747_v32 }
 0x2d9   : > { %4292 = vmatpush1.bf16.msra.mxu0 %v7304_v35  ;;  %4690 = vmatprep.mubr.bf16.mxu1 %v2339_v21  ;;  %v1586_v35 = vsub.f32 %v11228_v0, %v8978_v27  ;;  %v1754_v21 = vmul.f32 %v11191_v5, %v1594_v53  ;;  %v7324_v53 = vld [vmem:[#allocation5 + $0x724] ss:$16 sps:$4 sm:$0xff]   ;;  %v2155_v32 = vadd.f32 %v9329_v45, %v1955_v10  ;;  %v7325_v10 = vld [vmem:[#allocation5 + $0x728] ss:$16 sps:$4 sm:$0xff]  }
 0x2da   : > { %4744 = vmatpush1.bf16.msra.mxu1 %v7307_v60  ;;  %4293 = vmatprep.subr.bf16.mxu0 %v7312_v36  ;;  %v11229_v60 = vld [vmem:[#allocation135_spill] sm:$0xff]  ;;  %v2147_v0 = vadd.f32 %v9329_v45, %v1947_v4 }
 0x2db   : > { %4745 = vmatprep.subr.bf16.mxu1 %v7315_v6  ;;  %v1611_v36 = vsub.f32 %v11229_v60, %v9030_v31  ;;  %v1746_v16 = vmul.f32 %v11192_v29, %v1586_v35  ;;  %v11230_v6 = vld [vmem:[#allocation132_spill] sm:$0xff]  ;;  %v1954_v11 = vmul.f32 %v9325_v34, %v1754_v21  ;;  %v2258_v35 = vmax.f32 %v2130_v40, 0.0  ;;  %v7333_v60 = vld [vmem:[#allocation5 + $0x74c] ss:$16 sps:$4 sm:$0xff]  }
 0x2dc   : > { %v1603_v52 = vsub.f32 %v11230_v6, %v9012_v59  ;;  %v2283_v30 = vmax.f32 %v2155_v32, 0.0  ;;  %v2275_v6 = vmax.f32 %v2147_v0, 0.0  ;;  %v11235_v32 = vld [vmem:[#allocation140_spill] sm:$0xff] }
 0x2dd   : > { %4294 = vmatpush1.bf16.msra.mxu0 %v7310_v63  ;;  %v1771_v43 = vmul.f32 %v9110_v28, %v1611_v36  ;;  %v7327_v63 = vld [vmem:[#allocation5 + $0x72c] ss:$16 sps:$4 sm:$0xff]   ;;  %v1946_v38 = vmul.f32 %v9325_v34, %v1746_v16 }
 0x2de   : > { %4746 = vmatpush1.bf16.msra.mxu1 %v7313_v12  ;;  %4295 = vmatprep.subr.bf16.mxu0 %v7318_v54  ;;  %v1763_v22 = vmul.f32 %v9092_v2, %v1603_v52  ;;  %v7322_v12 = vld [vmem:[#allocation5 + $0x720] ss:$16 sps:$4 sm:$0xff]   ;;  %v2266_v54 = vmax.f32 %v2138_v20, 0.0  ;;  %v11231_v36 = vld [vmem:[#allocation131_spill] sm:$0xff] }
 0x2df   : > { %4239 = vmatmul.mubr.bf16.gmra.mrb[80].mxu0 %v2338_v62  ;;  %4747 = vmatprep.subr.bf16.mxu1 %v7321_v51  ;;  %v7330_v51 = vld [vmem:[#allocation5 + $0x744] ss:$16 sps:$4 sm:$0xff]   ;;  %v1971_v21 = vmul.f32 %v9320_v25, %v1771_v43 }
 0x2e0   : > { %4691 = vmatmul.mubr.bf16.gmra.mrb[80].mxu1 %v2338_v62  ;;  %4248 = vmatprep.mubr.bf16.mxu0 %v2347_v42  ;;  %v2154_v62 = vadd.f32 %v9356_v13, %v1954_v11  ;;  %v1963_v4 = vmul.f32 %v9320_v25, %v1763_v22  ;;  %v11232_v20 = vld [vmem:[#allocation134_spill] sm:$0xff]  ;;  %v11233_v52 = vld [vmem:[#allocation80_spill] sm:$0xff]  ;;  %v2346_v43 = vpack.c.bf16 %v2266_v54, %v2258_v35 }
 0x2e1   : > { %4296 = vmatpush1.bf16.msra.mxu0 %v7316_v23  ;;  %4700 = vmatprep.mubr.bf16.mxu1 %v2347_v42  ;;  %v1602_v23 = vsub.f32 %v11231_v36, %v9012_v59  ;;  %v1610_v16 = vsub.f32 %v11232_v20, %v9030_v31  ;;  %v1493_v40 = vsub.f32 %v11233_v52, %v8795_v14  ;;  %v7331_v36 = vld [vmem:[#allocation5 + $0x748] ss:$16 sps:$4 sm:$0xff]   ;;  %v7336_v52 = vld [vmem:[#allocation5 + $0x764] ss:$16 sps:$4 sm:$0xff]  }
 0x2e2   : > { %4748 = vmatpush1.bf16.msra.mxu1 %v7319_v58  ;;  %4297 = vmatprep.subr.bf16.mxu0 %v7324_v53  ;;  %v11234_v58 = vld [vmem:[#allocation82_spill] sm:$0xff]  ;;  %v9489_v53 = vld [vmem:[%s10780_s2 + $0x18] sm:$0x77]  ;;  %v2146_v11 = vadd.f32 %v9356_v13, %v1946_v38  ;;  %v2355_v20 = vpack.c.bf16 %v2283_v30, %v2275_v6  ;;  %v2282_v54 = vmax.f32 %v2154_v62, 0.0  ;;  %v2163_v35 = vadd.f32 %v9329_v45, %v1963_v4 }
 0x2e3   : > { %4749 = vmatprep.subr.bf16.mxu1 %v7327_v63  ;;  %v1501_v42 = vsub.f32 %v11234_v58, %v8799_v55  ;;  %v1805_v25 = vrot.slane %v9489_v53, %v11235_v32  ;;  %v7328_v63 = vld [vmem:[#allocation5 + $0x740] ss:$16 sps:$4 sm:$0xff]   ;;  %v1762_v22 = vmul.f32 %v9092_v2, %v1602_v23  ;;  %v1770_v0 = vmul.f32 %v9110_v28, %v1610_v16  ;;  %v11236_v23 = vld [vmem:[#allocation139_spill] sm:$0xff]  ;;  %v7342_v4 = vld [vmem:[#allocation5 + $0x784] ss:$16 sps:$4 sm:$0xff]  }
 0x2e4   : > { %v2171_v58 = vadd.f32 %v9329_v45, %v1971_v21  ;;  %v1653_v38 = vmul.f32 %v8867_v57, %v1493_v40  ;;  %v7334_v21 = vld [vmem:[#allocation5 + $0x760] ss:$16 sps:$4 sm:$0xff]   ;;  %v2274_v16 = vmax.f32 %v2146_v11, 0.0  ;;  %v7337_v45 = vld [vmem:[#allocation5 + $0x768] ss:$16 sps:$4 sm:$0xff]  }
 0x2e5   : > { %4298 = vmatpush1.bf16.msra.mxu0 %v7322_v12  ;;  %v1661_v59 = vmul.f32 %v8887_v50, %v1501_v42  ;;  %v7339_v12 = vld [vmem:[#allocation5 + $0x76c] ss:$16 sps:$4 sm:$0xff]   ;;  %v1970_v62 = vmul.f32 %v9325_v34, %v1770_v0  ;;  %v7340_v0 = vld [vmem:[#allocation5 + $0x780] ss:$16 sps:$4 sm:$0xff]  }
 0x2e6   : > { %4750 = vmatpush1.bf16.msra.mxu1 %v7325_v10  ;;  %4299 = vmatprep.subr.bf16.mxu0 %v7330_v51  ;;  %v9501_v10 = vrot.slane %v1805_v25, %v11236_v23  ;;  %v11237_v51 = vld [vmem:[#allocation141_spill] sm:$0xff]  ;;  %v2299_v6 = vmax.f32 %v2171_v58, 0.0  ;;  %v2354_v42 = vpack.c.bf16 %v2282_v54, %v2274_v16 }
 0x2e7   : > { %4249 = vmatmul.mubr.bf16.gmra.mrb[84].mxu0 %v2346_v43  ;;  %4751 = vmatprep.subr.bf16.mxu1 %v7333_v60  ;;  %v2005_v30 = vrot.slane %v9489_v53, %v11237_v51  ;;  %v1962_v60 = vmul.f32 %v9325_v34, %v1762_v22  ;;  %v7345_v25 = vld [vmem:[#allocation5 + $0x78c] ss:$16 sps:$4 sm:$0xff]   ;;  %v1801_v34 = vrot.slane %v9489_v53, %v11236_v23 }
 0x2e8   : > { %4701 = vmatmul.mubr.bf16.gmra.mrb[84].mxu1 %v2346_v43  ;;  %4258 = vmatprep.mubr.bf16.mxu0 %v2355_v20  ;;  %v1861_v40 = vmul.f32 %v9501_v10, %v1661_v59  ;;  %v2291_v43 = vmax.f32 %v2163_v35, 0.0  ;;  %v11238_v11 = vld [vmem:[#allocation81_spill] sm:$0xff]  ;;  %v2170_v59 = vadd.f32 %v9356_v13, %v1970_v62 }
 0x2e9   : > { %4300 = vmatpush1.bf16.msra.mxu0 %v7328_v63  ;;  %4710 = vmatprep.mubr.bf16.mxu1 %v2355_v20  ;;  %v1853_v63 = vmul.f32 %v9501_v10, %v1653_v38  ;;  %v9510_v20 = vrot.slane %v2005_v30, %v8812_v26  ;;  %v1500_v22 = vsub.f32 %v11238_v11, %v8799_v55  ;;  %v7343_v35 = vld [vmem:[#allocation5 + $0x788] ss:$16 sps:$4 sm:$0xff]   ;;  %v7348_v55 = vld [vmem:[#allocation5 + $0x7a4] ss:$16 sps:$4 sm:$0xff]   ;;  %v7351_v16 = vld [vmem:[#allocation5 + $0x7ac] ss:$16 sps:$4 sm:$0xff]  }
 0x2ea   : > { %4752 = vmatpush1.bf16.msra.mxu1 %v7331_v36  ;;  %4301 = vmatprep.subr.bf16.mxu0 %v7336_v52  ;;  %v2162_v36 = vadd.f32 %v9356_v13, %v1962_v60  ;;  %v11239_v52 = vld [vmem:[#allocation78_spill] sm:$0xff]  ;;  %v2363_v38 = vpack.c.bf16 %v2299_v6, %v2291_v43  ;;  %v11241_v60 = vld [vmem:[#allocation88_spill] sm:$0xff] }
 0x2eb   : > { %4753 = vmatprep.subr.bf16.mxu1 %v7339_v12  ;;  %v1492_v58 = vsub.f32 %v11239_v52, %v8795_v14  ;;  %v11240_v12 = vld [vmem:[#allocation90_spill] sm:$0xff]  ;;  %v2061_v30 = vadd.f32 %v9510_v20, %v1861_v40  ;;  %v1509_v14 = vsub.f32 %v11241_v60, %v8803_v17  ;;  %v2298_v40 = vmax.f32 %v2170_v59, 0.0  ;;  %v11242_v59 = vld [vmem:[#allocation89_spill] sm:$0xff] }
 0x2ec   : > { %v1517_v54 = vsub.f32 %v11240_v12, %v8819_v24  ;;  %v7346_v6 = vld [vmem:[#allocation5 + $0x7a0] ss:$16 sps:$4 sm:$0xff]   ;;  %v7354_v43 = vld [vmem:[#allocation5 + $0x7c4] ss:$16 sps:$4 sm:$0xff]  }
 0x2ed   : > { %4302 = vmatpush1.bf16.msra.mxu0 %v7334_v21  ;;  %v1660_v21 = vmul.f32 %v8887_v50, %v1500_v22  ;;  %v1652_v13 = vmul.f32 %v8867_v57, %v1492_v58  ;;  %v2001_v50 = vrot.slane %v9489_v53, %v8812_v26  ;;  %v1669_v57 = vmul.f32 %v8902_v3, %v1509_v14  ;;  %v7357_v22 = vld [vmem:[#allocation5 + $0x7cc] ss:$16 sps:$4 sm:$0xff]  }
 0x2ee   : > { %4754 = vmatpush1.bf16.msra.mxu1 %v7337_v45  ;;  %4303 = vmatprep.subr.bf16.mxu0 %v7342_v4  ;;  %v1677_v62 = vmul.f32 %v8918_v15, %v1517_v54  ;;  %v2053_v45 = vadd.f32 %v9510_v20, %v1853_v63  ;;  %v9530_v4 = vrot.slane %v1801_v34, %v11236_v23  ;;  %v2290_v63 = vmax.f32 %v2162_v36, 0.0  ;;  %v7352_v54 = vld [vmem:[#allocation5 + $0x7c0] ss:$16 sps:$4 sm:$0xff]   ;;  %v7363_v14 = vld [vmem:[#allocation5 + $0x7ec] ss:$16 sps:$4 sm:$0xff]  }
 0x2ef   : > { %4259 = vmatmul.mubr.bf16.gmra.mrb[88].mxu0 %v2354_v42  ;;  %4755 = vmatprep.subr.bf16.mxu1 %v7345_v25  ;;  %v7349_v25 = vld [vmem:[#allocation5 + $0x7a8] ss:$16 sps:$4 sm:$0xff]   ;;  %v1516_v58 = vsub.f32 %v11242_v59, %v8819_v24 }
 0x2f0   : > { %4711 = vmatmul.mubr.bf16.gmra.mrb[88].mxu1 %v2354_v42  ;;  %4268 = vmatprep.mubr.bf16.mxu0 %v2363_v38  ;;  %v2189_v42 = vmax.f32 %v2061_v30, 0.0  ;;  %v1860_v11 = vmul.f32 %v9530_v4, %v1660_v21  ;;  %v1877_v34 = vmul.f32 %v9501_v10, %v1677_v62  ;;  %v2181_v52 = vmax.f32 %v2053_v45, 0.0  ;;  %v7355_v21 = vld [vmem:[#allocation5 + $0x7c8] ss:$16 sps:$4 sm:$0xff]   ;;  %v11245_v45 = vld [vmem:[#allocation96_spill] sm:$0xff] }
 0x2f1   : > { %4304 = vmatpush1.bf16.msra.mxu0 %v7340_v0  ;;  %4720 = vmatprep.mubr.bf16.mxu1 %v2363_v38  ;;  %v1852_v53 = vmul.f32 %v9530_v4, %v1652_v13  ;;  %v9539_v0 = vrot.slane %v2001_v50, %v8812_v26  ;;  %v2362_v12 = vpack.c.bf16 %v2298_v40, %v2290_v63  ;;  %v11243_v38 = vld [vmem:[#allocation85_spill] sm:$0xff]  ;;  %v7360_v13 = vld [vmem:[#allocation5 + $0x7e4] ss:$16 sps:$4 sm:$0xff]  }
 0x2f2   : > { %4756 = vmatpush1.bf16.msra.mxu1 %v7343_v35  ;;  %4305 = vmatprep.subr.bf16.mxu0 %v7348_v55  ;;  %v1869_v35 = vmul.f32 %v9501_v10, %v1669_v57  ;;  %v1508_v36 = vsub.f32 %v11243_v38, %v8803_v17  ;;  %v11244_v55 = vld [vmem:[#allocation98_spill] sm:$0xff]  ;;  %v1676_v24 = vmul.f32 %v8918_v15, %v1516_v58 }
 0x2f3   : > { %4757 = vmatprep.subr.bf16.mxu1 %v7351_v16  ;;  %v1533_v30 = vsub.f32 %v11244_v55, %v8855_v1  ;;  %v2309_v16 = vpack.c.bf16 %v2189_v42, %v2181_v52  ;;  %v2060_v60 = vadd.f32 %v9539_v0, %v1860_v11  ;;  %v2077_v62 = vadd.f32 %v9510_v20, %v1877_v34  ;;  %v7358_v57 = vld [vmem:[#allocation5 + $0x7e0] ss:$16 sps:$4 sm:$0xff]   ;;  %v11246_v52 = vld [vmem:[#allocation97_spill] sm:$0xff] }
 0x2f4   : > { %v1525_v17 = vsub.f32 %v11245_v45, %v8828_v61  ;;  %v1668_v40 = vmul.f32 %v8902_v3, %v1508_v36  ;;  %v2069_v15 = vadd.f32 %v9510_v20, %v1869_v35  ;;  %v1876_v11 = vmul.f32 %v9530_v4, %v1676_v24  ;;  %v11248_v36 = vld [vmem:[#allocation93_spill] sm:$0xff] }
 0x2f5   : > { %4306 = vmatpush1.bf16.msra.mxu0 %v7346_v6  ;;  %v1693_v50 = vmul.f32 %v8951_v47, %v1533_v30  ;;  %v2052_v6 = vadd.f32 %v9539_v0, %v1852_v53  ;;  %v2188_v42 = vmax.f32 %v2060_v60, 0.0  ;;  %v2205_v63 = vmax.f32 %v2077_v62, 0.0 }
 0x2f6   : > { %4758 = vmatpush1.bf16.msra.mxu1 %v7349_v25  ;;  %4307 = vmatprep.subr.bf16.mxu0 %v7354_v43  ;;  %v1685_v25 = vmul.f32 %v8930_v7, %v1525_v17  ;;  %v7361_v43 = vld [vmem:[#allocation5 + $0x7e8] ss:$16 sps:$4 sm:$0xff]   ;;  %v1868_v3 = vmul.f32 %v9530_v4, %v1668_v40  ;;  %v1532_v53 = vsub.f32 %v11246_v52, %v8855_v1  ;;  %v2197_v59 = vmax.f32 %v2069_v15, 0.0  ;;  %v11249_v1 = vld [vmem:[#allocation104_spill] sm:$0xff] }
 0x2f7   : > { %4269 = vmatmul.mubr.bf16.gmra.mrb[92].mxu0 %v2362_v12  ;;  %4759 = vmatprep.subr.bf16.mxu1 %v7357_v22  ;;  %v1893_v22 = vmul.f32 %v9501_v10, %v1693_v50  ;;  %v2180_v34 = vmax.f32 %v2052_v6, 0.0  ;;  %v2076_v38 = vadd.f32 %v9539_v0, %v1876_v11  ;;  %v1524_v55 = vsub.f32 %v11248_v36, %v8828_v61 }
 0x2f8   : > { %4721 = vmatmul.mubr.bf16.gmra.mrb[92].mxu1 %v2362_v12  ;;  %4311 = vmatprep.mubr.bf16.mxu0 %v2309_v16  ;;  %v1885_v58 = vmul.f32 %v9501_v10, %v1685_v25  ;;  %v11247_v12 = vld [vmem:[#allocation106_spill] sm:$0xff]  ;;  %v1692_v30 = vmul.f32 %v8951_v47, %v1532_v53  ;;  %v2068_v24 = vadd.f32 %v9539_v0, %v1868_v3 }
 0x2f9   : > { %4308 = vmatpush1.bf16.msra.mxu0 %v7352_v54  ;;  %4763 = vmatprep.mubr.bf16.mxu1 %v2309_v16  ;;  %v1549_v54 = vsub.f32 %v11247_v12, %v8897_v46  ;;  %v2308_v35 = vpack.c.bf16 %v2188_v42, %v2180_v34  ;;  %v2093_v16 = vadd.f32 %v9510_v20, %v1893_v22  ;;  %v2204_v47 = vmax.f32 %v2076_v38, 0.0  ;;  %v11252_v22 = vld [vmem:[#allocation101_spill] sm:$0xff] }
 0x2fa   : > { %4760 = vmatpush1.bf16.msra.mxu1 %v7355_v21  ;;  %4309 = vmatprep.subr.bf16.mxu0 %v7360_v13  ;;  %v2317_v21 = vpack.c.bf16 %v2205_v63, %v2197_v59  ;;  %v1541_v13 = vsub.f32 %v11249_v1, %v8875_v49  ;;  %v2085_v62 = vadd.f32 %v9510_v20, %v1885_v58  ;;  %v2196_v6 = vmax.f32 %v2068_v24, 0.0  ;;  %v11253_v59 = vld [vmem:[#allocation112_spill] sm:$0xff] }
 0x2fb   : > { %4761 = vmatprep.subr.bf16.mxu1 %v7363_v14  ;;  %v1709_v60 = vmul.f32 %v8989_v33, %v1549_v54  ;;  %v1684_v14 = vmul.f32 %v8930_v7, %v1524_v55  ;;  %v1892_v45 = vmul.f32 %v9530_v4, %v1692_v30  ;;  %v2221_v17 = vmax.f32 %v2093_v16, 0.0  ;;  %v11254_v16 = vld [vmem:[#allocation113_spill] sm:$0xff] }
 0x2fc   : > { %v1701_v61 = vmul.f32 %v8969_v39, %v1541_v13  ;;  %v2213_v7 = vmax.f32 %v2085_v62, 0.0  ;;  %v2316_v11 = vpack.c.bf16 %v2204_v47, %v2196_v6  ;;  %v1540_v34 = vsub.f32 %v11252_v22, %v8875_v49  ;;  %v11257_v6 = vld [vmem:[#allocation120_spill] sm:$0xff]  ;;  %v11258_v22 = vld [vmem:[#allocation121_spill] sm:$0xff] }
 0x2fd   : > { %4310 = vmatpush1.bf16.msra.mxu0 %v7358_v57  ;;  %v1909_v50 = vmul.f32 %v9501_v10, %v1709_v60  ;;  %v1884_v40 = vmul.f32 %v9530_v4, %v1684_v14  ;;  %v11250_v57 = vld [vmem:[#allocation105_spill] sm:$0xff]  ;;  %v2092_v63 = vadd.f32 %v9539_v0, %v1892_v45  ;;  %v1564_v1 = vsub.f32 %v11254_v16, %v8927_v37  ;;  %v11255_v60 = vld [vmem:[#allocation122_spill] sm:$0xff] }
 0x2fe   : > { %4762 = vmatpush1.bf16.msra.mxu1 %v7361_v43  ;;  %v1548_v15 = vsub.f32 %v11250_v57, %v8897_v46  ;;  %v1901_v25 = vmul.f32 %v9501_v10, %v1701_v61  ;;  %v11251_v43 = vld [vmem:[#allocation114_spill] sm:$0xff]  ;;  %v2325_v52 = vpack.c.bf16 %v2221_v17, %v2213_v7  ;;  %v1557_v46 = vsub.f32 %v11253_v59, %v8911_v19  ;;  %v11256_v61 = vld [vmem:[#allocation109_spill] sm:$0xff] }
 0x2ff   : > { %v1565_v42 = vsub.f32 %v11251_v43, %v8927_v37  ;;  %v2109_v53 = vadd.f32 %v9510_v20, %v1909_v50  ;;  %v2084_v12 = vadd.f32 %v9539_v0, %v1884_v40  ;;  %v1700_v54 = vmul.f32 %v8969_v39, %v1540_v34 }
 0x300   : > { %4312 = vmatmul.mubr.bf16.vlgmr.msra.gmra.mrb[64].mxu0 %v2308_v35  ;;  %v1708_v3 = vmul.f32 %v8989_v33, %v1548_v15  ;;  %v1717_v49 = vmul.f32 %v9015_v56, %v1557_v46  ;;  %v2220_v33 = vmax.f32 %v2092_v63, 0.0  ;;  %v1581_v24 = vsub.f32 %v11255_v60, %v8962_v9  ;;  %v11262_v60 = vld [vmem:[#allocation129_spill] sm:$0xff] }
 0x301   : > { %4764 = vmatmul.mubr.bf16.vlgmr.msra.gmra.mrb[64].mxu1 %v2308_v35  ;;  %4321 = vmatprep.mubr.bf16.mxu0 %v2317_v21  ;;  %v1725_v58 = vmul.f32 %v9024_v48, %v1565_v42  ;;  %v2101_v35 = vadd.f32 %v9510_v20, %v1901_v25  ;;  %v2237_v36 = vmax.f32 %v2109_v53, 0.0  ;;  %v2212_v30 = vmax.f32 %v2084_v12, 0.0 }
 0x302   : > { %4773 = vmatprep.mubr.bf16.mxu1 %v2317_v21  ;;  %v1908_v38 = vmul.f32 %v9530_v4, %v1708_v3  ;;  %v1900_v21 = vmul.f32 %v9530_v4, %v1700_v54  ;;  %v1917_v13 = vmul.f32 %v9501_v10, %v1717_v49  ;;  %v1556_v47 = vsub.f32 %v11256_v61, %v8911_v19 }
 0x303   : > { %v1925_v55 = vmul.f32 %v9501_v10, %v1725_v58  ;;  %v2229_v39 = vmax.f32 %v2101_v35, 0.0  ;;  %v2324_v14 = vpack.c.bf16 %v2220_v33, %v2212_v30  ;;  %v1724_v45 = vmul.f32 %v9024_v48, %v1564_v1  ;;  %v11260_v58 = vld [vmem:[#allocation117_spill] sm:$0xff]  ;;  %v11261_v33 = vld [vmem:[#allocation128_spill] sm:$0xff] }
 0x304   : > { %v2108_v62 = vadd.f32 %v9539_v0, %v1908_v38  ;;  %v1573_v37 = vsub.f32 %v11257_v6, %v8942_v41  ;;  %v1741_v40 = vmul.f32 %v11222_v18, %v1581_v24  ;;  %v2100_v57 = vadd.f32 %v9539_v0, %v1900_v21 }
 0x305   : > { %v2333_v17 = vpack.c.bf16 %v2237_v36, %v2229_v39  ;;  %v2125_v50 = vadd.f32 %v9510_v20, %v1925_v55  ;;  %v1716_v15 = vmul.f32 %v9015_v56, %v1556_v47  ;;  %v2117_v7 = vadd.f32 %v9510_v20, %v1917_v13 }
 0x306   : > { %v1733_v19 = vmul.f32 %v9038_v8, %v1573_v37  ;;  %v2236_v48 = vmax.f32 %v2108_v62, 0.0  ;;  %v1924_v25 = vmul.f32 %v9530_v4, %v1724_v45  ;;  %v1941_v42 = vmul.f32 %v9501_v10, %v1741_v40  ;;  %v11263_v62 = vld [vmem:[#allocation138_spill] sm:$0xff] }
 0x307   : > { %v2253_v43 = vmax.f32 %v2125_v50, 0.0  ;;  %v1916_v63 = vmul.f32 %v9530_v4, %v1716_v15  ;;  %v1580_v34 = vsub.f32 %v11258_v22, %v8962_v9  ;;  %v2245_v56 = vmax.f32 %v2117_v7, 0.0  ;;  %v11266_v15 = vld [vmem:[#allocation136_spill] sm:$0xff] }
 0x308   : > { %4322 = vmatmul.mubr.bf16.gmra.mrb[68].mxu0 %v2316_v11  ;;  %v1933_v3 = vmul.f32 %v9501_v10, %v1733_v19  ;;  %v2124_v46 = vadd.f32 %v9539_v0, %v1924_v25  ;;  %v1572_v12 = vsub.f32 %v11260_v58, %v8942_v41  ;;  %v2141_v49 = vadd.f32 %v9510_v20, %v1941_v42 }
 0x309   : > { %4774 = vmatmul.mubr.bf16.gmra.mrb[68].mxu1 %v2316_v11  ;;  %4331 = vmatprep.mubr.bf16.mxu0 %v2325_v52  ;;  %v2228_v11 = vmax.f32 %v2100_v57, 0.0  ;;  %v1740_v54 = vmul.f32 %v11222_v18, %v1580_v34  ;;  %v2341_v35 = vpack.c.bf16 %v2253_v43, %v2245_v56  ;;  %v1589_v9 = vsub.f32 %v11261_v33, %v8978_v27  ;;  %v11265_v57 = vld [vmem:[#allocation16_spill] sm:$0xff]  ;;  %v11267_v34 = vld [vmem:[#allocation137_spill] sm:$0xff] }
 0x30a   : > { %4783 = vmatprep.mubr.bf16.mxu1 %v2325_v52  ;;  %v11259_v52 = vld [vmem:[#allocation130_spill] sm:$0xff]  ;;  %v2116_v36 = vadd.f32 %v9539_v0, %v1916_v63  ;;  %v1732_v55 = vmul.f32 %v9038_v8, %v1572_v12  ;;  %v2133_v30 = vadd.f32 %v9510_v20, %v1933_v3  ;;  %v2252_v18 = vmax.f32 %v2124_v46, 0.0 }
 0x30b   : > { %v1597_v53 = vsub.f32 %v11259_v52, %v8998_v44  ;;  %v2332_v59 = vpack.c.bf16 %v2236_v48, %v2228_v11  ;;  %v1749_v41 = vmul.f32 %v11192_v29, %v1589_v9  ;;  %v1940_v21 = vmul.f32 %v9530_v4, %v1740_v54 }
 0x30c   : > { %v2269_v16 = vmax.f32 %v2141_v49, 0.0  ;;  %v2244_v39 = vmax.f32 %v2116_v36, 0.0  ;;  %v1932_v13 = vmul.f32 %v9530_v4, %v1732_v55  ;;  %v1596_v24 = vsub.f32 %v11262_v60, %v8998_v44  ;;  %v7369_v60 = vld [vmem:[%s10783_s5 + $0x8] sm:$0xff]  }
 0x30d   : > { %v1757_v38 = vmul.f32 %v11191_v5, %v1597_v53  ;;  %v2261_v8 = vmax.f32 %v2133_v30, 0.0  ;;  %v1613_v61 = vsub.f32 %v11263_v62, %v9030_v31  ;;  %v2140_v45 = vadd.f32 %v9539_v0, %v1940_v21  ;;  %v7373_v62 = vld [vmem:[%s10783_s5 + $0x10] sm:$0xff]  }
 0x30e   : > { %v2340_v47 = vpack.c.bf16 %v2252_v18, %v2244_v39  ;;  %v1756_v6 = vmul.f32 %v11191_v5, %v1596_v24  ;;  %v1605_v44 = vsub.f32 %v11266_v15, %v11265_v57  ;;  %v2132_v19 = vadd.f32 %v9539_v0, %v1932_v13  ;;  %v7368_v39 = vld [vmem:[%s10783_s5 + $0x48] sm:$0xff]  }
 0x30f   : > { %v1957_v1 = vmul.f32 %v9501_v10, %v1757_v38  ;;  %v2349_v37 = vpack.c.bf16 %v2269_v16, %v2261_v8  ;;  %v1773_v7 = vmul.f32 %v9110_v28, %v1613_v61  ;;  %v2268_v5 = vmax.f32 %v2140_v45, 0.0  ;;  %v7365_v16 = vld [vmem:[%s10783_s5] sm:$0xff]   ;;  %v7370_v13 = vld [vmem:[%s10783_s5 + $0xc8] sm:$0xff]   ;;  %v7372_v8 = vld [vmem:[%s10783_s5 + $0x50] sm:$0xff]  }
 0x310   : > { %4332 = vmatmul.mubr.bf16.gmra.mrb[72].mxu0 %v2324_v14  ;;  %v1956_v43 = vmul.f32 %v9530_v4, %v1756_v6  ;;  %v2260_v63 = vmax.f32 %v2132_v19, 0.0  ;;  %v1612_v56 = vsub.f32 %v11267_v34, %v9030_v31  ;;  %v7371_v24 = vld [vmem:[%s10783_s5 + $0x88] sm:$0xff]   ;;  %v7375_v61 = vld [vmem:[%s10783_s5 + $0x90] sm:$0xff]   ;;  %v7378_v45 = vld [vmem:[%s10783_s5 + $0xd8] sm:$0xff]  }
 0x311   : > { %4784 = vmatmul.mubr.bf16.gmra.mrb[72].mxu1 %v2324_v14  ;;  %4341 = vmatprep.mubr.bf16.mxu0 %v2333_v17  ;;  %v1949_v14 = vmul.f32 %v9501_v10, %v1749_v41  ;;  %v2157_v40 = vadd.f32 %v9510_v20, %v1957_v1  ;;  %v1973_v11 = vmul.f32 %v9501_v10, %v1773_v7  ;;  %v7367_v1 = vld [vmem:[%s10783_s5 + $0x80] sm:$0xff]  }
 0x312   : > { %4793 = vmatprep.mubr.bf16.mxu1 %v2333_v17  ;;  %v11264_v17 = vld [vmem:[#allocation125_spill] sm:$0xff]  ;;  %v2348_v52 = vpack.c.bf16 %v2268_v5, %v2260_v63  ;;  %v2156_v53 = vadd.f32 %v9539_v0, %v1956_v43  ;;  %v1772_v58 = vmul.f32 %v9110_v28, %v1612_v56  ;;  %v9727_v6 = vld [vmem:[%s10782_s4] sm:$0x77] }
 0x313   : > { %v1588_v50 = vsub.f32 %v11264_v17, %v8978_v27  ;;  %v2149_v25 = vadd.f32 %v9510_v20, %v1949_v14  ;;  %v1765_v27 = vmul.f32 %v9092_v2, %v1605_v44  ;;  %v2285_v42 = vmax.f32 %v2157_v40, 0.0  ;;  %v7374_v14 = vld [vmem:[%s10783_s5 + $0xd0] sm:$0xff]   ;;  %v7377_v17 = vld [vmem:[%s10783_s5 + $0x18] sm:$0xff]   ;;  %v11269_v40 = vld [vmem:[#allocation12_spill] sm:$0xff] }
 0x314   : > { %v2173_v54 = vadd.f32 %v9510_v20, %v1973_v11  ;;  %v1972_v33 = vmul.f32 %v9530_v4, %v1772_v58  ;;  %v11270_v44 = vld [vmem:[#allocation13_spill] sm:$0xff] }
 0x315   : > { %v1748_v48 = vmul.f32 %v11192_v29, %v1588_v50  ;;  %v2277_v29 = vmax.f32 %v2149_v25, 0.0  ;;  %v1965_v3 = vmul.f32 %v9501_v10, %v1765_v27  ;;  %v2284_v10 = vmax.f32 %v2156_v53, 0.0  ;;  %v7379_v50 = vld [vmem:[%s10783_s5 + $0x98] sm:$0xff]  }
 0x316   : > { %v2301_v9 = vmax.f32 %v2173_v54, 0.0  ;;  %v2172_v30 = vadd.f32 %v9539_v0, %v1972_v33  ;;  %v2631_v7 = vrot.slane %v9727_v6, %v11270_v44 }
 0x317   : > { %v1948_v22 = vmul.f32 %v9530_v4, %v1748_v48  ;;  %v2357_v12 = vpack.c.bf16 %v2285_v42, %v2277_v29  ;;  %v2165_v31 = vadd.f32 %v9510_v20, %v1965_v3 }
 0x318   : > { %4342 = vmatmul.mubr.bf16.gmra.mrb[76].mxu0 %v2332_v59  ;;  %v2300_v20 = vmax.f32 %v2172_v30, 0.0  ;;  %v9747_v25 = vrot.slane %v2631_v7, %v11269_v40 }
 0x319   : > { %4794 = vmatmul.mubr.bf16.gmra.mrb[76].mxu1 %v2332_v59  ;;  %4351 = vmatprep.mubr.bf16.mxu0 %v2341_v35  ;;  %v11268_v59 = vld [vmem:[#allocation133_spill] sm:$0xff]  ;;  %v2293_v36 = vmax.f32 %v2165_v31, 0.0 }
 0x31a   : > { %4803 = vmatprep.mubr.bf16.mxu1 %v2341_v35  ;;  %v1604_v46 = vsub.f32 %v11268_v59, %v11265_v57  ;;  %v2148_v35 = vadd.f32 %v9539_v0, %v1948_v22  ;;  %v2627_v57 = vrot.slane %v9727_v6, %v11269_v40 }
 0x31b   : > { %v2365_v41 = vpack.c.bf16 %v2301_v9, %v2293_v36 }
 0x31c   : > { %v1764_v49 = vmul.f32 %v9092_v2, %v1604_v46  ;;  %v2276_v38 = vmax.f32 %v2148_v35, 0.0  ;;  %v9741_v19 = vrot.slane %v2627_v57, %v11269_v40 }
 0x31e   : > { %v1964_v28 = vmul.f32 %v9530_v4, %v1764_v49  ;;  %v2356_v55 = vpack.c.bf16 %v2284_v10, %v2276_v38  ;;  %v7364_v4 = vld [vmem:[%s10783_s5 + $0x40] sm:$0xff]  }
 0x31f   : > { %6529 = vmatprep.subr.bf16.mxu0 %v7364_v4 }
 0x320   : > { %4352 = vmatmul.mubr.bf16.gmra.mrb[80].mxu0 %v2340_v47  ;;  %v2164_v2 = vadd.f32 %v9539_v0, %v1964_v28  ;;  %v7366_v0 = vld [vmem:[%s10783_s5 + $0xc0] sm:$0xff]  }
 0x321   : > { %4804 = vmatmul.mubr.bf16.gmra.mrb[80].mxu1 %v2340_v47  ;;  %4361 = vmatprep.mubr.bf16.mxu0 %v2349_v37  ;;  %v7376_v47 = vld [vmem:[%s10783_s5 + $0x58] sm:$0xff]  }
 0x322   : > { %4813 = vmatprep.mubr.bf16.mxu1 %v2349_v37  ;;  %v2292_v18 = vmax.f32 %v2164_v2, 0.0  ;;  %6593 = vmatprep.subr.bf16.mxu1 %v7366_v0  ;;  %v9732_v37 = vld [vmem:[%s10782_s4 + $0x8] sm:$0x77] }
 0x323   : > { %6530 = vmatpush3.bf16.msra.mxu0 %v7365_v16  ;;  %6594 = vmatpush3.bf16.msra.mxu1 %v7367_v1  ;;  %v2635_v15 = vrot.slane %v9732_v37, %v11269_v40  ;;  %v2639_v27 = vrot.slane %v9732_v37, %v11270_v44 }
 0x324   : > { %v2364_v21 = vpack.c.bf16 %v2300_v20, %v2292_v18  ;;  %6531 = vmatprep.subr.bf16.mxu0 %v7368_v39  ;;  %6595 = vmatprep.subr.bf16.mxu1 %v7370_v13 }
 0x325   : > { %v9744_v48 = vrot.slane %v2635_v15, %v11269_v40  ;;  %v9761_v34 = vrot.slane %v2639_v27, %v11269_v40 }
 0x327   : > { %6532 = vmatpush3.bf16.msra.mxu0 %v7369_v60  ;;  %6596 = vmatpush3.bf16.msra.mxu1 %v7371_v24 }
 0x328   : > { %4362 = vmatmul.mubr.bf16.gmra.mrb[84].mxu0 %v2348_v52  ;;  %6533 = vmatprep.subr.bf16.mxu0 %v7372_v8 }
 0x329   : > { %4814 = vmatmul.mubr.bf16.gmra.mrb[84].mxu1 %v2348_v52  ;;  %4371 = vmatprep.mubr.bf16.mxu0 %v2357_v12 }
 0x32a   : > { %4823 = vmatprep.mubr.bf16.mxu1 %v2357_v12  ;;  %6597 = vmatprep.subr.bf16.mxu1 %v7374_v14 }
 0x32b   : > { %6534 = vmatpush3.bf16.msra.mxu0 %v7373_v62  ;;  %6598 = vmatpush3.bf16.msra.mxu1 %v7375_v61 }
 0x32c   : > { %6535 = vmatprep.subr.bf16.mxu0 %v7376_v47  ;;  %6599 = vmatprep.subr.bf16.mxu1 %v7378_v45 }
 0x32f   : > { %6536 = vmatpush3.bf16.msra.mxu0 %v7377_v17  ;;  %6600 = vmatpush3.bf16.msra.mxu1 %v7379_v50 }
 0x330   : > { %4372 = vmatmul.mubr.bf16.gmra.mrb[88].mxu0 %v2356_v55 }
 0x331   : > { %4824 = vmatmul.mubr.bf16.gmra.mrb[88].mxu1 %v2356_v55  ;;  %4381 = vmatprep.mubr.bf16.mxu0 %v2365_v41 }
 0x332   : > { %4833 = vmatprep.mubr.bf16.mxu1 %v2365_v41 }
 0x338   : > { %4382 = vmatmul.mubr.bf16.gmra.mrb[92].mxu0 %v2364_v21 }
 0x339   : > { %4834 = vmatmul.mubr.bf16.gmra.mrb[92].mxu1 %v2364_v21 }
 0x3d3   : > { %v4313_v5 = vpop.f32.mrb[64].mxu0 }
 0x3d4   : > { %v9752_v43 = vadd.f32 %v4313_v5, %v9741_v19  ;;  %v4765_v42 = vpop.f32.mrb[64].mxu1  ;;  %v4315_v11 = vpop.f32.mrb[65].mxu0 }
 0x3d5   : > { %v9755_v63 = vadd.f32 %v4765_v42, %v9744_v48  ;;  %v9758_v22 = vadd.f32 %v4315_v11, %v9747_v25  ;;  %v4767_v56 = vpop.f32.mrb[65].mxu1  ;;  %v4317_v29 = vpop.f32.mrb[66].mxu0 }
 0x3d6   : > { %v4924_v3 = vmul.f32 %v9752_v43, %v9752_v43  ;;  %v9766_v52 = vadd.f32 %v4317_v29, %v9741_v19  ;;  %v4769_v53 = vpop.f32.mrb[66].mxu1  ;;  %v4319_v59 = vpop.f32.mrb[67].mxu0  ;;  %v9780_v31 = vadd.f32 %v4767_v56, %v9761_v34 }
 0x3d7   : > { %v4844_v46 = vadd.f32 %v9758_v22, %v9752_v43  ;;  %v4925_v58 = vmul.f32 %v9758_v22, %v9758_v22  ;;  %v4771_v12 = vpop.f32.mrb[67].mxu1  ;;  %v9775_v35 = vadd.f32 %v4319_v59, %v9747_v25  ;;  %v4926_v49 = vmul.f32 %v9755_v63, %v9755_v63 }
 0x3d8   : > { %v4928_v54 = vmul.f32 %v9766_v52, %v9766_v52  ;;  %v9784_v9 = vadd.f32 %v4769_v53, %v9744_v48  ;;  %v9792_v41 = vadd.f32 %v4771_v12, %v9761_v34  ;;  %v4927_v13 = vmul.f32 %v9780_v31, %v9780_v31 }
 0x3d9   : > { %v4845_v10 = vadd.f32 %v9755_v63, %v4844_v46  ;;  %v4988_v33 = vadd.f32 %v4925_v58, %v4924_v3  ;;  %v4849_v38 = vadd.f32 %v9775_v35, %v9766_v52  ;;  %v4929_v28 = vmul.f32 %v9775_v35, %v9775_v35 }
 0x3da   : > { %v4930_v60 = vmul.f32 %v9784_v9, %v9784_v9  ;;  %v4931_v15 = vmul.f32 %v9792_v41, %v9792_v41 }
 0x3db   : > { %v4323_v36 = vpop.f32.mrb[68].mxu0  ;;  %v4846_v55 = vadd.f32 %v9780_v31, %v4845_v10  ;;  %v4989_v30 = vadd.f32 %v4988_v33, %v4926_v49  ;;  %v4850_v21 = vadd.f32 %v9784_v9, %v4849_v38  ;;  %v4993_v4 = vadd.f32 %v4929_v28, %v4928_v54 }
 0x3dc   : > { %v9795_v2 = vadd.f32 %v4323_v36, %v9741_v19  ;;  %v4775_v20 = vpop.f32.mrb[68].mxu1  ;;  %v4325_v18 = vpop.f32.mrb[69].mxu0 }
 0x3dd   : > { %v9799_v16 = vadd.f32 %v4775_v20, %v9744_v48  ;;  %v9802_v0 = vadd.f32 %v4325_v18, %v9747_v25  ;;  %v4777_v1 = vpop.f32.mrb[69].mxu1  ;;  %v4327_v39 = vpop.f32.mrb[70].mxu0  ;;  %4847 = vadd.xlane.f32.xlu0 %v4846_v55  ;;  %v4851_v61 = vadd.f32 %v9792_v41, %v4850_v21  ;;  %v4990_v50 = vadd.f32 %v4989_v30, %v4927_v13 }
 0x3de   : > { %v4932_v24 = vmul.f32 %v9795_v2, %v9795_v2  ;;  %v9811_v8 = vadd.f32 %v4327_v39, %v9741_v19  ;;  %v4779_v14 = vpop.f32.mrb[70].mxu1  ;;  %v4329_v62 = vpop.f32.mrb[71].mxu0  ;;  %v4994_v44 = vadd.f32 %v4993_v4, %v4930_v60  ;;  %v9828_v27 = vadd.f32 %v4777_v1, %v9761_v34 }
 0x3df   : > { %v4854_v47 = vadd.f32 %v9802_v0, %v9795_v2  ;;  %v4933_v45 = vmul.f32 %v9802_v0, %v9802_v0  ;;  %v4781_v17 = vpop.f32.mrb[71].mxu1  ;;  %v9821_v57 = vadd.f32 %v4329_v62, %v9747_v25  ;;  %4852 = vadd.xlane.f32.xlu1 %v4851_v61  ;;  %v4934_v7 = vmul.f32 %v9799_v16, %v9799_v16 }
 0x3e0   : > { %v4936_v40 = vmul.f32 %v9811_v8, %v9811_v8  ;;  %v9832_v11 = vadd.f32 %v4779_v14, %v9744_v48  ;;  %v4995_v3 = vadd.f32 %v4994_v44, %v4931_v15  ;;  %v9840_v58 = vadd.f32 %v4781_v17, %v9761_v34 }
 0x3e1   : > { %4991 = vadd.xlane.f32.xlu0 %v4990_v50  ;;  %v4855_v5 = vadd.f32 %v9799_v16, %v4854_v47  ;;  %v4998_v42 = vadd.f32 %v4933_v45, %v4932_v24  ;;  %v4859_v56 = vadd.f32 %v9821_v57, %v9811_v8  ;;  %v4937_v29 = vmul.f32 %v9821_v57, %v9821_v57 }
 0x3e2   : > { %v4935_v30 = vmul.f32 %v9828_v27, %v9828_v27  ;;  %v4938_v20 = vmul.f32 %v9832_v11, %v9832_v11  ;;  %v4939_v47 = vmul.f32 %v9840_v58, %v9840_v58 }
 0x3e3   : > { %v4333_v53 = vpop.f32.mrb[72].mxu0  ;;  %v4856_v59 = vadd.f32 %v9828_v27, %v4855_v5  ;;  %v4999_v46 = vadd.f32 %v4998_v42, %v4934_v7  ;;  %4996 = vadd.xlane.f32.xlu1 %v4995_v3  ;;  %v4860_v10 = vadd.f32 %v9832_v11, %v4859_v56  ;;  %v5003_v33 = vadd.f32 %v4937_v29, %v4936_v40 }
 0x3e4   : > { %v9843_v12 = vadd.f32 %v4333_v53, %v9741_v19  ;;  %v4785_v54 = vpop.f32.mrb[72].mxu1  ;;  %v4335_v49 = vpop.f32.mrb[73].mxu0 }
 0x3e5   : > { %v9847_v38 = vadd.f32 %v4785_v54, %v9744_v48  ;;  %v9850_v28 = vadd.f32 %v4335_v49, %v9747_v25  ;;  %v4787_v36 = vpop.f32.mrb[73].mxu1  ;;  %v4337_v55 = vpop.f32.mrb[74].mxu0  ;;  %4857 = vadd.xlane.f32.xlu0 %v4856_v59  ;;  %v4861_v39 = vadd.f32 %v9840_v58, %v4860_v10  ;;  %v5000_v14 = vadd.f32 %v4999_v46, %v4935_v30 }
 0x3e6   : > { %v4940_v18 = vmul.f32 %v9843_v12, %v9843_v12  ;;  %v9859_v21 = vadd.f32 %v4337_v55, %v9741_v19  ;;  %v4789_v4 = vpop.f32.mrb[74].mxu1  ;;  %v4339_v1 = vpop.f32.mrb[75].mxu0  ;;  %v5004_v45 = vadd.f32 %v5003_v33, %v4938_v20  ;;  %v9876_v50 = vadd.f32 %v4787_v36, %v9761_v34 }
 0x3e7   : > { %v4864_v13 = vadd.f32 %v9850_v28, %v9843_v12  ;;  %v4941_v60 = vmul.f32 %v9850_v28, %v9850_v28  ;;  %v4791_v24 = vpop.f32.mrb[75].mxu1  ;;  %v9869_v61 = vadd.f32 %v4339_v1, %v9747_v25  ;;  %4862 = vadd.xlane.f32.xlu1 %v4861_v39  ;;  %v4942_v17 = vmul.f32 %v9847_v38, %v9847_v38 }
 0x3e8   : > { %v4944_v62 = vmul.f32 %v9859_v21, %v9859_v21  ;;  %v9880_v44 = vadd.f32 %v4789_v4, %v9744_v48  ;;  %v5005_v42 = vadd.f32 %v5004_v45, %v4939_v47  ;;  %v9888_v53 = vadd.f32 %v4791_v24, %v9761_v34 }
 0x3e9   : > { %5001 = vadd.xlane.f32.xlu0 %v5000_v14  ;;  %v4865_v40 = vadd.f32 %v9847_v38, %v4864_v13  ;;  %v5008_v15 = vadd.f32 %v4941_v60, %v4940_v18  ;;  %v4869_v7 = vadd.f32 %v9869_v61, %v9859_v21  ;;  %v4945_v5 = vmul.f32 %v9869_v61, %v9869_v61 }
 0x3ea   : > { %v4943_v20 = vmul.f32 %v9876_v50, %v9876_v50  ;;  %v4946_v18 = vmul.f32 %v9880_v44, %v9880_v44 }
 0x3eb   : > { %v4343_v56 = vpop.f32.mrb[76].mxu0  ;;  %v4866_v29 = vadd.f32 %v9876_v50, %v4865_v40  ;;  %v5009_v3 = vadd.f32 %v5008_v15, %v4942_v17  ;;  %5006 = vadd.xlane.f32.xlu1 %v5005_v42  ;;  %v4870_v49 = vadd.f32 %v9880_v44, %v4869_v7  ;;  %v5013_v10 = vadd.f32 %v4945_v5, %v4944_v62 }
 0x3ec   : > { %v9891_v59 = vadd.f32 %v4343_v56, %v9741_v19  ;;  %v4795_v46 = vpop.f32.mrb[76].mxu1  ;;  %v4345_v54 = vpop.f32.mrb[77].mxu0  ;;  %v4947_v40 = vmul.f32 %v9888_v53, %v9888_v53 }
 0x3ed   : > { %v9895_v33 = vadd.f32 %v4795_v46, %v9744_v48  ;;  %v9898_v36 = vadd.f32 %v4345_v54, %v9747_v25  ;;  %v4797_v55 = vpop.f32.mrb[77].mxu1  ;;  %v4347_v30 = vpop.f32.mrb[78].mxu0  ;;  %4867 = vadd.xlane.f32.xlu0 %v4866_v29  ;;  %v4871_v60 = vadd.f32 %v9888_v53, %v4870_v49  ;;  %v5010_v47 = vadd.f32 %v5009_v3, %v4943_v20 }
 0x3ee   : > { %11271 = vst [vmem:[#allocation18_spill] sm:$0xff] %v9891_v59  ;;  %v4948_v4 = vmul.f32 %v9891_v59, %v9891_v59  ;;  %v9907_v1 = vadd.f32 %v4347_v30, %v9741_v19  ;;  %v4799_v39 = vpop.f32.mrb[78].mxu1  ;;  %v4349_v13 = vpop.f32.mrb[79].mxu0  ;;  %v5014_v15 = vadd.f32 %v5013_v10, %v4946_v18  ;;  %v9924_v5 = vadd.f32 %v4797_v55, %v9761_v34 }
 0x3ef   : > { %11272 = vst [vmem:[#allocation22_spill] sm:$0xff] %v9895_v33  ;;  %v4874_v24 = vadd.f32 %v9898_v36, %v9891_v59  ;;  %v4949_v14 = vmul.f32 %v9898_v36, %v9898_v36  ;;  %v4801_v62 = vpop.f32.mrb[79].mxu1  ;;  %v9917_v17 = vadd.f32 %v4349_v13, %v9747_v25  ;;  %4872 = vadd.xlane.f32.xlu1 %v4871_v60 }
 0x3f0   : > { %11273 = vst [vmem:[#allocation26_spill] sm:$0xff] %v9907_v1  ;;  %v4952_v45 = vmul.f32 %v9907_v1, %v9907_v1  ;;  %v4950_v7 = vmul.f32 %v9895_v33, %v9895_v33  ;;  %v9928_v29 = vadd.f32 %v4799_v39, %v9744_v48  ;;  %v5015_v54 = vadd.f32 %v5014_v15, %v4947_v40 }
 0x3f1   : > { %5011 = vadd.xlane.f32.xlu0 %v5010_v47  ;;  %v4875_v42 = vadd.f32 %v9895_v33, %v4874_v24  ;;  %v5018_v56 = vadd.f32 %v4949_v14, %v4948_v4  ;;  %v4879_v3 = vadd.f32 %v9917_v17, %v9907_v1  ;;  %v4953_v46 = vmul.f32 %v9917_v17, %v9917_v17 }
 0x3f2   : > { %11274 = vst [vmem:[#allocation25_spill] sm:$0xff] %v9928_v29  ;;  %v9936_v55 = vadd.f32 %v4801_v62, %v9761_v34  ;;  %v4951_v62 = vmul.f32 %v9924_v5, %v9924_v5  ;;  %v4954_v40 = vmul.f32 %v9928_v29, %v9928_v29 }
 0x3f3   : > { %v4353_v49 = vpop.f32.mrb[80].mxu0  ;;  %v4876_v10 = vadd.f32 %v9924_v5, %v4875_v42  ;;  %v5019_v30 = vadd.f32 %v5018_v56, %v4950_v7  ;;  %5016 = vadd.xlane.f32.xlu1 %v5015_v54  ;;  %v4880_v39 = vadd.f32 %v9928_v29, %v4879_v3  ;;  %v5023_v13 = vadd.f32 %v4953_v46, %v4952_v45 }
 0x3f4   : > { %v9939_v20 = vadd.f32 %v4353_v49, %v9741_v19  ;;  %v4805_v18 = vpop.f32.mrb[80].mxu1  ;;  %v4355_v4 = vpop.f32.mrb[81].mxu0 }
 0x3f5   : > { %v9943_v60 = vadd.f32 %v4805_v18, %v9744_v48  ;;  %v9946_v24 = vadd.f32 %v4355_v4, %v9747_v25  ;;  %v4807_v14 = vpop.f32.mrb[81].mxu1  ;;  %v4357_v47 = vpop.f32.mrb[82].mxu0  ;;  %4877 = vadd.xlane.f32.xlu0 %v4876_v10  ;;  %v4881_v56 = vadd.f32 %v9936_v55, %v4880_v39  ;;  %v5020_v49 = vadd.f32 %v5019_v30, %v4951_v62  ;;  %v7380_v10 = vld [vmem:[%s10783_s5 + $0x60] sm:$0xff]  }
 0x3f6   : > { %11275 = vst [vmem:[#allocation31_spill] sm:$0xff] %v9939_v20  ;;  %v4956_v15 = vmul.f32 %v9939_v20, %v9939_v20  ;;  %v9955_v45 = vadd.f32 %v4357_v47, %v9741_v19  ;;  %v4809_v7 = vpop.f32.mrb[82].mxu1  ;;  %v4359_v42 = vpop.f32.mrb[83].mxu0  ;;  %v7381_v18 = vld [vmem:[%s10783_s5 + $0x20] sm:$0xff]   ;;  %v4955_v47 = vmul.f32 %v9936_v55, %v9936_v55  ;;  %v9978_v62 = vadd.f32 %v4807_v14, %v9761_v34 }
 0x3f7   : > { %11276 = vst [vmem:[#allocation29_spill] sm:$0xff] %v9943_v60  ;;  %11277 = vst [vmem:[#allocation36_spill] sm:$0xff] %v9946_v24  ;;  %v4884_v3 = vadd.f32 %v9946_v24, %v9939_v20  ;;  %v4957_v46 = vmul.f32 %v9946_v24, %v9946_v24  ;;  %v4811_v54 = vpop.f32.mrb[83].mxu1  ;;  %v9971_v39 = vadd.f32 %v4359_v42, %v9747_v25  ;;  %4882 = vadd.xlane.f32.xlu1 %v4881_v56  ;;  %v7382_v14 = vld [vmem:[%s10783_s5 + $0xe0] sm:$0xff]  }
 0x3f8   : > { %11278 = vst [vmem:[#allocation35_spill] sm:$0xff] %v9955_v45  ;;  %v4960_v4 = vmul.f32 %v9955_v45, %v9955_v45  ;;  %v5024_v20 = vadd.f32 %v5023_v13, %v4954_v40  ;;  %v4958_v30 = vmul.f32 %v9943_v60, %v9943_v60  ;;  %11280 = vst [vmem:[#allocation37_spill] sm:$0xff] %v9978_v62  ;;  %6537 = vmatprep.subr.bf16.mxu0 %v7380_v10  ;;  %v7383_v40 = vld [vmem:[%s10783_s5 + $0xa0] sm:$0xff]  }
 0x3f9   : > { %11279 = vst [vmem:[#allocation38_spill] sm:$0xff] %v9971_v39  ;;  %5021 = vadd.xlane.f32.xlu0 %v5020_v49  ;;  %v4885_v24 = vadd.f32 %v9943_v60, %v4884_v3  ;;  %v5028_v29 = vadd.f32 %v4957_v46, %v4956_v15  ;;  %v9982_v33 = vadd.f32 %v4809_v7, %v9744_v48 }
 0x3fa   : > { %v4889_v42 = vadd.f32 %v9971_v39, %v9955_v45  ;;  %v4961_v56 = vmul.f32 %v9971_v39, %v9971_v39  ;;  %v5025_v13 = vadd.f32 %v5024_v20, %v4955_v47  ;;  %v9995_v15 = vadd.f32 %v4811_v54, %v9761_v34  ;;  %6538 = vmatpush3.bf16.msra.mxu0 %v7381_v18 }
 0x3fb   : > { %11281 = vst [vmem:[#allocation43_spill] sm:$0xff] %v9982_v33  ;;  %v4363_v7 = vpop.f32.mrb[84].mxu0  ;;  %v4886_v3 = vadd.f32 %v9978_v62, %v4885_v24  ;;  %v5029_v46 = vadd.f32 %v5028_v29, %v4958_v30  ;;  %6601 = vmatprep.subr.bf16.mxu1 %v7382_v14  ;;  %v4959_v29 = vmul.f32 %v9978_v62, %v9978_v62 }
 0x3fc   : > { %11282 = vst [vmem:[#allocation46_spill] sm:$0xff] %v9995_v15  ;;  %v9999_v49 = vadd.f32 %v4363_v7, %v9741_v19  ;;  %v4815_v20 = vpop.f32.mrb[84].mxu1  ;;  %5026 = vadd.xlane.f32.xlu1 %v5025_v13  ;;  %v4365_v10 = vpop.f32.mrb[85].mxu0  ;;  %v4890_v47 = vadd.f32 %v9982_v33, %v4889_v42  ;;  %v5033_v60 = vadd.f32 %v4961_v56, %v4960_v4 }
 0x3fd   : > { %v10003_v45 = vadd.f32 %v4815_v20, %v9744_v48  ;;  %v10006_v54 = vadd.f32 %v4365_v10, %v9747_v25  ;;  %v4817_v39 = vpop.f32.mrb[85].mxu1  ;;  %v4367_v24 = vpop.f32.mrb[86].mxu0  ;;  %4887 = vadd.xlane.f32.xlu0 %v4886_v3  ;;  %6602 = vmatpush3.bf16.msra.mxu1 %v7383_v40  ;;  %v4962_v18 = vmul.f32 %v9982_v33, %v9982_v33  ;;  %v7384_v20 = vld [vmem:[%s10783_s5 + $0x68] sm:$0xff]  }
 0x3fe   : > { %11283 = vst [vmem:[#allocation41_spill] sm:$0xff] %v9999_v49  ;;  %v4964_v4 = vmul.f32 %v9999_v49, %v9999_v49  ;;  %v10015_v30 = vadd.f32 %v4367_v24, %v9741_v19  ;;  %v4819_v42 = vpop.f32.mrb[86].mxu1  ;;  %v4369_v56 = vpop.f32.mrb[87].mxu0  ;;  %v4891_v13 = vadd.f32 %v9995_v15, %v4890_v47  ;;  %v5030_v3 = vadd.f32 %v5029_v46, %v4959_v29  ;;  %v7385_v10 = vld [vmem:[%s10783_s5 + $0x28] sm:$0xff]  }
 0x3ff   : > { %11284 = vst [vmem:[#allocation21_spill] sm:$0xff] %v10003_v45  ;;  %11285 = vst [vmem:[#allocation44_spill] sm:$0xff] %v10006_v54  ;;  %v4894_v14 = vadd.f32 %v10006_v54, %v9999_v49  ;;  %v4965_v7 = vmul.f32 %v10006_v54, %v10006_v54  ;;  %v4821_v40 = vpop.f32.mrb[87].mxu1  ;;  %v10031_v47 = vadd.f32 %v4369_v56, %v9747_v25  ;;  %6539 = vmatprep.subr.bf16.mxu0 %v7384_v20 }
 0x400   : > { %11286 = vst [vmem:[#allocation52_spill] sm:$0xff] %v10015_v30  ;;  %v4968_v24 = vmul.f32 %v10015_v30, %v10015_v30  ;;  %4892 = vadd.xlane.f32.xlu1 %v4891_v13  ;;  %v4963_v49 = vmul.f32 %v9995_v15, %v9995_v15  ;;  %v5034_v54 = vadd.f32 %v5033_v60, %v4962_v18  ;;  %v7387_v18 = vld [vmem:[%s10783_s5 + $0xa8] sm:$0xff]  }
 0x401   : > { %11287 = vst [vmem:[#allocation55_spill] sm:$0xff] %v10031_v47  ;;  %v4966_v46 = vmul.f32 %v10003_v45, %v10003_v45  ;;  %v10038_v29 = vadd.f32 %v4817_v39, %v9761_v34  ;;  %5031 = vadd.xlane.f32.xlu0 %v5030_v3  ;;  %v4895_v33 = vadd.f32 %v10003_v45, %v4894_v14  ;;  %v7386_v39 = vld [vmem:[%s10783_s5 + $0xe8] sm:$0xff]  }
 0x402   : > { %v5038_v62 = vadd.f32 %v4965_v7, %v4964_v4  ;;  %v10042_v1 = vadd.f32 %v4819_v42, %v9744_v48  ;;  %v4899_v56 = vadd.f32 %v10031_v47, %v10015_v30  ;;  %v4969_v13 = vmul.f32 %v10031_v47, %v10031_v47  ;;  %6540 = vmatpush3.bf16.msra.mxu0 %v7385_v10 }
 0x403   : > { %11288 = vst [vmem:[#allocation51_spill] sm:$0xff] %v10038_v29  ;;  %v5035_v60 = vadd.f32 %v5034_v54, %v4963_v49  ;;  %v10055_v4 = vadd.f32 %v4821_v40, %v9761_v34  ;;  %v4373_v42 = vpop.f32.mrb[88].mxu0  ;;  %v4896_v14 = vadd.f32 %v10038_v29, %v4895_v33  ;;  %6603 = vmatprep.subr.bf16.mxu1 %v7386_v39 }
 0x404   : > { %11289 = vst [vmem:[#allocation54_spill] sm:$0xff] %v10042_v1  ;;  %v5039_v7 = vadd.f32 %v5038_v62, %v4966_v46  ;;  %v10059_v3 = vadd.f32 %v4373_v42, %v9741_v19  ;;  %v4825_v49 = vpop.f32.mrb[88].mxu1  ;;  %v4375_v54 = vpop.f32.mrb[89].mxu0  ;;  %v4900_v20 = vadd.f32 %v10042_v1, %v4899_v56  ;;  %v5043_v45 = vadd.f32 %v4969_v13, %v4968_v24 }
 0x405   : > { %11290 = vst [vmem:[#allocation60_spill] sm:$0xff] %v10055_v4  ;;  %5036 = vadd.xlane.f32.xlu1 %v5035_v60  ;;  %v10063_v30 = vadd.f32 %v4825_v49, %v9744_v48  ;;  %v10066_v40 = vadd.f32 %v4375_v54, %v9747_v25  ;;  %v4827_v47 = vpop.f32.mrb[89].mxu1  ;;  %v4377_v33 = vpop.f32.mrb[90].mxu0  ;;  %4897 = vadd.xlane.f32.xlu0 %v4896_v14  ;;  %v7388_v49 = vld [vmem:[%s10783_s5 + $0x70] sm:$0xff]  }
 0x406   : > { %11291 = vst [vmem:[#allocation64_spill] sm:$0xff] %v10059_v3  ;;  %v4967_v62 = vmul.f32 %v10038_v29, %v10038_v29  ;;  %6604 = vmatpush3.bf16.msra.mxu1 %v7387_v18  ;;  %v4970_v10 = vmul.f32 %v10042_v1, %v10042_v1  ;;  %v4972_v24 = vmul.f32 %v10059_v3, %v10059_v3  ;;  %v4829_v56 = vpop.f32.mrb[90].mxu1  ;;  %v4379_v13 = vpop.f32.mrb[91].mxu0  ;;  %v7389_v54 = vld [vmem:[%s10783_s5 + $0x30] sm:$0xff]  }
 0x407   : > { %11292 = vst [vmem:[#allocation58_spill] sm:$0xff] %v10063_v30  ;;  %11293 = vst [vmem:[#allocation62_spill] sm:$0xff] %v10066_v40  ;;  %v10075_v46 = vadd.f32 %v4377_v33, %v9741_v19  ;;  %v4901_v60 = vadd.f32 %v10055_v4, %v4900_v20  ;;  %v4904_v39 = vadd.f32 %v10066_v40, %v10059_v3  ;;  %v4831_v18 = vpop.f32.mrb[91].mxu1  ;;  %6541 = vmatprep.subr.bf16.mxu0 %v7388_v49 }
 0x408   : > { %v4973_v42 = vmul.f32 %v10066_v40, %v10066_v40  ;;  %v5040_v14 = vadd.f32 %v5039_v7, %v4967_v62  ;;  %v10091_v20 = vadd.f32 %v4379_v13, %v9747_v25  ;;  %v4971_v3 = vmul.f32 %v10055_v4, %v10055_v4  ;;  %6542 = vmatpush3.bf16.msra.mxu0 %v7389_v54 }
 0x409   : > { %11294 = vst [vmem:[#allocation67_spill] sm:$0xff] %v10075_v46  ;;  %v4976_v33 = vmul.f32 %v10075_v46, %v10075_v46  ;;  %4902 = vadd.xlane.f32.xlu1 %v4901_v60  ;;  %v5044_v40 = vadd.f32 %v5043_v45, %v4970_v10  ;;  %v4974_v7 = vmul.f32 %v10063_v30, %v10063_v30  ;;  %v7391_v10 = vld [vmem:[%s10783_s5 + $0xb0] sm:$0xff]  }
 0x40a   : > { %11295 = vst [vmem:[#allocation71_spill] sm:$0xff] %v10091_v20  ;;  %v10098_v62 = vadd.f32 %v4827_v47, %v9761_v34  ;;  %5041 = vadd.xlane.f32.xlu0 %v5040_v14  ;;  %v4905_v1 = vadd.f32 %v10063_v30, %v4904_v39  ;;  %v5048_v29 = vadd.f32 %v4973_v42, %v4972_v24  ;;  %v7390_v47 = vld [vmem:[%s10783_s5 + $0xf0] sm:$0xff]  }
 0x40b   : > { %v10102_v15 = vadd.f32 %v4829_v56, %v9744_v48  ;;  %v4909_v13 = vadd.f32 %v10091_v20, %v10075_v46  ;;  %v4977_v60 = vmul.f32 %v10091_v20, %v10091_v20  ;;  %v5045_v45 = vadd.f32 %v5044_v40, %v4971_v3  ;;  %v4383_v56 = vpop.f32.mrb[92].mxu0  ;;  %6605 = vmatprep.subr.bf16.mxu1 %v7390_v47 }
 0x40c   : > { %11296 = vst [vmem:[#allocation69_spill] sm:$0xff] %v10098_v62  ;;  %v10115_v24 = vadd.f32 %v4831_v18, %v9761_v34  ;;  %v4906_v39 = vadd.f32 %v10098_v62, %v4905_v1  ;;  %v5049_v42 = vadd.f32 %v5048_v29, %v4974_v7  ;;  %v10119_v14 = vadd.f32 %v4383_v56, %v9741_v19  ;;  %v4835_v3 = vpop.f32.mrb[92].mxu1  ;;  %v4385_v40 = vpop.f32.mrb[93].mxu0 }
 0x40d   : > { %11297 = vst [vmem:[#allocation17_spill] sm:$0xff] %v10102_v15  ;;  %5046 = vadd.xlane.f32.xlu1 %v5045_v45  ;;  %v4910_v49 = vadd.f32 %v10102_v15, %v4909_v13  ;;  %v5053_v30 = vadd.f32 %v4977_v60, %v4976_v33  ;;  %v10123_v46 = vadd.f32 %v4835_v3, %v9744_v48  ;;  %v4837_v20 = vpop.f32.mrb[93].mxu1  ;;  %v4387_v1 = vpop.f32.mrb[94].mxu0 }
 0x40e   : > { %11298 = vst [vmem:[#allocation20_spill] sm:$0xff] %v10115_v24  ;;  %11299 = vst [vmem:[#allocation14_spill] sm:$0xff] %v10119_v14  ;;  %v10126_v18 = vadd.f32 %v4385_v40, %v9747_v25  ;;  %4907 = vadd.xlane.f32.xlu0 %v4906_v39  ;;  %v4975_v29 = vmul.f32 %v10098_v62, %v10098_v62  ;;  %6606 = vmatpush3.bf16.msra.mxu1 %v7391_v10  ;;  %v4839_v13 = vpop.f32.mrb[94].mxu1  ;;  %v4389_v60 = vpop.f32.mrb[95].mxu0  ;;  %v7393_v40 = vld [vmem:[%s10783_s5 + $0x38] sm:$0xff]  }
 0x40f   : > { %11300 = vst [vmem:[#allocation32_spill] sm:$0xff] %v10123_v46  ;;  %v4978_v54 = vmul.f32 %v10102_v15, %v10102_v15  ;;  %v4980_v33 = vmul.f32 %v10119_v14, %v10119_v14  ;;  %v10135_v7 = vadd.f32 %v4387_v1, %v9741_v19  ;;  %v4911_v45 = vadd.f32 %v10115_v24, %v4910_v49  ;;  %v4841_v10 = vpop.f32.mrb[95].mxu1  ;;  %v7392_v19 = vld [vmem:[%s10783_s5 + $0x78] sm:$0xff]  }
 0x410   : > { %11301 = vst [vmem:[#allocation28_spill] sm:$0xff] %v10126_v18  ;;  %v4914_v47 = vadd.f32 %v10126_v18, %v10119_v14  ;;  %v4981_v56 = vmul.f32 %v10126_v18, %v10126_v18  ;;  %v5050_v39 = vadd.f32 %v5049_v42, %v4975_v29  ;;  %v4979_v3 = vmul.f32 %v10115_v24, %v10115_v24 }
 0x411   : > { %11302 = vst [vmem:[#allocation27_spill] sm:$0xff] %v10135_v7  ;;  %v4984_v49 = vmul.f32 %v10135_v7, %v10135_v7  ;;  %v10153_v1 = vadd.f32 %v4839_v13, %v9744_v48  ;;  %v10156_v14 = vadd.f32 %v4389_v60, %v9747_v25  ;;  %4912 = vadd.xlane.f32.xlu1 %v4911_v45 }
 0x412   : > { %v5054_v42 = vadd.f32 %v5053_v30, %v4978_v54  ;;  %v4982_v29 = vmul.f32 %v10123_v46, %v10123_v46  ;;  %v10161_v18 = vadd.f32 %v4837_v20, %v9761_v34  ;;  %5051 = vadd.xlane.f32.xlu0 %v5050_v39  ;;  %v4915_v15 = vadd.f32 %v10123_v46, %v4914_v47  ;;  %v7394_v30 = vld [vmem:[%s10783_s5 + $0xf8] sm:$0xff]  }
 0x413   : > { %11303 = vst [vmem:[#allocation24_spill] sm:$0xff] %v10153_v1  ;;  %11304 = vst [vmem:[#allocation39_spill] sm:$0xff] %v10156_v14  ;;  %v5058_v24 = vadd.f32 %v4981_v56, %v4980_v33  ;;  %v4919_v62 = vadd.f32 %v10156_v14, %v10135_v7  ;;  %v4985_v48 = vmul.f32 %v10156_v14, %v10156_v14  ;;  %6543 = vmatprep.subr.bf16.mxu0 %v7392_v19  ;;  %v7395_v20 = vld [vmem:[%s10783_s5 + $0xb8] sm:$0xff]  }
 0x414   : > { %11305 = vst [vmem:[#allocation33_spill] sm:$0xff] %v10161_v18  ;;  %v5055_v25 = vadd.f32 %v5054_v42, %v4979_v3  ;;  %v10175_v54 = vadd.f32 %v4841_v10, %v9761_v34  ;;  %v4916_v33 = vadd.f32 %v10161_v18, %v4915_v15  ;;  %6544 = vmatpush3.bf16.msra.mxu0 %v7393_v40 }
 0x415   : > { %v5059_v13 = vadd.f32 %v5058_v24, %v4982_v29  ;;  %v4986_v60 = vmul.f32 %v10153_v1, %v10153_v1  ;;  %v4920_v45 = vadd.f32 %v10153_v1, %v4919_v62  ;;  %v5063_v47 = vadd.f32 %v4985_v48, %v4984_v49  ;;  %6607 = vmatprep.subr.bf16.mxu1 %v7394_v30 }
 0x416   : > { %11306 = vst [vmem:[#allocation34_spill] sm:$0xff] %v10175_v54  ;;  %5056 = vadd.xlane.f32.xlu1 %v5055_v25  ;;  %4917 = vadd.xlane.f32.xlu0 %v4916_v33  ;;  %v4983_v56 = vmul.f32 %v10161_v18, %v10161_v18  ;;  %v4987_v15 = vmul.f32 %v10175_v54, %v10175_v54 }
 0x417   : > { %6608 = vmatpush3.bf16.msra.mxu1 %v7395_v20  ;;  %v4921_v34 = vadd.f32 %v10175_v54, %v4920_v45  ;;  %v5064_v10 = vadd.f32 %v5063_v47, %v4986_v60  ;;  %v5315_v48 = vrot.slane %v9727_v6, %v11235_v32  ;;  %v5415_v25 = vrot.slane %v9727_v6, %v11237_v51 }
 0x418   : > { %v5060_v39 = vadd.f32 %v5059_v13, %v4983_v56  ;;  %v5323_v33 = vrot.slane %v9732_v37, %v11235_v32  ;;  %v5423_v13 = vrot.slane %v9732_v37, %v11237_v51  ;;  %v5311_v60 = vrot.slane %v9727_v6, %v11236_v23 }
 0x419   : > { %v5065_v24 = vadd.f32 %v5064_v10, %v4987_v15  ;;  %v5319_v10 = vrot.slane %v9732_v37, %v11236_v23  ;;  %v5419_v32 = vrot.slane %v9732_v37, %v8812_v26 }
 0x41a   : > { %4922 = vadd.xlane.f32.xlu1 %v4921_v34  ;;  %5061 = vadd.xlane.f32.xlu0 %v5060_v39  ;;  %v5411_v34 = vrot.slane %v9727_v6, %v8812_v26  ;;  %v10219_v6 = vrot.slane %v5323_v33, %v11236_v23 }
 0x41e   : > { %5066 = vadd.xlane.f32.xlu1 %v5065_v24  ;;  %v10213_v24 = vrot.slane %v5315_v48, %v11236_v23  ;;  %v10230_v48 = vrot.slane %v5411_v34, %v8812_v26 }
 0x46a   : > { %v4848_v3 = vpop.xlane.xlu0 %4847 }
 0x46b   : > { %v10186_v62 = vmul.f32 0.001953125, %v4848_v3  ;;  %v10216_v3 = vrot.slane %v5415_v25, %v8812_v26  ;;  %v10233_v25 = vrot.slane %v5319_v10, %v11236_v23 }
 0x46c   : > { %v4853_v19 = vpop.xlane.xlu1 %4852 }
 0x46d   : > { %v10188_v40 = vmul.f32 0.001953125, %v4853_v19  ;;  %v5100_v42 = vmul.f32 %v10186_v62, %v10186_v62  ;;  %v5149_v34 = vsub.f32 %v9758_v22, %v10186_v62 }
 0x46e   : > { %v4992_v49 = vpop.xlane.xlu0 %4991 }
 0x46f   : > { %v5084_v29 = vmul.f32 0.001953125, %v4992_v49  ;;  %v5101_v45 = vmul.f32 %v10188_v40, %v10188_v40  ;;  %v5153_v22 = vsub.f32 %v9775_v35, %v10188_v40 }
 0x470   : > { %v4997_v20 = vpop.xlane.xlu1 %4996 }
 0x471   : > { %v5116_v30 = vsub.f32 %v5084_v29, %v5100_v42  ;;  %v5085_v47 = vmul.f32 0.001953125, %v4997_v20  ;;  %v10222_v42 = vrot.slane %v5423_v13, %v8812_v26  ;;  %v10225_v29 = vrot.slane %v5311_v60, %v11236_v23 }
 0x472   : > { %v4858_v56 = vpop.xlane.xlu0 %4857  ;;  %v10238_v13 = vrot.slane %v5419_v32, %v8812_v26  ;;  %v5148_v60 = vsub.f32 %v9752_v43, %v10186_v62  ;;  %v5151_v26 = vsub.f32 %v9780_v31, %v10186_v62 }
 0x473   : > { %v5132_v39 = vmax.f32 %v5116_v30, 0.0  ;;  %v10208_v15 = vmul.f32 0.001953125, %v4858_v56  ;;  %v5117_v51 = vsub.f32 %v5085_v47, %v5101_v45  ;;  %v5150_v47 = vsub.f32 %v9755_v63, %v10186_v62 }
 0x474   : > { %v4863_v49 = vpop.xlane.xlu1 %4862 }
 0x475   : > { %v5212_v19 = vadd.f32 1e-05, %v5132_v39  ;;  %v5133_v30 = vmax.f32 %v5117_v51, 0.0  ;;  %v10227_v37 = vmul.f32 0.001953125, %v4863_v49  ;;  %v5102_v33 = vmul.f32 %v10208_v15, %v10208_v15 }
 0x476   : > { %v5002_v20 = vpop.xlane.xlu0 %5001 }
 0x477   : > { %7428 = vrsqrt.f32 %v5212_v19  ;;  %v5086_v45 = vmul.f32 0.001953125, %v5002_v20  ;;  %v5213_v56 = vadd.f32 1e-05, %v5133_v30  ;;  %v5103_v43 = vmul.f32 %v10227_v37, %v10227_v37 }
 0x478   : > { %v5007_v51 = vpop.xlane.xlu1 %5006  ;;  %v5155_v30 = vsub.f32 %v9792_v41, %v10188_v40 }
 0x479   : > { %v5118_v39 = vsub.f32 %v5086_v45, %v5102_v33  ;;  %7430 = vrsqrt.f32 %v5213_v56  ;;  %v5087_v63 = vmul.f32 0.001953125, %v5007_v51 }
 0x47a   : > { %v4868_v32 = vpop.xlane.xlu0 %4867 }
 0x47b   : > { %v5134_v19 = vmax.f32 %v5118_v39, 0.0  ;;  %v10256_v49 = vmul.f32 0.001953125, %v4868_v32  ;;  %v5119_v33 = vsub.f32 %v5087_v63, %v5103_v43 }
 0x47c   : > { %v4873_v56 = vpop.xlane.xlu1 %4872 }
 0x47d   : > { %v5214_v35 = vadd.f32 1e-05, %v5134_v19  ;;  %v5135_v43 = vmax.f32 %v5119_v33, 0.0  ;;  %v10274_v63 = vmul.f32 0.001953125, %v4873_v56  ;;  %v5104_v32 = vmul.f32 %v10256_v49, %v10256_v49 }
 0x47e   : > { %v5012_v62 = vpop.xlane.xlu0 %5011 }
 0x47f   : > { %v5088_v45 = vmul.f32 0.001953125, %v5012_v62  ;;  %7432 = vrsqrt.f32 %v5214_v35  ;;  %v5215_v33 = vadd.f32 1e-05, %v5135_v43  ;;  %v5105_v56 = vmul.f32 %v10274_v63, %v10274_v63 }
 0x480   : > { %v5017_v62 = vpop.xlane.xlu1 %5016 }
 0x481   : > { %v7429_v20 = vpop.eup %7428  ;;  %v5120_v19 = vsub.f32 %v5088_v45, %v5104_v32  ;;  %v5089_v35 = vmul.f32 0.001953125, %v5017_v62  ;;  %7434 = vrsqrt.f32 %v5215_v33 }
 0x482   : > { %v4878_v43 = vpop.xlane.xlu0 %4877  ;;  %v5245_v10 = vmul.f32 %v7429_v20, %v5149_v34  ;;  %v5247_v23 = vmul.f32 %v7429_v20, %v5151_v26  ;;  %v5244_v32 = vmul.f32 %v7429_v20, %v5148_v60  ;;  %v5246_v54 = vmul.f32 %v7429_v20, %v5150_v47 }
 0x483   : > { %v5136_v39 = vmax.f32 %v5120_v19, 0.0  ;;  %v10298_v45 = vmul.f32 0.001953125, %v4878_v43  ;;  %v7431_v46 = vpop.eup %7430  ;;  %v5121_v31 = vsub.f32 %v5089_v35, %v5105_v56 }
 0x484   : > { %v5345_v7 = vmul.f32 %v10213_v24, %v5245_v10  ;;  %v5347_v41 = vmul.f32 %v10219_v6, %v5247_v23  ;;  %v4883_v62 = vpop.xlane.xlu1 %4882  ;;  %v5249_v26 = vmul.f32 %v7431_v46, %v5153_v22  ;;  %v5251_v18 = vmul.f32 %v7431_v46, %v5155_v30 }
 0x485   : > { %v5216_v51 = vadd.f32 1e-05, %v5136_v39  ;;  %v5106_v34 = vmul.f32 %v10298_v45, %v10298_v45  ;;  %v5137_v1 = vmax.f32 %v5121_v31, 0.0  ;;  %v10304_v33 = vmul.f32 0.001953125, %v4883_v62 }
 0x486   : > { %v5022_v19 = vpop.xlane.xlu0 %5021  ;;  %v5445_v60 = vadd.f32 %v10216_v3, %v5345_v7  ;;  %v5447_v56 = vadd.f32 %v10222_v42, %v5347_v41  ;;  %v5349_v23 = vmul.f32 %v10213_v24, %v5249_v26  ;;  %v5351_v47 = vmul.f32 %v10219_v6, %v5251_v18 }
 0x487   : > { %7436 = vrsqrt.f32 %v5216_v51  ;;  %v5090_v10 = vmul.f32 0.001953125, %v5022_v19  ;;  %v5217_v20 = vadd.f32 1e-05, %v5137_v1  ;;  %v5107_v39 = vmul.f32 %v10304_v33, %v10304_v33 }
 0x488   : > { %v5509_v22 = vmax.f32 %v5445_v60, 0.0  ;;  %v5511_v30 = vmax.f32 %v5447_v56, 0.0  ;;  %v5449_v43 = vadd.f32 %v10216_v3, %v5349_v23  ;;  %v5451_v7 = vadd.f32 %v10222_v42, %v5351_v47 }
 0x489   : > { %v5122_v31 = vsub.f32 %v5090_v10, %v5106_v34  ;;  %v5027_v35 = vpop.xlane.xlu1 %5026  ;;  %v11307_v41 = vsub.f32 %v9766_v52, %v10188_v40  ;;  %v10317_v62 = vpop.eup %7432  ;;  %7438 = vrsqrt.f32 %v5217_v20  ;;  %v5344_v26 = vmul.f32 %v10225_v29, %v5244_v32 }
 0x48a   : > { %v5091_v18 = vmul.f32 0.001953125, %v5027_v35  ;;  %v4888_v1 = vpop.xlane.xlu0 %4887  ;;  %v11308_v19 = vsub.f32 %v9784_v9, %v10188_v40  ;;  %v5513_v10 = vmax.f32 %v5449_v43, 0.0  ;;  %v5515_v23 = vmax.f32 %v5451_v7, 0.0 }
 0x48b   : > { %v5248_v51 = vmul.f32 %v7431_v46, %v11307_v41  ;;  %v5138_v60 = vmax.f32 %v5122_v31, 0.0  ;;  %v10323_v56 = vmul.f32 0.001953125, %v4888_v1  ;;  %v5444_v41 = vadd.f32 %v10230_v48, %v5344_v26  ;;  %v10328_v35 = vpop.eup %7434 }
 0x48c   : > { %v5250_v34 = vmul.f32 %v7431_v46, %v11308_v19  ;;  %v5123_v47 = vsub.f32 %v5091_v18, %v5107_v39  ;;  %v5346_v20 = vmul.f32 %v10233_v25, %v5246_v54  ;;  %v5573_v4 = vpack.c.bf16 %v5513_v10, %v5509_v22 }
 0x48d   : > { %v5348_v52 = vmul.f32 %v10225_v29, %v5248_v51  ;;  %v5218_v14 = vadd.f32 1e-05, %v5138_v60  ;;  %v4893_v32 = vpop.xlane.xlu1 %4892  ;;  %v5575_v59 = vpack.c.bf16 %v5515_v23, %v5511_v30  ;;  %v5108_v9 = vmul.f32 %v10323_v56, %v10323_v56 }
 0x48e   : > { %v5139_v46 = vmax.f32 %v5123_v47, 0.0  ;;  %v10332_v40 = vmul.f32 0.001953125, %v4893_v32  ;;  %v5032_v31 = vpop.xlane.xlu0 %5031  ;;  %v5508_v43 = vmax.f32 %v5444_v41, 0.0  ;;  %5899 = vmatprep.mubr.bf16.mxu0 %v5573_v4  ;;  %v5350_v7 = vmul.f32 %v10233_v25, %v5250_v34 }
 0x48f   : > { %v5448_v39 = vadd.f32 %v10230_v48, %v5348_v52  ;;  %7440 = vrsqrt.f32 %v5218_v14  ;;  %5996 = vmatprep.mubr.bf16.mxu1 %v5575_v59  ;;  %v5092_v54 = vmul.f32 0.001953125, %v5032_v31  ;;  %v5446_v51 = vadd.f32 %v10238_v13, %v5346_v20 }
 0x490   : > { %v5219_v22 = vadd.f32 1e-05, %v5139_v46  ;;  %v5109_v18 = vmul.f32 %v10332_v40, %v10332_v40  ;;  %v11309_v1 = vsub.f32 %v9802_v0, %v10208_v15  ;;  %v5450_v59 = vadd.f32 %v10238_v13, %v5350_v7 }
 0x491   : > { %v5512_v30 = vmax.f32 %v5448_v39, 0.0  ;;  %v10343_v19 = vpop.eup %7436  ;;  %v5124_v14 = vsub.f32 %v5092_v54, %v5108_v9  ;;  %v5510_v4 = vmax.f32 %v5446_v51, 0.0  ;;  %v11310_v34 = vsub.f32 %v9821_v57, %v10227_v37 }
 0x492   : > { %v5253_v26 = vmul.f32 %v10317_v62, %v11309_v1  ;;  %v5037_v60 = vpop.xlane.xlu1 %5036  ;;  %7442 = vrsqrt.f32 %v5219_v22  ;;  %v4898_v52 = vpop.xlane.xlu0 %4897  ;;  %v5514_v20 = vmax.f32 %v5450_v59, 0.0  ;;  %v11311_v39 = vsub.f32 %v9828_v27, %v10208_v15 }
 0x493   : > { %v5257_v10 = vmul.f32 %v10328_v35, %v11310_v34  ;;  %v5572_v23 = vpack.c.bf16 %v5512_v30, %v5508_v43  ;;  %v5093_v47 = vmul.f32 0.001953125, %v5037_v60  ;;  %v5140_v41 = vmax.f32 %v5124_v14, 0.0  ;;  %v10354_v46 = vpop.eup %7438 }
 0x494   : > { %v5353_v0 = vmul.f32 %v10213_v24, %v5253_v26  ;;  %v10351_v32 = vmul.f32 0.001953125, %v4898_v52  ;;  %v5255_v43 = vmul.f32 %v10317_v62, %v11311_v39  ;;  %v11312_v54 = vsub.f32 %v9840_v58, %v10227_v37 }
 0x495   : > { %v5357_v9 = vmul.f32 %v10213_v24, %v5257_v10  ;;  %5900 = vmatmul.mubr.bf16.vlgmr.msra.gmra.mrb[96].mxu0 %v5572_v23  ;;  %v5125_v31 = vsub.f32 %v5093_v47, %v5109_v18  ;;  %v5220_v51 = vadd.f32 1e-05, %v5140_v41  ;;  %v5574_v22 = vpack.c.bf16 %v5514_v20, %v5510_v4 }
 0x496   : > { %v5453_v57 = vadd.f32 %v10216_v3, %v5353_v0  ;;  %v5259_v7 = vmul.f32 %v10328_v35, %v11312_v54  ;;  %v4903_v30 = vpop.xlane.xlu1 %4902  ;;  %v5110_v18 = vmul.f32 %v10351_v32, %v10351_v32  ;;  %v5355_v27 = vmul.f32 %v10219_v6, %v5255_v43 }
 0x497   : > { %v5457_v1 = vadd.f32 %v10216_v3, %v5357_v9  ;;  %v5141_v26 = vmax.f32 %v5125_v31, 0.0  ;;  %v10368_v14 = vmul.f32 0.001953125, %v4903_v30  ;;  %v5042_v60 = vpop.xlane.xlu0 %5041  ;;  %7444 = vrsqrt.f32 %v5220_v51  ;;  %5997 = vmatmul.mubr.bf16.vlgmr.msra.gmra.mrb[96].mxu1 %v5574_v22 }
 0x498   : > { %v5517_v59 = vmax.f32 %v5453_v57, 0.0  ;;  %v5359_v34 = vmul.f32 %v10219_v6, %v5259_v7  ;;  %v5094_v10 = vmul.f32 0.001953125, %v5042_v60  ;;  %v5455_v23 = vadd.f32 %v10222_v42, %v5355_v27 }
 0x499   : > { %v5521_v58 = vmax.f32 %v5457_v1, 0.0  ;;  %v5221_v4 = vadd.f32 1e-05, %v5141_v26  ;;  %v11313_v47 = vsub.f32 %v9795_v2, %v10208_v15  ;;  %v11314_v0 = vsub.f32 %v9811_v8, %v10227_v37  ;;  %v10381_v20 = vpop.eup %7440 }
 0x49a   : > { %v5459_v31 = vadd.f32 %v10222_v42, %v5359_v34  ;;  %v5126_v57 = vsub.f32 %v5094_v10, %v5110_v18  ;;  %v11315_v39 = vsub.f32 %v9799_v16, %v10208_v15  ;;  %v5047_v54 = vpop.xlane.xlu1 %5046  ;;  %v5519_v2 = vmax.f32 %v5455_v23, 0.0 }
 0x49b   : > { %v5252_v52 = vmul.f32 %v10317_v62, %v11313_v47  ;;  %v5256_v41 = vmul.f32 %v10328_v35, %v11314_v0  ;;  %v5577_v9 = vpack.c.bf16 %v5521_v58, %v5517_v59  ;;  %7446 = vrsqrt.f32 %v5221_v4  ;;  %v4908_v51 = vpop.xlane.xlu0 %4907 }
 0x49c   : > { %v5254_v43 = vmul.f32 %v10317_v62, %v11315_v39  ;;  %v5523_v22 = vmax.f32 %v5459_v31, 0.0  ;;  %v5142_v30 = vmax.f32 %v5126_v57, 0.0  ;;  %v11316_v1 = vsub.f32 %v9832_v11, %v10227_v37  ;;  %v10395_v15 = vpop.eup %7442 }
 0x49d   : > { %v5352_v7 = vmul.f32 %v10225_v29, %v5252_v52  ;;  %v5356_v8 = vmul.f32 %v10225_v29, %v5256_v41  ;;  %5907 = vmatprep.mubr.bf16.mxu0 %v5577_v9  ;;  %v5111_v59 = vmul.f32 %v10368_v14, %v10368_v14  ;;  %v5095_v27 = vmul.f32 0.001953125, %v5047_v54 }
 0x49e   : > { %v5258_v18 = vmul.f32 %v10328_v35, %v11316_v1  ;;  %v5354_v16 = vmul.f32 %v10233_v25, %v5254_v43  ;;  %v5579_v60 = vpack.c.bf16 %v5523_v22, %v5519_v2  ;;  %v5222_v58 = vadd.f32 1e-05, %v5142_v30  ;;  %v4913_v37 = vpop.xlane.xlu1 %4912 }
 0x49f   : > { %v5452_v62 = vadd.f32 %v10230_v48, %v5352_v7  ;;  %v5456_v26 = vadd.f32 %v10230_v48, %v5356_v8  ;;  %v5127_v4 = vsub.f32 %v5095_v27, %v5111_v59  ;;  %v10403_v23 = vmul.f32 0.001953125, %v4908_v51  ;;  %v5052_v41 = vpop.xlane.xlu0 %5051 }
 0x4a0   : > { %v5358_v34 = vmul.f32 %v10233_v25, %v5258_v18  ;;  %v5454_v11 = vadd.f32 %v10238_v13, %v5354_v16  ;;  %6004 = vmatprep.mubr.bf16.mxu1 %v5579_v60  ;;  %7448 = vrsqrt.f32 %v5222_v58  ;;  %v10406_v0 = vmul.f32 0.001953125, %v4913_v37 }
 0x4a1   : > { %v5516_v35 = vmax.f32 %v5452_v62, 0.0  ;;  %v5520_v10 = vmax.f32 %v5456_v26, 0.0  ;;  %v5143_v31 = vmax.f32 %v5127_v4, 0.0  ;;  %v11317_v57 = vsub.f32 %v9850_v28, %v10256_v49  ;;  %v10416_v2 = vpop.eup %7444 }
 0x4a2   : > { %v5458_v47 = vadd.f32 %v10238_v13, %v5358_v34  ;;  %v5518_v52 = vmax.f32 %v5454_v11, 0.0  ;;  %v11318_v43 = vsub.f32 %v9869_v61, %v10274_v63  ;;  %v11319_v8 = vsub.f32 %v9876_v50, %v10256_v49 }
 0x4a3   : > { %v5576_v9 = vpack.c.bf16 %v5520_v10, %v5516_v35  ;;  %v5261_v39 = vmul.f32 %v10343_v19, %v11317_v57  ;;  %v11320_v22 = vsub.f32 %v9888_v53, %v10274_v63  ;;  %v5112_v30 = vmul.f32 %v10403_v23, %v10403_v23  ;;  %v5057_v62 = vpop.xlane.xlu1 %5056  ;;  %v4918_v57 = vpop.xlane.xlu0 %4917 }
 0x4a4   : > { %v5265_v54 = vmul.f32 %v10354_v46, %v11318_v43  ;;  %v5522_v7 = vmax.f32 %v5458_v47, 0.0  ;;  %v5263_v51 = vmul.f32 %v10343_v19, %v11319_v8  ;;  %v5223_v61 = vadd.f32 1e-05, %v5143_v31 }
 0x4a5   : > { %v5267_v28 = vmul.f32 %v10354_v46, %v11320_v22  ;;  %5908 = vmatmul.mubr.bf16.gmra.mrb[100].mxu0 %v5576_v9  ;;  %v5361_v1 = vmul.f32 %v10213_v24, %v5261_v39  ;;  %v5096_v16 = vmul.f32 0.001953125, %v5052_v41  ;;  %v11321_v53 = vsub.f32 %v9843_v12, %v10256_v49  ;;  %v10436_v60 = vpop.eup %7446 }
 0x4a6   : > { %v5365_v18 = vmul.f32 %v10213_v24, %v5265_v54  ;;  %v5578_v26 = vpack.c.bf16 %v5522_v7, %v5518_v52  ;;  %v5363_v50 = vmul.f32 %v10219_v6, %v5263_v51  ;;  %7450 = vrsqrt.f32 %v5223_v61 }
 0x4a7   : > { %v5367_v59 = vmul.f32 %v10219_v6, %v5267_v28  ;;  %v5260_v27 = vmul.f32 %v10343_v19, %v11321_v53  ;;  %v5461_v58 = vadd.f32 %v10216_v3, %v5361_v1  ;;  %v5128_v11 = vsub.f32 %v5096_v16, %v5112_v30  ;;  %v4923_v30 = vpop.xlane.xlu1 %4922 }
 0x4a8   : > { %v5465_v34 = vadd.f32 %v10216_v3, %v5365_v18  ;;  %6005 = vmatmul.mubr.bf16.gmra.mrb[100].mxu1 %v5578_v26  ;;  %v5463_v37 = vadd.f32 %v10222_v42, %v5363_v50  ;;  %v11322_v10 = vsub.f32 %v9859_v21, %v10274_v63  ;;  %v11323_v9 = vsub.f32 %v9847_v38, %v10256_v49 }
 0x4a9   : > { %v5467_v35 = vadd.f32 %v10222_v42, %v5367_v59  ;;  %v5360_v4 = vmul.f32 %v10225_v29, %v5260_v27  ;;  %v5525_v47 = vmax.f32 %v5461_v58, 0.0  ;;  %v5144_v41 = vmax.f32 %v5128_v11, 0.0 }
 0x4aa   : > { %v5264_v12 = vmul.f32 %v10354_v46, %v11322_v10  ;;  %v5529_v52 = vmax.f32 %v5465_v34, 0.0  ;;  %v5262_v31 = vmul.f32 %v10343_v19, %v11323_v9  ;;  %v5527_v39 = vmax.f32 %v5463_v37, 0.0  ;;  %v10458_v38 = vpop.eup %7448  ;;  %v5062_v34 = vpop.xlane.xlu0 %5061 }
 0x4ab   : > { %v5531_v43 = vmax.f32 %v5467_v35, 0.0  ;;  %v5460_v7 = vadd.f32 %v10230_v48, %v5360_v4  ;;  %v5224_v8 = vadd.f32 1e-05, %v5144_v41  ;;  %v11324_v51 = vsub.f32 %v9880_v44, %v10274_v63 }
 0x4ac   : > { %v5364_v54 = vmul.f32 %v10225_v29, %v5264_v12  ;;  %v5581_v21 = vpack.c.bf16 %v5529_v52, %v5525_v47  ;;  %v5362_v28 = vmul.f32 %v10233_v25, %v5262_v31  ;;  %v5113_v1 = vmul.f32 %v10406_v0, %v10406_v0 }
 0x4ad   : > { %v5266_v22 = vmul.f32 %v10354_v46, %v11324_v51  ;;  %v5583_v49 = vpack.c.bf16 %v5531_v43, %v5527_v39  ;;  %v5524_v61 = vmax.f32 %v5460_v7, 0.0  ;;  %7452 = vrsqrt.f32 %v5224_v8  ;;  %v11326_v51 = vld [vmem:[#allocation26_spill] sm:$0xff] }
 0x4ae   : > { %v5464_v19 = vadd.f32 %v10230_v48, %v5364_v54  ;;  %5915 = vmatprep.mubr.bf16.mxu0 %v5581_v21  ;;  %v5462_v44 = vadd.f32 %v10238_v13, %v5362_v28  ;;  %v5097_v63 = vmul.f32 0.001953125, %v5057_v62  ;;  %v10465_v16 = vmul.f32 0.001953125, %v4918_v57  ;;  %v11325_v57 = vld [vmem:[#allocation18_spill] sm:$0xff] }
 0x4af   : > { %v5366_v18 = vmul.f32 %v10233_v25, %v5266_v22  ;;  %6012 = vmatprep.mubr.bf16.mxu1 %v5583_v49  ;;  %v10467_v26 = vmul.f32 0.001953125, %v4923_v30  ;;  %v5173_v50 = vsub.f32 %v9898_v36, %v10298_v45  ;;  %v5177_v58 = vsub.f32 %v9917_v17, %v10304_v33 }
 0x4b0   : > { %v5528_v46 = vmax.f32 %v5464_v19, 0.0  ;;  %v5526_v53 = vmax.f32 %v5462_v44, 0.0  ;;  %v5129_v27 = vsub.f32 %v5097_v63, %v5113_v1  ;;  %v5175_v37 = vsub.f32 %v9924_v5, %v10298_v45  ;;  %v10479_v10 = vpop.eup %7450 }
 0x4b1   : > { %v5466_v59 = vadd.f32 %v10238_v13, %v5366_v18  ;;  %v5269_v62 = vmul.f32 %v10381_v20, %v5173_v50  ;;  %v5179_v35 = vsub.f32 %v9936_v55, %v10304_v33  ;;  %v5273_v4 = vmul.f32 %v10395_v15, %v5177_v58  ;;  %v11328_v58 = vld [vmem:[#allocation25_spill] sm:$0xff] }
 0x4b2   : > { %v5580_v11 = vpack.c.bf16 %v5528_v46, %v5524_v61  ;;  %v5145_v12 = vmax.f32 %v5129_v27, 0.0  ;;  %v5114_v47 = vmul.f32 %v10465_v16, %v10465_v16  ;;  %v5271_v52 = vmul.f32 %v10381_v20, %v5175_v37  ;;  %v11327_v46 = vld [vmem:[#allocation22_spill] sm:$0xff] }
 0x4b3   : > { %v5530_v36 = vmax.f32 %v5466_v59, 0.0  ;;  %v5369_v17 = vmul.f32 %v10213_v24, %v5269_v62  ;;  %v5275_v41 = vmul.f32 %v10395_v15, %v5179_v35  ;;  %v5098_v5 = vmul.f32 0.001953125, %v5062_v34 }
 0x4b4   : > { %5916 = vmatmul.mubr.bf16.gmra.mrb[104].mxu0 %v5580_v11  ;;  %v5225_v31 = vadd.f32 1e-05, %v5145_v12  ;;  %v5373_v55 = vmul.f32 %v10213_v24, %v5273_v4  ;;  %v5172_v39 = vsub.f32 %v11325_v57, %v10298_v45  ;;  %v5371_v54 = vmul.f32 %v10219_v6, %v5271_v52  ;;  %v5067_v11 = vpop.xlane.xlu1 %5066 }
 0x4b5   : > { %v5582_v9 = vpack.c.bf16 %v5530_v36, %v5526_v53  ;;  %v5469_v43 = vadd.f32 %v10216_v3, %v5369_v17  ;;  %v5375_v7 = vmul.f32 %v10219_v6, %v5275_v41  ;;  %v5130_v21 = vsub.f32 %v5098_v5, %v5114_v47  ;;  %v11329_v5 = vld [vmem:[#allocation36_spill] sm:$0xff] }
 0x4b6   : > { %7454 = vrsqrt.f32 %v5225_v31  ;;  %v5473_v8 = vadd.f32 %v10216_v3, %v5373_v55  ;;  %v5176_v22 = vsub.f32 %v11326_v51, %v10304_v33  ;;  %v5268_v28 = vmul.f32 %v10381_v20, %v5172_v39 }
 0x4b7   : > { %6013 = vmatmul.mubr.bf16.gmra.mrb[104].mxu1 %v5582_v9  ;;  %v5533_v30 = vmax.f32 %v5469_v43, 0.0  ;;  %v5471_v49 = vadd.f32 %v10222_v42, %v5371_v54  ;;  %v5475_v19 = vadd.f32 %v10222_v42, %v5375_v7  ;;  %v5146_v61 = vmax.f32 %v5130_v21, 0.0  ;;  %v10499_v1 = vpop.eup %7452  ;;  %v11330_v9 = vld [vmem:[#allocation38_spill] sm:$0xff] }
 0x4b8   : > { %v5537_v18 = vmax.f32 %v5473_v8, 0.0  ;;  %v5272_v44 = vmul.f32 %v10395_v15, %v5176_v22  ;;  %v5368_v63 = vmul.f32 %v10225_v29, %v5268_v28  ;;  %v5174_v50 = vsub.f32 %v11327_v46, %v10298_v45  ;;  %v11332_v54 = vld [vmem:[#allocation46_spill] sm:$0xff] }
 0x4b9   : > { %v5535_v59 = vmax.f32 %v5471_v49, 0.0  ;;  %v5539_v53 = vmax.f32 %v5475_v19, 0.0  ;;  %v5226_v27 = vadd.f32 1e-05, %v5146_v61  ;;  %v5178_v34 = vsub.f32 %v11328_v58, %v10304_v33  ;;  %v11334_v58 = vld [vmem:[#allocation35_spill] sm:$0xff] }
 0x4ba   : > { %v5585_v62 = vpack.c.bf16 %v5537_v18, %v5533_v30  ;;  %v5372_v37 = vmul.f32 %v10225_v29, %v5272_v44  ;;  %v5468_v35 = vadd.f32 %v10230_v48, %v5368_v63  ;;  %v5270_v36 = vmul.f32 %v10381_v20, %v5174_v50 }
 0x4bb   : > { %v5587_v12 = vpack.c.bf16 %v5539_v53, %v5535_v59  ;;  %7456 = vrsqrt.f32 %v5226_v27  ;;  %v5274_v4 = vmul.f32 %v10395_v15, %v5178_v34  ;;  %v5115_v45 = vmul.f32 %v10467_v26, %v10467_v26  ;;  %v11331_v15 = vld [vmem:[#allocation37_spill] sm:$0xff]  ;;  %v11333_v53 = vld [vmem:[#allocation31_spill] sm:$0xff] }
 0x4bc   : > { %5923 = vmatprep.mubr.bf16.mxu0 %v5585_v62  ;;  %v5472_v47 = vadd.f32 %v10230_v48, %v5372_v37  ;;  %v5532_v17 = vmax.f32 %v5468_v35, 0.0  ;;  %v5370_v33 = vmul.f32 %v10233_v25, %v5270_v36  ;;  %v5099_v52 = vmul.f32 0.001953125, %v5067_v11 }
 0x4bd   : > { %6020 = vmatprep.mubr.bf16.mxu1 %v5587_v12  ;;  %v5374_v41 = vmul.f32 %v10233_v25, %v5274_v4  ;;  %v5181_v20 = vsub.f32 %v11329_v5, %v10323_v56  ;;  %v5185_v31 = vsub.f32 %v11330_v9, %v10332_v40  ;;  %v5183_v55 = vsub.f32 %v11331_v15, %v10323_v56 }
 0x4be   : > { %v5536_v57 = vmax.f32 %v5472_v47, 0.0  ;;  %v5470_v39 = vadd.f32 %v10238_v13, %v5370_v33  ;;  %v5131_v43 = vsub.f32 %v5099_v52, %v5115_v45  ;;  %v5187_v7 = vsub.f32 %v11332_v54, %v10332_v40  ;;  %v11335_v52 = vld [vmem:[#allocation29_spill] sm:$0xff]  ;;  %v11338_v54 = vld [vmem:[#allocation55_spill] sm:$0xff] }
 0x4bf   : > { %v5474_v21 = vadd.f32 %v10238_v13, %v5374_v41  ;;  %v5277_v8 = vmul.f32 %v10416_v2, %v5181_v20  ;;  %v5281_v51 = vmul.f32 %v10436_v60, %v5185_v31  ;;  %v5279_v22 = vmul.f32 %v10416_v2, %v5183_v55  ;;  %v11336_v31 = vld [vmem:[#allocation43_spill] sm:$0xff] }
 0x4c0   : > { %v10529_v28 = vpop.eup %7454  ;;  %v5584_v30 = vpack.c.bf16 %v5536_v57, %v5532_v17  ;;  %v5534_v49 = vmax.f32 %v5470_v39, 0.0  ;;  %v5147_v19 = vmax.f32 %v5131_v43, 0.0  ;;  %v5283_v61 = vmul.f32 %v10436_v60, %v5187_v7  ;;  %v11337_v39 = vld [vmem:[#allocation44_spill] sm:$0xff] }
 0x4c1   : > { %v5538_v18 = vmax.f32 %v5474_v21, 0.0  ;;  %v5377_v44 = vmul.f32 %v10213_v24, %v5277_v8  ;;  %v5381_v63 = vmul.f32 %v10213_v24, %v5281_v51  ;;  %v5379_v46 = vmul.f32 %v10219_v6, %v5279_v22 }
 0x4c2   : > { %5924 = vmatmul.mubr.bf16.gmra.mrb[108].mxu0 %v5584_v30  ;;  %v5227_v50 = vadd.f32 1e-05, %v5147_v19  ;;  %v5383_v59 = vmul.f32 %v10219_v6, %v5283_v61  ;;  %v5180_v27 = vsub.f32 %v11333_v53, %v10323_v56  ;;  %v5184_v34 = vsub.f32 %v11334_v58, %v10332_v40  ;;  %v11339_v30 = vld [vmem:[#allocation51_spill] sm:$0xff] }
 0x4c3   : > { %v5586_v11 = vpack.c.bf16 %v5538_v18, %v5534_v49  ;;  %v5477_v62 = vadd.f32 %v10216_v3, %v5377_v44  ;;  %v5481_v37 = vadd.f32 %v10216_v3, %v5381_v63  ;;  %v5479_v35 = vadd.f32 %v10222_v42, %v5379_v46  ;;  %v11340_v44 = vld [vmem:[#allocation60_spill] sm:$0xff] }
 0x4c4   : > { %7458 = vrsqrt.f32 %v5227_v50  ;;  %v5483_v36 = vadd.f32 %v10222_v42, %v5383_v59  ;;  %v5276_v12 = vmul.f32 %v10416_v2, %v5180_v27  ;;  %v5280_v4 = vmul.f32 %v10436_v60, %v5184_v34  ;;  %v11341_v34 = vld [vmem:[#allocation41_spill] sm:$0xff] }
 0x4c5   : > { %v10546_v45 = vpop.eup %7456  ;;  %6021 = vmatmul.mubr.bf16.gmra.mrb[108].mxu1 %v5586_v11  ;;  %v5541_v47 = vmax.f32 %v5477_v62, 0.0  ;;  %v5545_v17 = vmax.f32 %v5481_v37, 0.0  ;;  %v5543_v33 = vmax.f32 %v5479_v35, 0.0  ;;  %v5182_v41 = vsub.f32 %v11335_v52, %v10323_v56 }
 0x4c6   : > { %v5547_v5 = vmax.f32 %v5483_v36, 0.0  ;;  %v5376_v20 = vmul.f32 %v10225_v29, %v5276_v12  ;;  %v5380_v9 = vmul.f32 %v10225_v29, %v5280_v4  ;;  %v5186_v15 = vsub.f32 %v11336_v31, %v10332_v40 }
 0x4c7   : > { %v5589_v55 = vpack.c.bf16 %v5545_v17, %v5541_v47  ;;  %v5278_v57 = vmul.f32 %v10416_v2, %v5182_v41  ;;  %v5189_v43 = vsub.f32 %v11337_v39, %v10351_v32  ;;  %v5193_v7 = vsub.f32 %v11338_v54, %v10368_v14  ;;  %v11342_v17 = vld [vmem:[#allocation52_spill] sm:$0xff] }
 0x4c8   : > { %v5591_v21 = vpack.c.bf16 %v5547_v5, %v5543_v33  ;;  %v5476_v56 = vadd.f32 %v10230_v48, %v5376_v20  ;;  %v5480_v8 = vadd.f32 %v10230_v48, %v5380_v9  ;;  %v5282_v51 = vmul.f32 %v10436_v60, %v5186_v15  ;;  %v11343_v9 = vld [vmem:[#allocation21_spill] sm:$0xff] }
 0x4c9   : > { %5931 = vmatprep.mubr.bf16.mxu0 %v5589_v55  ;;  %v5378_v22 = vmul.f32 %v10233_v25, %v5278_v57  ;;  %v5285_v40 = vmul.f32 %v10458_v38, %v5189_v43  ;;  %v5289_v2 = vmul.f32 %v10479_v10, %v5193_v7  ;;  %v5191_v49 = vsub.f32 %v11339_v30, %v10351_v32  ;;  %v11344_v7 = vld [vmem:[#allocation54_spill] sm:$0xff] }
 0x4ca   : > { %6028 = vmatprep.mubr.bf16.mxu1 %v5591_v21  ;;  %v5540_v19 = vmax.f32 %v5476_v56, 0.0  ;;  %v5544_v61 = vmax.f32 %v5480_v8, 0.0  ;;  %v5382_v18 = vmul.f32 %v10233_v25, %v5282_v51  ;;  %v5195_v63 = vsub.f32 %v11340_v44, %v10368_v14 }
 0x4cb   : > { %v5478_v60 = vadd.f32 %v10238_v13, %v5378_v22  ;;  %v5385_v46 = vmul.f32 %v10213_v24, %v5285_v40  ;;  %v5389_v50 = vmul.f32 %v10213_v24, %v5289_v2  ;;  %v5287_v59 = vmul.f32 %v10458_v38, %v5191_v49  ;;  %v11345_v22 = vld [vmem:[#allocation62_spill] sm:$0xff]  ;;  %v11346_v49 = vld [vmem:[#allocation71_spill] sm:$0xff] }
 0x4cc   : > { %v5588_v53 = vpack.c.bf16 %v5544_v61, %v5540_v19  ;;  %v5482_v27 = vadd.f32 %v10238_v13, %v5382_v18  ;;  %v5291_v58 = vmul.f32 %v10479_v10, %v5195_v63  ;;  %v5188_v11 = vsub.f32 %v11341_v34, %v10351_v32  ;;  %v11349_v34 = vld [vmem:[#allocation64_spill] sm:$0xff] }
 0x4cd   : > { %v5542_v62 = vmax.f32 %v5478_v60, 0.0  ;;  %v5485_v37 = vadd.f32 %v10216_v3, %v5385_v46  ;;  %v5489_v35 = vadd.f32 %v10216_v3, %v5389_v50  ;;  %v5387_v36 = vmul.f32 %v10219_v6, %v5287_v59  ;;  %v11348_v50 = vld [vmem:[#allocation20_spill] sm:$0xff] }
 0x4ce   : > { %v10581_v12 = vpop.eup %7458  ;;  %5932 = vmatmul.mubr.bf16.gmra.mrb[112].mxu0 %v5588_v53  ;;  %v5546_v4 = vmax.f32 %v5482_v27, 0.0  ;;  %v5391_v47 = vmul.f32 %v10219_v6, %v5291_v58  ;;  %v5192_v33 = vsub.f32 %v11342_v17, %v10368_v14  ;;  %v5284_v52 = vmul.f32 %v10458_v38, %v5188_v11 }
 0x4cf   : > { %v5549_v41 = vmax.f32 %v5485_v37, 0.0  ;;  %v5553_v5 = vmax.f32 %v5489_v35, 0.0  ;;  %v5487_v20 = vadd.f32 %v10222_v42, %v5387_v36  ;;  %v5190_v31 = vsub.f32 %v11343_v9, %v10351_v32 }
 0x4d0   : > { %v5590_v15 = vpack.c.bf16 %v5546_v4, %v5542_v62  ;;  %v5491_v55 = vadd.f32 %v10222_v42, %v5391_v47  ;;  %v5288_v57 = vmul.f32 %v10479_v10, %v5192_v33  ;;  %v5384_v39 = vmul.f32 %v10225_v29, %v5284_v52  ;;  %v11350_v33 = vld [vmem:[#allocation67_spill] sm:$0xff] }
 0x4d1   : > { %v5593_v43 = vpack.c.bf16 %v5553_v5, %v5549_v41  ;;  %v5551_v54 = vmax.f32 %v5487_v20, 0.0  ;;  %v5194_v21 = vsub.f32 %v11344_v7, %v10368_v14  ;;  %v5286_v56 = vmul.f32 %v10458_v38, %v5190_v31  ;;  %v11347_v14 = vld [vmem:[#allocation69_spill] sm:$0xff] }
 0x4d2   : > { %6029 = vmatmul.mubr.bf16.gmra.mrb[112].mxu1 %v5590_v15  ;;  %v5555_v8 = vmax.f32 %v5491_v55, 0.0  ;;  %v5388_v51 = vmul.f32 %v10225_v29, %v5288_v57  ;;  %v5484_v32 = vadd.f32 %v10230_v48, %v5384_v39  ;;  %v5197_v40 = vsub.f32 %v11345_v22, %v10403_v23  ;;  %v11351_v57 = vld [vmem:[#allocation58_spill] sm:$0xff] }
 0x4d3   : > { %5939 = vmatprep.mubr.bf16.mxu0 %v5593_v43  ;;  %v5290_v2 = vmul.f32 %v10479_v10, %v5194_v21  ;;  %v5386_v30 = vmul.f32 %v10233_v25, %v5286_v56  ;;  %v5201_v19 = vsub.f32 %v11346_v49, %v10406_v0  ;;  %v5199_v38 = vsub.f32 %v11347_v14, %v10403_v23 }
 0x4d4   : > { %v5595_v61 = vpack.c.bf16 %v5555_v8, %v5551_v54  ;;  %v5488_v18 = vadd.f32 %v10230_v48, %v5388_v51  ;;  %v5548_v44 = vmax.f32 %v5484_v32, 0.0  ;;  %v5293_v63 = vmul.f32 %v10499_v1, %v5197_v40  ;;  %v11352_v51 = vld [vmem:[#allocation17_spill] sm:$0xff] }
 0x4d5   : > { %v5390_v60 = vmul.f32 %v10233_v25, %v5290_v2  ;;  %v5486_v46 = vadd.f32 %v10238_v13, %v5386_v30  ;;  %v5297_v10 = vmul.f32 %v10529_v28, %v5201_v19  ;;  %v5203_v59 = vsub.f32 %v11348_v50, %v10406_v0 }
 0x4d6   : > { %6036 = vmatprep.mubr.bf16.mxu1 %v5595_v61  ;;  %v5552_v53 = vmax.f32 %v5488_v18, 0.0  ;;  %v5393_v27 = vmul.f32 %v10213_v24, %v5293_v63  ;;  %v5295_v58 = vmul.f32 %v10499_v1, %v5199_v38  ;;  %v5196_v11 = vsub.f32 %v11349_v34, %v10403_v23  ;;  %v11354_v61 = vld [vmem:[#allocation39_spill] sm:$0xff]  ;;  %v11355_v63 = vld [vmem:[#allocation33_spill] sm:$0xff]  ;;  %v11357_v34 = vld [vmem:[#allocation14_spill] sm:$0xff] }
 0x4d7   : > { %v5490_v62 = vadd.f32 %v10238_v13, %v5390_v60  ;;  %v5550_v37 = vmax.f32 %v5486_v46, 0.0  ;;  %v5397_v35 = vmul.f32 %v10213_v24, %v5297_v10  ;;  %v5299_v36 = vmul.f32 %v10529_v28, %v5203_v59 }
 0x4d8   : > { %v5592_v4 = vpack.c.bf16 %v5552_v53, %v5548_v44  ;;  %v5493_v47 = vadd.f32 %v10216_v3, %v5393_v27  ;;  %v5395_v17 = vmul.f32 %v10219_v6, %v5295_v58  ;;  %v5200_v52 = vsub.f32 %v11350_v33, %v10406_v0  ;;  %v11356_v53 = vld [vmem:[#allocation34_spill] sm:$0xff]  ;;  %v11358_v33 = vld [vmem:[#allocation27_spill] sm:$0xff] }
 0x4d9   : > { %v5554_v41 = vmax.f32 %v5490_v62, 0.0  ;;  %v5497_v5 = vadd.f32 %v10216_v3, %v5397_v35  ;;  %v5399_v20 = vmul.f32 %v10219_v6, %v5299_v36  ;;  %v5292_v9 = vmul.f32 %v10499_v1, %v5196_v11 }
 0x4da   : > { %5940 = vmatmul.mubr.bf16.gmra.mrb[116].mxu0 %v5592_v4  ;;  %v5557_v31 = vmax.f32 %v5493_v47, 0.0  ;;  %v5495_v15 = vadd.f32 %v10222_v42, %v5395_v17  ;;  %v5296_v55 = vmul.f32 %v10529_v28, %v5200_v52  ;;  %v5198_v39 = vsub.f32 %v11351_v57, %v10403_v23  ;;  %v11353_v23 = vld [vmem:[#allocation28_spill] sm:$0xff] }
 0x4db   : > { %v5594_v43 = vpack.c.bf16 %v5554_v41, %v5550_v37  ;;  %v5561_v54 = vmax.f32 %v5497_v5, 0.0  ;;  %v5499_v7 = vadd.f32 %v10222_v42, %v5399_v20  ;;  %v5392_v21 = vmul.f32 %v10225_v29, %v5292_v9  ;;  %v11359_v9 = vld [vmem:[#allocation32_spill] sm:$0xff] }
 0x4dc   : > { %v5559_v56 = vmax.f32 %v5495_v15, 0.0  ;;  %v5396_v8 = vmul.f32 %v10225_v29, %v5296_v55  ;;  %v5202_v32 = vsub.f32 %v11352_v51, %v10406_v0  ;;  %v5294_v22 = vmul.f32 %v10499_v1, %v5198_v39 }
 0x4dd   : > { %6037 = vmatmul.mubr.bf16.gmra.mrb[116].mxu1 %v5594_v43  ;;  %v5597_v40 = vpack.c.bf16 %v5561_v54, %v5557_v31  ;;  %v5563_v2 = vmax.f32 %v5499_v7, 0.0  ;;  %v5492_v30 = vadd.f32 %v10230_v48, %v5392_v21  ;;  %v5205_v49 = vsub.f32 %v11353_v23, %v10465_v16  ;;  %v11360_v7 = vld [vmem:[#allocation24_spill] sm:$0xff] }
 0x4de   : > { %v5496_v19 = vadd.f32 %v10230_v48, %v5396_v8  ;;  %v5298_v14 = vmul.f32 %v10529_v28, %v5202_v32  ;;  %v5394_v38 = vmul.f32 %v10233_v25, %v5294_v22  ;;  %v5209_v18 = vsub.f32 %v11354_v61, %v10467_v26 }
 0x4df   : > { %5947 = vmatprep.mubr.bf16.mxu0 %v5597_v40  ;;  %v5599_v0 = vpack.c.bf16 %v5563_v2, %v5559_v56  ;;  %v5556_v1 = vmax.f32 %v5492_v30, 0.0  ;;  %v5301_v44 = vmul.f32 %v10546_v45, %v5205_v49  ;;  %v5207_v60 = vsub.f32 %v11355_v63, %v10465_v16 }
 0x4e0   : > { %v5560_v46 = vmax.f32 %v5496_v19, 0.0  ;;  %v5398_v10 = vmul.f32 %v10233_v25, %v5298_v14  ;;  %v5494_v50 = vadd.f32 %v10238_v13, %v5394_v38  ;;  %v5305_v28 = vmul.f32 %v10581_v12, %v5209_v18 }
 0x4e1   : > { %6044 = vmatprep.mubr.bf16.mxu1 %v5599_v0  ;;  %v5401_v59 = vmul.f32 %v10213_v24, %v5301_v44  ;;  %v5211_v27 = vsub.f32 %v11356_v53, %v10467_v26  ;;  %v5303_v58 = vmul.f32 %v10546_v45, %v5207_v60  ;;  %v5204_v11 = vsub.f32 %v11357_v34, %v10465_v16 }
 0x4e2   : > { %v5596_v62 = vpack.c.bf16 %v5560_v46, %v5556_v1  ;;  %v5498_v37 = vadd.f32 %v10238_v13, %v5398_v10  ;;  %v5558_v35 = vmax.f32 %v5494_v50, 0.0  ;;  %v5405_v36 = vmul.f32 %v10213_v24, %v5305_v28 }
 0x4e3   : > { %v5501_v4 = vadd.f32 %v10216_v3, %v5401_v59  ;;  %v5307_v47 = vmul.f32 %v10581_v12, %v5211_v27  ;;  %v5403_v17 = vmul.f32 %v10219_v6, %v5303_v58  ;;  %v5208_v52 = vsub.f32 %v11358_v33, %v10467_v26 }
 0x4e4   : > { %5948 = vmatmul.mubr.bf16.gmra.mrb[120].mxu0 %v5596_v62  ;;  %v5562_v41 = vmax.f32 %v5498_v37, 0.0  ;;  %v5505_v5 = vadd.f32 %v10216_v3, %v5405_v36  ;;  %v5300_v20 = vmul.f32 %v10546_v45, %v5204_v11  ;;  %v5206_v31 = vsub.f32 %v11359_v9, %v10465_v16 }
 0x4e5   : > { %v5565_v15 = vmax.f32 %v5501_v4, 0.0  ;;  %v5407_v24 = vmul.f32 %v10219_v6, %v5307_v47  ;;  %v5503_v55 = vadd.f32 %v10222_v42, %v5403_v17  ;;  %v5304_v57 = vmul.f32 %v10581_v12, %v5208_v52 }
 0x4e6   : > { %v5598_v39 = vpack.c.bf16 %v5562_v41, %v5558_v35  ;;  %v5569_v43 = vmax.f32 %v5505_v5, 0.0  ;;  %v5400_v54 = vmul.f32 %v10225_v29, %v5300_v20  ;;  %v5210_v21 = vsub.f32 %v11360_v7, %v10467_v26 }
 0x4e7   : > { %v5507_v3 = vadd.f32 %v10222_v42, %v5407_v24  ;;  %v5404_v56 = vmul.f32 %v10225_v29, %v5304_v57  ;;  %v5302_v16 = vmul.f32 %v10546_v45, %v5206_v31  ;;  %v5567_v32 = vmax.f32 %v5503_v55, 0.0 }
 0x4e8   : > { %6045 = vmatmul.mubr.bf16.gmra.mrb[120].mxu1 %v5598_v39  ;;  %v5601_v8 = vpack.c.bf16 %v5569_v43, %v5565_v15  ;;  %v5500_v6 = vadd.f32 %v10230_v48, %v5400_v54  ;;  %v5306_v51 = vmul.f32 %v10581_v12, %v5210_v21 }
 0x4e9   : > { %v5571_v22 = vmax.f32 %v5507_v3, 0.0  ;;  %v5504_v40 = vadd.f32 %v10230_v48, %v5404_v56  ;;  %v5402_v2 = vmul.f32 %v10233_v25, %v5302_v16 }
 0x4ea   : > { %5955 = vmatprep.mubr.bf16.mxu0 %v5601_v8  ;;  %v5406_v42 = vmul.f32 %v10233_v25, %v5306_v51  ;;  %v5564_v29 = vmax.f32 %v5500_v6, 0.0  ;;  %v10688_v25 = vld [vmem:[%s10784_s6] ss:$0 sm:$0xff] }
 0x4eb   : > { %v5603_v26 = vpack.c.bf16 %v5571_v22, %v5567_v32  ;;  %v5568_v30 = vmax.f32 %v5504_v40, 0.0  ;;  %v5502_v45 = vadd.f32 %v10238_v13, %v5402_v2 }
 0x4ec   : > { %v5506_v23 = vadd.f32 %v10238_v13, %v5406_v42 }
 0x4ed   : > { %6052 = vmatprep.mubr.bf16.mxu1 %v5603_v26  ;;  %v5600_v12 = vpack.c.bf16 %v5568_v30, %v5564_v29  ;;  %v5566_v49 = vmax.f32 %v5502_v45, 0.0 }
 0x4ee   : > { %v5570_v19 = vmax.f32 %v5506_v23, 0.0 }
 0x4ef   : > { %5956 = vmatmul.mubr.bf16.gmra.mrb[124].mxu0 %v5600_v12 }
 0x4f0   : > { %v5602_v48 = vpack.c.bf16 %v5570_v19, %v5566_v49 }
 0x4f2   : > { %6053 = vmatmul.mubr.bf16.gmra.mrb[124].mxu1 %v5602_v48 }
 0x568   : > { %v6545_v14 = vpop.f32.mrb[96].mxu0 }
 0x569   : > { %v6546_v38 = vpop.f32.mrb[97].mxu0 }
 0x56a   : > { %v6547_v61 = vadd.f32 %v6546_v38, %v6545_v14  ;;  %v6548_v18 = vpop.f32.mrb[98].mxu0  ;;  %v6609_v0 = vpop.f32.mrb[96].mxu1 }
 0x56b   : > { %v6549_v13 = vpop.f32.mrb[99].mxu0  ;;  %v6610_v44 = vpop.f32.mrb[97].mxu1 }
 0x56c   : > { %v5902_v1 = vadd.f32 %v6547_v61, %v10688_v25  ;;  %v6550_v63 = vadd.f32 %v6549_v13, %v6548_v18  ;;  %v6611_v60 = vadd.f32 %v6610_v44, %v6609_v0  ;;  %v6612_v46 = vpop.f32.mrb[98].mxu1 }
 0x56d   : > { %v6613_v50 = vpop.f32.mrb[99].mxu1 }
 0x56e   : > { %v5905_v10 = vadd.f32 %v6550_v63, %v10688_v25  ;;  %v5999_v28 = vadd.f32 %v6611_v60, %v5902_v1  ;;  %v6614_v59 = vadd.f32 %v6613_v50, %v6612_v46 }
 0x570   : > { %6061 = vst [vmem:[%s10694_s20] sm:$0xff] %v5999_v28  ;;  %v6002_v53 = vadd.f32 %v6614_v59, %v5905_v10 }
 0x572   : > { %6062 = vst [vmem:[%s10694_s20 + $0x8] sm:$0xff] %v6002_v53 }
 0x578   : > { %v6551_v27 = vpop.f32.mrb[100].mxu0 }
 0x579   : > { %v6552_v58 = vpop.f32.mrb[101].mxu0 }
 0x57a   : > { %v6553_v34 = vadd.f32 %v6552_v58, %v6551_v27  ;;  %v6554_v11 = vpop.f32.mrb[102].mxu0 }
 0x57b   : > { %v6615_v62 = vpop.f32.mrb[100].mxu1  ;;  %v6555_v37 = vpop.f32.mrb[103].mxu0 }
 0x57c   : > { %v5910_v35 = vadd.f32 %v6553_v34, %v10688_v25  ;;  %v6616_v36 = vpop.f32.mrb[101].mxu1  ;;  %v6556_v4 = vadd.f32 %v6555_v37, %v6554_v11 }
 0x57d   : > { %v6617_v47 = vadd.f32 %v6616_v36, %v6615_v62  ;;  %v6618_v17 = vpop.f32.mrb[102].mxu1 }
 0x57e   : > { %v5913_v33 = vadd.f32 %v6556_v4, %v10688_v25  ;;  %v6619_v52 = vpop.f32.mrb[103].mxu1 }
 0x57f   : > { %v6007_v41 = vadd.f32 %v6617_v47, %v5910_v35  ;;  %v6620_v5 = vadd.f32 %v6619_v52, %v6618_v17 }
 0x581   : > { %6063 = vst [vmem:[%s10694_s20 + $0x10] sm:$0xff] %v6007_v41  ;;  %v6010_v20 = vadd.f32 %v6620_v5, %v5913_v33 }
 0x583   : > { %6064 = vst [vmem:[%s10694_s20 + $0x18] sm:$0xff] %v6010_v20 }
 0x587   : > { %v6557_v9 = vpop.f32.mrb[104].mxu0 }
 0x588   : > { %v6558_v31 = vpop.f32.mrb[105].mxu0 }
 0x589   : > { %v6559_v15 = vadd.f32 %v6558_v31, %v6557_v9  ;;  %v6560_v24 = vpop.f32.mrb[106].mxu0 }
 0x58a   : > { %v6621_v55 = vpop.f32.mrb[104].mxu1  ;;  %v6561_v57 = vpop.f32.mrb[107].mxu0 }
 0x58b   : > { %v5918_v39 = vadd.f32 %v6559_v15, %v10688_v25  ;;  %v6622_v43 = vpop.f32.mrb[105].mxu1  ;;  %v6562_v54 = vadd.f32 %v6561_v57, %v6560_v24 }
 0x58c   : > { %v6623_v7 = vadd.f32 %v6622_v43, %v6621_v55  ;;  %v6624_v21 = vpop.f32.mrb[106].mxu1 }
 0x58d   : > { %v5921_v3 = vadd.f32 %v6562_v54, %v10688_v25  ;;  %v6625_v56 = vpop.f32.mrb[107].mxu1 }
 0x58e   : > { %v6015_v16 = vadd.f32 %v6623_v7, %v5918_v39  ;;  %v6626_v8 = vadd.f32 %v6625_v56, %v6624_v21 }
 0x590   : > { %6065 = vst [vmem:[%s10694_s20 + $0x20] sm:$0xff] %v6015_v16  ;;  %v6018_v6 = vadd.f32 %v6626_v8, %v5921_v3 }
 0x592   : > { %6066 = vst [vmem:[%s10694_s20 + $0x28] sm:$0xff] %v6018_v6 }
 0x595   : > { %v6563_v51 = vpop.f32.mrb[108].mxu0 }
 0x596   : > { %v6564_v32 = vpop.f32.mrb[109].mxu0 }
 0x597   : > { %v6565_v22 = vadd.f32 %v6564_v32, %v6563_v51  ;;  %v6566_v40 = vpop.f32.mrb[110].mxu0 }
 0x598   : > { %v6627_v2 = vpop.f32.mrb[108].mxu1  ;;  %v6567_v42 = vpop.f32.mrb[111].mxu0 }
 0x599   : > { %v5926_v26 = vadd.f32 %v6565_v22, %v10688_v25  ;;  %v6628_v29 = vpop.f32.mrb[109].mxu1  ;;  %v6568_v30 = vadd.f32 %v6567_v42, %v6566_v40 }
 0x59a   : > { %v6629_v45 = vadd.f32 %v6628_v29, %v6627_v2  ;;  %v6630_v23 = vpop.f32.mrb[110].mxu1 }
 0x59b   : > { %v5929_v12 = vadd.f32 %v6568_v30, %v10688_v25  ;;  %v6631_v49 = vpop.f32.mrb[111].mxu1 }
 0x59c   : > { %v6023_v19 = vadd.f32 %v6629_v45, %v5926_v26  ;;  %v6632_v48 = vadd.f32 %v6631_v49, %v6630_v23 }
 0x59e   : > { %6067 = vst [vmem:[%s10694_s20 + $0x30] sm:$0xff] %v6023_v19  ;;  %v6026_v14 = vadd.f32 %v6632_v48, %v5929_v12 }
 0x5a0   : > { %6068 = vst [vmem:[%s10694_s20 + $0x38] sm:$0xff] %v6026_v14 }
 0x5a1   : > { %v6569_v38 = vpop.f32.mrb[112].mxu0 }
 0x5a2   : > { %v6570_v61 = vpop.f32.mrb[113].mxu0 }
 0x5a3   : > { %v6571_v18 = vadd.f32 %v6570_v61, %v6569_v38  ;;  %v6572_v0 = vpop.f32.mrb[114].mxu0 }
 0x5a4   : > { %v6573_v13 = vpop.f32.mrb[115].mxu0 }
 0x5a5   : > { %v6633_v1 = vpop.f32.mrb[112].mxu1  ;;  %v5934_v44 = vadd.f32 %v6571_v18, %v10688_v25  ;;  %v6574_v63 = vadd.f32 %v6573_v13, %v6572_v0 }
 0x5a6   : > { %v6634_v60 = vpop.f32.mrb[113].mxu1 }
 0x5a7   : > { %v6635_v46 = vadd.f32 %v6634_v60, %v6633_v1  ;;  %v6636_v10 = vpop.f32.mrb[114].mxu1  ;;  %v5937_v50 = vadd.f32 %v6574_v63, %v10688_v25 }
 0x5a8   : > { %v6637_v28 = vpop.f32.mrb[115].mxu1 }
 0x5a9   : > { %v6031_v59 = vadd.f32 %v6635_v46, %v5934_v44  ;;  %v6638_v53 = vadd.f32 %v6637_v28, %v6636_v10 }
 0x5ab   : > { %6069 = vst [vmem:[%s10694_s20 + $0x40] sm:$0xff] %v6031_v59  ;;  %v6034_v27 = vadd.f32 %v6638_v53, %v5937_v50 }
 0x5ad   : > { %6070 = vst [vmem:[%s10694_s20 + $0x48] sm:$0xff] %v6034_v27  ;;  %v6575_v58 = vpop.f32.mrb[116].mxu0 }
 0x5ae   : > { %v6576_v34 = vpop.f32.mrb[117].mxu0 }
 0x5af   : > { %v6577_v11 = vadd.f32 %v6576_v34, %v6575_v58  ;;  %v6578_v62 = vpop.f32.mrb[118].mxu0 }
 0x5b0   : > { %v6639_v37 = vpop.f32.mrb[116].mxu1  ;;  %v6579_v35 = vpop.f32.mrb[119].mxu0 }
 0x5b1   : > { %v5942_v36 = vadd.f32 %v6577_v11, %v10688_v25  ;;  %v6640_v4 = vpop.f32.mrb[117].mxu1  ;;  %v6580_v47 = vadd.f32 %v6579_v35, %v6578_v62 }
 0x5b2   : > { %v6641_v17 = vadd.f32 %v6640_v4, %v6639_v37  ;;  %v6642_v33 = vpop.f32.mrb[118].mxu1 }
 0x5b3   : > { %v5945_v52 = vadd.f32 %v6580_v47, %v10688_v25  ;;  %v6643_v41 = vpop.f32.mrb[119].mxu1 }
 0x5b4   : > { %v6039_v5 = vadd.f32 %v6641_v17, %v5942_v36  ;;  %v6644_v20 = vadd.f32 %v6643_v41, %v6642_v33 }
 0x5b6   : > { %6071 = vst [vmem:[%s10694_s20 + $0x50] sm:$0xff] %v6039_v5  ;;  %v6042_v9 = vadd.f32 %v6644_v20, %v5945_v52 }
 0x5b7   : > { %v6581_v31 = vpop.f32.mrb[120].mxu0 }
 0x5b8   : > { %6072 = vst [vmem:[%s10694_s20 + $0x58] sm:$0xff] %v6042_v9  ;;  %v6582_v15 = vpop.f32.mrb[121].mxu0 }
 0x5b9   : > { %v6583_v24 = vadd.f32 %v6582_v15, %v6581_v31  ;;  %v6584_v55 = vpop.f32.mrb[122].mxu0 }
 0x5ba   : > { %v6585_v57 = vpop.f32.mrb[123].mxu0 }
 0x5bb   : > { %v6645_v39 = vpop.f32.mrb[120].mxu1  ;;  %v5950_v43 = vadd.f32 %v6583_v24, %v10688_v25  ;;  %v6586_v54 = vadd.f32 %v6585_v57, %v6584_v55 }
 0x5bc   : > { %v6646_v7 = vpop.f32.mrb[121].mxu1 }
 0x5bd   : > { %v6647_v21 = vadd.f32 %v6646_v7, %v6645_v39  ;;  %v6648_v3 = vpop.f32.mrb[122].mxu1  ;;  %v5953_v56 = vadd.f32 %v6586_v54, %v10688_v25 }
 0x5be   : > { %v6649_v16 = vpop.f32.mrb[123].mxu1 }
 0x5bf   : > { %v6047_v8 = vadd.f32 %v6647_v21, %v5950_v43  ;;  %v6650_v6 = vadd.f32 %v6649_v16, %v6648_v3 }
 0x5c1   : > { %6073 = vst [vmem:[%s10694_s20 + $0x60] sm:$0xff] %v6047_v8  ;;  %v6050_v51 = vadd.f32 %v6650_v6, %v5953_v56 }
 0x5c2   : > { %v6587_v32 = vpop.f32.mrb[124].mxu0 }
 0x5c3   : > { %6074 = vst [vmem:[%s10694_s20 + $0x68] sm:$0xff] %v6050_v51  ;;  %v6588_v22 = vpop.f32.mrb[125].mxu0 }
 0x5c4   : > { %v6589_v40 = vadd.f32 %v6588_v22, %v6587_v32  ;;  %v6590_v2 = vpop.f32.mrb[126].mxu0 }
 0x5c5   : > { %v6651_v42 = vpop.f32.mrb[124].mxu1  ;;  %v6591_v26 = vpop.f32.mrb[127].mxu0 }
 0x5c6   : > { %v5958_v29 = vadd.f32 %v6589_v40, %v10688_v25  ;;  %v6652_v30 = vpop.f32.mrb[125].mxu1  ;;  %v6592_v45 = vadd.f32 %v6591_v26, %v6590_v2 }
 0x5c7   : > { %v6653_v23 = vadd.f32 %v6652_v30, %v6651_v42  ;;  %v6654_v12 = vpop.f32.mrb[126].mxu1 }
 0x5c8   : > { %v5961_v49 = vadd.f32 %v6592_v45, %v10688_v25  ;;  %v6655_v19 = vpop.f32.mrb[127].mxu1 }
 0x5c9   : > { %v6055_v48 = vadd.f32 %v6653_v23, %v5958_v29  ;;  %v6656_v14 = vadd.f32 %v6655_v19, %v6654_v12 }
 0x5cb   : > { %6075 = vst [vmem:[%s10694_s20 + $0x70] sm:$0xff] %v6055_v48  ;;  %v6058_v38 = vadd.f32 %v6656_v14, %v5961_v49 }
 0x5cd   : > { %6076 = vst [vmem:[%s10694_s20 + $0x78] sm:$0xff] %v6058_v38 }
 0x5ce   : > { %7533 = shalt.err (!%p7530_p11)
}
 0x5cf   : > { %s7534_s17 = scalar_lea.hbm %s10729_s8, 2048  ;;  %s7538_s13 = scalar_lea.hbm %s10785_s7, 4096 }
 0x5d0   : > { %p7535_p13 = scmp.ne.s32.totalorder %s10729_s8, %s7534_s17  ;;  %p7539_p6 = scmp.lt.u32.totalorder %s10729_s8, %s10785_s7 }
 0x5d1   : > { %p7540_p9 = scmp.lt.u32.totalorder %s7538_s13, %s7534_s17  ;;  %p7542_p10 = scmp.lt.u32.totalorder %s7534_s17, %s10729_s8 }
 0x5d2   : > { %p7536_p0 = pnand %p7535_p13, %p11361_p1 }
 0x5d3   : > { %p7541_p12 = por %p7540_p9, %p7539_p6 }
 0x5d4   : > { %p7537_p5 = pneg %p7536_p0 }
 0x5d5   : > { %p7543_p2 = por %p7542_p10, %p7541_p12 }
 0x5d7   : > { %p7544_p3 = pnand %p7543_p2, %p7537_p5 }
 0x5d9   : > { %7547 = shalt.err (!%p7544_p3)
}
 0x5da   : > { %s7600_s21 = smov 128   ;;  %s7601_s23 = smov 8  }
 0x5db   : > { %6921 = dma.vmem_to_hbm [thread:$0]  (%p11361_p1), %s10731_s22, 2048, %s10729_s8, %s10737_s28, %s7600_s21, %s7600_s21, %s7601_s23  }
 0x5dc PF: > { %p6938_p4 = scmp.ge.s32.totalorder %s7590_s27, 2  ;;  %s6106_s29 = sand.u32 1, %s7578_s24  }
 0x5dd   : > { %p11362_p7 = scmp.ne.s32.totalorder %s10981_s12, 0  ;;  %s6107_s9 = scalar_lea.sflag [#allocation4], %s6106_s29 }
 0x5df   : > { %p6931_p8 = pnand %p6938_p4, %p11362_p7 }
 0x5e1   : > { %7573 = dma.done.wait (!%p6931_p8), %s6107_s9, 2048  }
 0x5e2   : > { %7575 = vsyncadd (!%p6931_p8), %s6107_s9, 4294965248  ;;  %s11363_s15 = sld [smem:[#allocation11_spill]]  ;;  %p19_p11 = scmp.ge.s32.totalorder %s7667_s30, 4  }
 0x5e3   : > { %s11364_s24 = smov %s7582_s25  ;;  %s11365_s25 = smov %s7586_s26 }
 0x5e4   : > { %s11367_s27 = smov %s7667_s30  ;;  %21 = sbr.rel (!%p19_p11) target bundleno = 5 (0x5), region = 92 }
 0x5e8   : > { %s11366_s26 = smov %s11363_s15 }
 0x5eb   :  { %6112 = vsyncpa [#allocation3], 1 }
 0x5ec   :  { %6114 = vsyncpa [#allocation3 + $0x1], 1 }
 0x5ed   :  { %6115 = vsyncpa [#allocation6], 1 }
 0x5ee   :  { %6116 = vsyncpa [#allocation4], 1 }
 0x5ef   :  { %6118 = vsyncpa [#allocation4 + $0x1], 1 }

</bundles_post_ra>
